<compile_context>
chip_gen: v7x
topology: tpu7x:2x2x1
jax: 0.10.0
libtpu: 0.0.40
codegen_flags: <defaults>
</compile_context>

<pallas_src>
import jax
import jax.numpy as jnp
from jax.experimental import pallas as pl
from jax.experimental.pallas import tpu as pltpu

WALK_LENGTH = 8       # pe_dim for pe_type='random_walk'
HIDDEN = 32           # hidden_channels
LN_EPS = 1e-5         # torch.nn.LayerNorm default eps
LANE = 128            # TPU lane width / MXU alignment


def pe_kernel(p_ref, d1_ref, x_ref, w_ref, b_ref, g_ref, beta_ref, out_ref):
    """Fused random-walk-PE -> Linear -> LayerNorm -> residual-add.

    Processes GB graphs per grid step:
      p_ref:    (GB, NP, NP) f32  row-normalized transition matrices
      d1_ref:   (GB, NP, 1)  f32  diag(P) (computed in the wrapper)
      x_ref:    (GB, NP, H)       node features
      w_ref:    (WL, H)           Linear weight (transposed torch layout)
      b/g/beta: (1, H)            Linear bias, LN gamma, LN beta
    """
    GB, NP, _ = p_ref.shape
    H = out_ref.shape[-1]
    WL = w_ref.shape[0]

    # Hoisted parameter casts (JAX does not CSE convert/broadcast ops inside
    # the unrolled loop below).
    W = w_ref[...].astype(jnp.float32)
    b = b_ref[...].astype(jnp.float32)
    gamma = g_ref[...].astype(jnp.float32)
    beta = beta_ref[...].astype(jnp.float32)

    P = p_ref[...]                       # f32 - elementwise diag products (VPU)
    P_bf = P.astype(jnp.bfloat16)        # bf16 - MXU operand only

    # Meet-in-the-middle: build P^1 .. P^ceil(WL/2) (ceil(WL/2)-1 matmuls,
    # bf16 operands / f32 accumulation), then
    #   diag(P^{a+b}) = rowsum(P^a * (P^b)^T).
    half = (WL + 1) // 2
    powers = [P]                                       # P^1 .. P^half (f32)
    for _ in range(half - 1):
        powers.append(jnp.einsum(
            'bij,bjk->bik', powers[-1].astype(jnp.bfloat16), P_bf,
            preferred_element_type=jnp.float32))
    # Transposes of P^1 .. P^{floor(WL/2)}: XLU work, overlaps the MXU chain.
    powers_t = [jnp.swapaxes(powers[i], -1, -2) for i in range(WL // 2)]

    # Linear projection accumulated as a VPU broadcast-MAC:
    #   h = b + sum_k diag(P^k) * W[k-1, :]
    h = d1_ref[...] * W[0:1, :] + b                    # k = 1 (diag from wrapper)
    for k in range(2, WL + 1):
        a = (k + 1) // 2                               # ceil(k/2)  <= half
        c = k - a                                      # floor(k/2) <= WL//2
        diag_k = jnp.sum(powers[a - 1] * powers_t[c - 1], axis=-1, keepdims=True)
        h = h + diag_k * W[k - 1:k, :]

    # LayerNorm over the hidden dimension (biased variance, torch defaults).
    mean = jnp.mean(h, axis=-1, keepdims=True)
    var = jnp.mean((h - mean) ** 2, axis=-1, keepdims=True)
    ln = (h - mean) * jax.lax.rsqrt(var + LN_EPS) * gamma + beta

    # Residual add.
    out_ref[...] = (x_ref[...].astype(jnp.float32) + ln).astype(out_ref.dtype)


def positional_encoding(x, P, w, b, gamma, beta):
    """x: [G, N, H] node features per graph, P: [G, N, N] row-normalized
    random-walk transition matrices, w: [walk_length, H] (torch Linear weight
    transposed), b/gamma/beta: [1, H]. Returns x + LayerNorm(Linear(rw_pe))."""
    G, N, H = x.shape
    WL = w.shape[0]

    # Lane/MXU-aligned node count. Zero padding preserves matrix powers
    # ([[P,0],[0,0]]^k = [[P^k,0],[0,0]]); padded rows are sliced off below.
    NP = ((N + LANE - 1) // LANE) * LANE
    pad = NP - N
    P_pad = jnp.pad(P, ((0, 0), (0, pad), (0, pad))).astype(jnp.float32)
    x_pad = jnp.pad(x, ((0, 0), (0, pad), (0, 0)))
    diag1 = jnp.diagonal(P_pad, axis1=-2, axis2=-1)[..., None]   # (G, NP, 1)

    # Graphs per grid step: batch small graphs to amortize per-step overhead
    # and keep the MXU busy; large graphs go one per step (whole-P live set).
    GB = min(G, max(1, (4 * LANE) // NP)) if NP <= 512 else 1
    Gp = ((G + GB - 1) // GB) * GB
    if Gp != G:            # pad graph axis (zero P -> finite output, sliced off)
        P_pad = jnp.pad(P_pad, ((0, Gp - G), (0, 0), (0, 0)))
        x_pad = jnp.pad(x_pad, ((0, Gp - G), (0, 0), (0, 0)))
        diag1 = jnp.pad(diag1, ((0, Gp - G), (0, 0), (0, 0)))

    # Per-chip VMEM limit: ~3/4 of physical (96 MiB on v5e/v6e, 48 MiB on v7x).
    try:
        vmem_cap = pltpu.get_tpu_info().vmem_capacity_bytes
    except Exception:
        vmem_cap = 64 * 1024 * 1024
    vmem_limit = int(min(100 * 1024 * 1024, (3 * vmem_cap) // 4))

    half = (WL + 1) // 2
    cost = pl.CostEstimate(
        flops=Gp * (2 * max(half - 1, 0) * NP ** 3        # power chain (MXU)
                    + (WL - 1) * 2 * NP * NP              # diag products + rowsums
                    + 2 * NP * WL * H + 10 * NP * H),     # projection + LN
        transcendentals=Gp * NP,                          # rsqrt per row
        bytes_accessed=(Gp * NP * NP * 4                  # P (f32)
                        + Gp * NP * 4                     # diag(P)
                        + 2 * Gp * NP * H * 4             # x in + out
                        + (WL + 3) * H * 4),              # w, b, gamma, beta
    )

    out = pl.pallas_call(
        pe_kernel,
        out_shape=jax.ShapeDtypeStruct((Gp, NP, H), x.dtype),
        grid=(Gp // GB,),
        in_specs=[
            pl.BlockSpec((GB, NP, NP), lambda g: (g, 0, 0)),   # P (f32)
            pl.BlockSpec((GB, NP, 1), lambda g: (g, 0, 0)),    # diag(P)
            pl.BlockSpec((GB, NP, H), lambda g: (g, 0, 0)),    # x
            pl.BlockSpec((WL, H), lambda g: (0, 0)),           # Linear W
            pl.BlockSpec((1, H), lambda g: (0, 0)),            # Linear b
            pl.BlockSpec((1, H), lambda g: (0, 0)),            # LN gamma
            pl.BlockSpec((1, H), lambda g: (0, 0)),            # LN beta
        ],
        out_specs=pl.BlockSpec((GB, NP, H), lambda g: (g, 0, 0)),
        compiler_params=pltpu.CompilerParams(
            dimension_semantics=("parallel",),                 # graphs independent
            vmem_limit_bytes=vmem_limit,
        ),
        cost_estimate=cost,
    )(P_pad, diag1, x_pad, w, b, gamma, beta)

    return out[:G, :N, :]


def build_transition_matrix(edge_index, num_nodes):
    """Plain-JAX glue: dense adjacency from edge_index, row-normalized
    (matches PyG AddRandomWalkPE: deg_inv = 1/deg, inf -> 0)."""
    src, dst = edge_index[0], edge_index[1]
    A = jnp.zeros((num_nodes, num_nodes), jnp.float32).at[src, dst].add(1.0)
    deg = jnp.sum(A, axis=1)
    deg_inv = jnp.where(deg > 0, 1.0 / deg, 0.0)
    return A * deg_inv[:, None]


def reference_pe(x, P, w, b, gamma, beta):
    """Pure-JAX f32 reference (PyG AddRandomWalkPE + torch Linear + LayerNorm)."""
    WL = w.shape[0]
    M = P
    diags = []
    for k in range(WL):
        diags.append(jnp.diagonal(M, axis1=-2, axis2=-1))
        if k + 1 < WL:
            M = jnp.einsum('gij,gjk->gik', M, P)
    pe = jnp.stack(diags, axis=-1)                   # (G, N, WL)
    h = pe @ w + b
    mean = h.mean(-1, keepdims=True)
    var = ((h - mean) ** 2).mean(-1, keepdims=True)
    ln = (h - mean) * jax.lax.rsqrt(var + LN_EPS) * gamma + beta
    return x + ln


if __name__ == "__main__":
    G, N, H = 2, 16, HIDDEN

    key = jax.random.PRNGKey(0)
    kx, kw, kb = jax.random.split(key, 3)

    # Node features for G independent graphs.
    x = jax.random.normal(kx, (G, N, H), dtype=jnp.float32)

    # Deterministic graphs: 0) undirected ring; 1) ring + offset-3 chords.
    src = jnp.arange(N, dtype=jnp.int32)
    ring = jnp.stack([jnp.concatenate([src, (src + 1) % N]),
                      jnp.concatenate([(src + 1) % N, src])], axis=0)
    chords = jnp.stack([jnp.concatenate([src, (src + 3) % N]),
                        jnp.concatenate([(src + 3) % N, src])], axis=0)
    P = jnp.stack(
        [build_transition_matrix(ring, N),
         build_transition_matrix(jnp.concatenate([ring, chords], axis=1), N)],
        axis=0,
    )

    # pe_projection Linear + LayerNorm parameters (deterministic init).
    w = jax.random.normal(kw, (WALK_LENGTH, H), dtype=jnp.float32) * 0.1
    b = jax.random.normal(kb, (1, H), dtype=jnp.float32) * 0.01
    gamma = jnp.ones((1, H), dtype=jnp.float32)
    beta = jnp.zeros((1, H), dtype=jnp.float32)

    out = jax.block_until_ready(positional_encoding(x, P, w, b, gamma, beta))

    assert out.shape == (G, N, H) and out.dtype == x.dtype
    assert bool(jnp.all(jnp.isfinite(out)))
    # Loose check vs an f32 reference (kernel uses bf16 MXU operands).
    ref = reference_pe(x, P, w, b, gamma, beta)
    err = float(jnp.max(jnp.abs(out - ref)))
    assert err < 0.1, f"max abs err {err}"
    print("KERNEL_OK")
</pallas_src>

<mosaic_0001>
module attributes {stable_mosaic.version = 11 : i64} {
  func.func @pe_kernel(%arg0: i32, %arg1: memref<2x128x128xf32, #tpu.memory_space<vmem>>, %arg2: memref<2x128x1xf32, #tpu.memory_space<vmem>>, %arg3: memref<2x128x32xf32, #tpu.memory_space<vmem>>, %arg4: memref<8x32xf32, #tpu.memory_space<vmem>>, %arg5: memref<1x32xf32, #tpu.memory_space<vmem>>, %arg6: memref<1x32xf32, #tpu.memory_space<vmem>>, %arg7: memref<1x32xf32, #tpu.memory_space<vmem>>, %arg8: memref<2x128x32xf32, #tpu.memory_space<vmem>>) attributes {dimension_semantics = [#tpu.dimension_semantics<parallel>], iteration_bounds = array<i64: 1>, scalar_prefetch = 0 : i64, scratch_operands = 0 : i64, tpu.core_type = #tpu.core_type<tc>, window_params = [{transform_indices = @transform_0, window_bounds = array<i64: 2, 128, 128>}, {transform_indices = @transform_1, window_bounds = array<i64: 2, 128, 1>}, {transform_indices = @transform_2, window_bounds = array<i64: 2, 128, 32>}, {pipeline_mode = #tpu.pipeline_mode<synchronous>, transform_indices = @transform_3, window_bounds = array<i64: 8, 32>}, {pipeline_mode = #tpu.pipeline_mode<synchronous>, transform_indices = @transform_4, window_bounds = array<i64: 1, 32>}, {pipeline_mode = #tpu.pipeline_mode<synchronous>, transform_indices = @transform_5, window_bounds = array<i64: 1, 32>}, {pipeline_mode = #tpu.pipeline_mode<synchronous>, transform_indices = @transform_6, window_bounds = array<i64: 1, 32>}, {transform_indices = @transform_7, window_bounds = array<i64: 2, 128, 32>}]} {
    %c0 = arith.constant 0 : index
    %c0_0 = arith.constant 0 : index
    %0 = vector.load %arg4[%c0, %c0_0] : memref<8x32xf32, #tpu.memory_space<vmem>>, vector<8x32xf32>
    %c0_1 = arith.constant 0 : index
    %c0_2 = arith.constant 0 : index
    %1 = vector.load %arg5[%c0_1, %c0_2] : memref<1x32xf32, #tpu.memory_space<vmem>>, vector<1x32xf32>
    %c0_3 = arith.constant 0 : index
    %c0_4 = arith.constant 0 : index
    %2 = vector.load %arg6[%c0_3, %c0_4] : memref<1x32xf32, #tpu.memory_space<vmem>>, vector<1x32xf32>
    %c0_5 = arith.constant 0 : index
    %c0_6 = arith.constant 0 : index
    %3 = vector.load %arg7[%c0_5, %c0_6] : memref<1x32xf32, #tpu.memory_space<vmem>>, vector<1x32xf32>
    %c0_7 = arith.constant 0 : index
    %c0_8 = arith.constant 0 : index
    %c0_9 = arith.constant 0 : index
    %4 = vector.load %arg1[%c0_7, %c0_8, %c0_9] : memref<2x128x128xf32, #tpu.memory_space<vmem>>, vector<2x128x128xf32>
    %5 = arith.truncf %4 : vector<2x128x128xf32> to vector<2x128x128xbf16>
    %6 = arith.truncf %4 : vector<2x128x128xf32> to vector<2x128x128xbf16>
    "tpu.trace_start"() <{level = 10 : i32, message = "bij,bjk->bik"}> : () -> ()
    %cst = arith.constant dense<0.000000e+00> : vector<2x128x128xf32>
    %7 = tpu.matmul %6, %5, %cst {dimension_numbers = #tpu.dot_dimension_numbers<[2], [1], [1], [2], [0, 0, 0, 1, 1, 2], [0], [0]>} : vector<2x128x128xbf16>, vector<2x128x128xbf16>, vector<2x128x128xf32> -> vector<2x128x128xf32>
    "tpu.trace_stop"() : () -> ()
    %8 = arith.truncf %7 : vector<2x128x128xf32> to vector<2x128x128xbf16>
    "tpu.trace_start"() <{level = 10 : i32, message = "bij,bjk->bik"}> : () -> ()
    %cst_10 = arith.constant dense<0.000000e+00> : vector<2x128x128xf32>
    %9 = tpu.matmul %8, %5, %cst_10 {dimension_numbers = #tpu.dot_dimension_numbers<[2], [1], [1], [2], [0, 0, 0, 1, 1, 2], [0], [0]>} : vector<2x128x128xbf16>, vector<2x128x128xbf16>, vector<2x128x128xf32> -> vector<2x128x128xf32>
    "tpu.trace_stop"() : () -> ()
    %10 = arith.truncf %9 : vector<2x128x128xf32> to vector<2x128x128xbf16>
    "tpu.trace_start"() <{level = 10 : i32, message = "bij,bjk->bik"}> : () -> ()
    %cst_11 = arith.constant dense<0.000000e+00> : vector<2x128x128xf32>
    %11 = tpu.matmul %10, %5, %cst_11 {dimension_numbers = #tpu.dot_dimension_numbers<[2], [1], [1], [2], [0, 0, 0, 1, 1, 2], [0], [0]>} : vector<2x128x128xbf16>, vector<2x128x128xbf16>, vector<2x128x128xf32> -> vector<2x128x128xf32>
    "tpu.trace_stop"() : () -> ()
    %12 = tpu.transpose %4, [0, 2, 1] : vector<2x128x128xf32> -> vector<2x128x128xf32>
    %13 = tpu.transpose %7, [0, 2, 1] : vector<2x128x128xf32> -> vector<2x128x128xf32>
    %14 = tpu.transpose %9, [0, 2, 1] : vector<2x128x128xf32> -> vector<2x128x128xf32>
    %15 = tpu.transpose %11, [0, 2, 1] : vector<2x128x128xf32> -> vector<2x128x128xf32>
    %c0_12 = arith.constant 0 : index
    %c0_13 = arith.constant 0 : index
    %c0_14 = arith.constant 0 : index
    %16 = vector.load %arg2[%c0_12, %c0_13, %c0_14] : memref<2x128x1xf32, #tpu.memory_space<vmem>>, vector<2x128x1xf32>
    %17 = vector.extract_strided_slice %0 {offsets = [0, 0], sizes = [1, 32], strides = [1, 1]} : vector<8x32xf32> to vector<1x32xf32>
    %18 = vector.shape_cast %17 : vector<1x32xf32> to vector<1x1x32xf32>
    %19 = vector.broadcast %16 : vector<2x128x1xf32> to vector<2x128x32xf32>
    %20 = vector.broadcast %18 : vector<1x1x32xf32> to vector<2x128x32xf32>
    %21 = arith.mulf %19, %20 : vector<2x128x32xf32>
    %22 = vector.shape_cast %1 : vector<1x32xf32> to vector<1x1x32xf32>
    %23 = vector.broadcast %22 : vector<1x1x32xf32> to vector<2x128x32xf32>
    %24 = arith.addf %21, %23 : vector<2x128x32xf32>
    %25 = arith.mulf %4, %12 : vector<2x128x128xf32>
    %cst_15 = arith.constant dense<0.000000e+00> : vector<2x128xf32>
    %26 = vector.multi_reduction <add>, %25, %cst_15 [2] : vector<2x128x128xf32> to vector<2x128xf32>
    %27 = vector.shape_cast %26 : vector<2x128xf32> to vector<2x128x1xf32>
    %28 = vector.extract_strided_slice %0 {offsets = [1, 0], sizes = [1, 32], strides = [1, 1]} : vector<8x32xf32> to vector<1x32xf32>
    %29 = vector.shape_cast %28 : vector<1x32xf32> to vector<1x1x32xf32>
    %30 = vector.broadcast %27 : vector<2x128x1xf32> to vector<2x128x32xf32>
    %31 = vector.broadcast %29 : vector<1x1x32xf32> to vector<2x128x32xf32>
    %32 = arith.mulf %30, %31 : vector<2x128x32xf32>
    %33 = arith.addf %24, %32 : vector<2x128x32xf32>
    %34 = arith.mulf %7, %12 : vector<2x128x128xf32>
    %cst_16 = arith.constant dense<0.000000e+00> : vector<2x128xf32>
    %35 = vector.multi_reduction <add>, %34, %cst_16 [2] : vector<2x128x128xf32> to vector<2x128xf32>
    %36 = vector.shape_cast %35 : vector<2x128xf32> to vector<2x128x1xf32>
    %37 = vector.extract_strided_slice %0 {offsets = [2, 0], sizes = [1, 32], strides = [1, 1]} : vector<8x32xf32> to vector<1x32xf32>
    %38 = vector.shape_cast %37 : vector<1x32xf32> to vector<1x1x32xf32>
    %39 = vector.broadcast %36 : vector<2x128x1xf32> to vector<2x128x32xf32>
    %40 = vector.broadcast %38 : vector<1x1x32xf32> to vector<2x128x32xf32>
    %41 = arith.mulf %39, %40 : vector<2x128x32xf32>
    %42 = arith.addf %33, %41 : vector<2x128x32xf32>
    %43 = arith.mulf %7, %13 : vector<2x128x128xf32>
    %cst_17 = arith.constant dense<0.000000e+00> : vector<2x128xf32>
    %44 = vector.multi_reduction <add>, %43, %cst_17 [2] : vector<2x128x128xf32> to vector<2x128xf32>
    %45 = vector.shape_cast %44 : vector<2x128xf32> to vector<2x128x1xf32>
    %46 = vector.extract_strided_slice %0 {offsets = [3, 0], sizes = [1, 32], strides = [1, 1]} : vector<8x32xf32> to vector<1x32xf32>
    %47 = vector.shape_cast %46 : vector<1x32xf32> to vector<1x1x32xf32>
    %48 = vector.broadcast %45 : vector<2x128x1xf32> to vector<2x128x32xf32>
    %49 = vector.broadcast %47 : vector<1x1x32xf32> to vector<2x128x32xf32>
    %50 = arith.mulf %48, %49 : vector<2x128x32xf32>
    %51 = arith.addf %42, %50 : vector<2x128x32xf32>
    %52 = arith.mulf %9, %13 : vector<2x128x128xf32>
    %cst_18 = arith.constant dense<0.000000e+00> : vector<2x128xf32>
    %53 = vector.multi_reduction <add>, %52, %cst_18 [2] : vector<2x128x128xf32> to vector<2x128xf32>
    %54 = vector.shape_cast %53 : vector<2x128xf32> to vector<2x128x1xf32>
    %55 = vector.extract_strided_slice %0 {offsets = [4, 0], sizes = [1, 32], strides = [1, 1]} : vector<8x32xf32> to vector<1x32xf32>
    %56 = vector.shape_cast %55 : vector<1x32xf32> to vector<1x1x32xf32>
    %57 = vector.broadcast %54 : vector<2x128x1xf32> to vector<2x128x32xf32>
    %58 = vector.broadcast %56 : vector<1x1x32xf32> to vector<2x128x32xf32>
    %59 = arith.mulf %57, %58 : vector<2x128x32xf32>
    %60 = arith.addf %51, %59 : vector<2x128x32xf32>
    %61 = arith.mulf %9, %14 : vector<2x128x128xf32>
    %cst_19 = arith.constant dense<0.000000e+00> : vector<2x128xf32>
    %62 = vector.multi_reduction <add>, %61, %cst_19 [2] : vector<2x128x128xf32> to vector<2x128xf32>
    %63 = vector.shape_cast %62 : vector<2x128xf32> to vector<2x128x1xf32>
    %64 = vector.extract_strided_slice %0 {offsets = [5, 0], sizes = [1, 32], strides = [1, 1]} : vector<8x32xf32> to vector<1x32xf32>
    %65 = vector.shape_cast %64 : vector<1x32xf32> to vector<1x1x32xf32>
    %66 = vector.broadcast %63 : vector<2x128x1xf32> to vector<2x128x32xf32>
    %67 = vector.broadcast %65 : vector<1x1x32xf32> to vector<2x128x32xf32>
    %68 = arith.mulf %66, %67 : vector<2x128x32xf32>
    %69 = arith.addf %60, %68 : vector<2x128x32xf32>
    %70 = arith.mulf %11, %14 : vector<2x128x128xf32>
    %cst_20 = arith.constant dense<0.000000e+00> : vector<2x128xf32>
    %71 = vector.multi_reduction <add>, %70, %cst_20 [2] : vector<2x128x128xf32> to vector<2x128xf32>
    %72 = vector.shape_cast %71 : vector<2x128xf32> to vector<2x128x1xf32>
    %73 = vector.extract_strided_slice %0 {offsets = [6, 0], sizes = [1, 32], strides = [1, 1]} : vector<8x32xf32> to vector<1x32xf32>
    %74 = vector.shape_cast %73 : vector<1x32xf32> to vector<1x1x32xf32>
    %75 = vector.broadcast %72 : vector<2x128x1xf32> to vector<2x128x32xf32>
    %76 = vector.broadcast %74 : vector<1x1x32xf32> to vector<2x128x32xf32>
    %77 = arith.mulf %75, %76 : vector<2x128x32xf32>
    %78 = arith.addf %69, %77 : vector<2x128x32xf32>
    %79 = arith.mulf %11, %15 : vector<2x128x128xf32>
    %cst_21 = arith.constant dense<0.000000e+00> : vector<2x128xf32>
    %80 = vector.multi_reduction <add>, %79, %cst_21 [2] : vector<2x128x128xf32> to vector<2x128xf32>
    %81 = vector.shape_cast %80 : vector<2x128xf32> to vector<2x128x1xf32>
    %82 = vector.extract_strided_slice %0 {offsets = [7, 0], sizes = [1, 32], strides = [1, 1]} : vector<8x32xf32> to vector<1x32xf32>
    %83 = vector.shape_cast %82 : vector<1x32xf32> to vector<1x1x32xf32>
    %84 = vector.broadcast %81 : vector<2x128x1xf32> to vector<2x128x32xf32>
    %85 = vector.broadcast %83 : vector<1x1x32xf32> to vector<2x128x32xf32>
    %86 = arith.mulf %84, %85 : vector<2x128x32xf32>
    %87 = arith.addf %78, %86 : vector<2x128x32xf32>
    %cst_22 = arith.constant dense<0.000000e+00> : vector<2x128xf32>
    %88 = vector.multi_reduction <add>, %87, %cst_22 [2] : vector<2x128x32xf32> to vector<2x128xf32>
    %89 = vector.shape_cast %88 : vector<2x128xf32> to vector<2x128x1xf32>
    %cst_23 = arith.constant 3.200000e+01 : f32
    %90 = vector.broadcast %cst_23 : f32 to vector<2x128x1xf32>
    %91 = arith.divf %89, %90 : vector<2x128x1xf32>
    %92 = vector.broadcast %91 : vector<2x128x1xf32> to vector<2x128x32xf32>
    %93 = arith.subf %87, %92 : vector<2x128x32xf32>
    %94 = arith.mulf %93, %93 : vector<2x128x32xf32>
    %cst_24 = arith.constant dense<0.000000e+00> : vector<2x128xf32>
    %95 = vector.multi_reduction <add>, %94, %cst_24 [2] : vector<2x128x32xf32> to vector<2x128xf32>
    %96 = vector.shape_cast %95 : vector<2x128xf32> to vector<2x128x1xf32>
    %cst_25 = arith.constant 3.200000e+01 : f32
    %97 = vector.broadcast %cst_25 : f32 to vector<2x128x1xf32>
    %98 = arith.divf %96, %97 : vector<2x128x1xf32>
    %99 = vector.broadcast %91 : vector<2x128x1xf32> to vector<2x128x32xf32>
    %100 = arith.subf %87, %99 : vector<2x128x32xf32>
    %cst_26 = arith.constant 9.99999974E-6 : f32
    %101 = vector.broadcast %cst_26 : f32 to vector<2x128x1xf32>
    %102 = arith.addf %98, %101 : vector<2x128x1xf32>
    %103 = math.rsqrt %102 : vector<2x128x1xf32>
    %104 = vector.broadcast %103 : vector<2x128x1xf32> to vector<2x128x32xf32>
    %105 = arith.mulf %100, %104 : vector<2x128x32xf32>
    %106 = vector.shape_cast %2 : vector<1x32xf32> to vector<1x1x32xf32>
    %107 = vector.broadcast %106 : vector<1x1x32xf32> to vector<2x128x32xf32>
    %108 = arith.mulf %105, %107 : vector<2x128x32xf32>
    %109 = vector.shape_cast %3 : vector<1x32xf32> to vector<1x1x32xf32>
    %110 = vector.broadcast %109 : vector<1x1x32xf32> to vector<2x128x32xf32>
    %111 = arith.addf %108, %110 : vector<2x128x32xf32>
    %c0_27 = arith.constant 0 : index
    %c0_28 = arith.constant 0 : index
    %c0_29 = arith.constant 0 : index
    %112 = vector.load %arg3[%c0_27, %c0_28, %c0_29] : memref<2x128x32xf32, #tpu.memory_space<vmem>>, vector<2x128x32xf32>
    %113 = arith.addf %112, %111 : vector<2x128x32xf32>
    %c0_30 = arith.constant 0 : index
    %c0_31 = arith.constant 0 : index
    %c0_32 = arith.constant 0 : index
    %114 = vector.load %arg8[%c0_30, %c0_31, %c0_32] : memref<2x128x32xf32, #tpu.memory_space<vmem>>, vector<2x128x32xf32>
    tpu.vector_store %arg8[%c0_30, %c0_31, %c0_32], %113 {strides = array<i32>} : memref<2x128x32xf32, #tpu.memory_space<vmem>>, vector<2x128x32xf32>,
    return
  }
  func.func @transform_0(%arg0: i32) -> (i32, i32, i32) {
    %c0_i32 = arith.constant 0 : i32
    %c0_i32_0 = arith.constant 0 : i32
    %c0_i32_1 = arith.constant 0 : i32
    return %arg0, %c0_i32, %c0_i32_0 : i32, i32, i32
  }
  func.func @transform_1(%arg0: i32) -> (i32, i32, i32) {
    %c0_i32 = arith.constant 0 : i32
    %c0_i32_0 = arith.constant 0 : i32
    %c0_i32_1 = arith.constant 0 : i32
    return %arg0, %c0_i32, %c0_i32_0 : i32, i32, i32
  }
  func.func @transform_2(%arg0: i32) -> (i32, i32, i32) {
    %c0_i32 = arith.constant 0 : i32
    %c0_i32_0 = arith.constant 0 : i32
    %c0_i32_1 = arith.constant 0 : i32
    return %arg0, %c0_i32, %c0_i32_0 : i32, i32, i32
  }
  func.func @transform_3(%arg0: i32) -> (i32, i32) {
    %c0_i32 = arith.constant 0 : i32
    %c0_i32_0 = arith.constant 0 : i32
    %c0_i32_1 = arith.constant 0 : i32
    return %c0_i32, %c0_i32_0 : i32, i32
  }
  func.func @transform_4(%arg0: i32) -> (i32, i32) {
    %c0_i32 = arith.constant 0 : i32
    %c0_i32_0 = arith.constant 0 : i32
    %c0_i32_1 = arith.constant 0 : i32
    return %c0_i32, %c0_i32_0 : i32, i32
  }
  func.func @transform_5(%arg0: i32) -> (i32, i32) {
    %c0_i32 = arith.constant 0 : i32
    %c0_i32_0 = arith.constant 0 : i32
    %c0_i32_1 = arith.constant 0 : i32
    return %c0_i32, %c0_i32_0 : i32, i32
  }
  func.func @transform_6(%arg0: i32) -> (i32, i32) {
    %c0_i32 = arith.constant 0 : i32
    %c0_i32_0 = arith.constant 0 : i32
    %c0_i32_1 = arith.constant 0 : i32
    return %c0_i32, %c0_i32_0 : i32, i32
  }
  func.func @transform_7(%arg0: i32) -> (i32, i32, i32) {
    %c0_i32 = arith.constant 0 : i32
    %c0_i32_0 = arith.constant 0 : i32
    %c0_i32_1 = arith.constant 0 : i32
    return %arg0, %c0_i32, %c0_i32_0 : i32, i32, i32
  }
}

</mosaic_0001>

<bundles_post_ra>
// kernel: tpu_custom_call.1
= control target key start
LH: loop header
LB: loop body
LE: loop exit
PB: predicated region body
PF: predicated region fallthrough
CT: control target
= control target key end

     0   :  { %v3317_v49 = vmov 0   ;;  %vm2363_vm0 = vcmask 261120   ;;  %s6722_s0 = inlined_call_operand.vmem [shape: f32[2,128,128], index: 0, kind: input, shape index: {}]   ;;  %s6723_s1 = inlined_call_operand.vmem [shape: f32[2,128,1], index: 1, kind: input, shape index: {}]   ;;  %s6724_s3 = inlined_call_operand.vmem [shape: f32[8,32], index: 3, kind: input, shape index: {}]   ;;  %s6725_s4 = inlined_call_operand.vmem [shape: f32[1,32], index: 4, kind: input, shape index: {}]   ;;  %s6726_s5 = inlined_call_operand.vmem [shape: f32[1,32], index: 5, kind: input, shape index: {}]   ;;  %s6727_s6 = inlined_call_operand.vmem [shape: f32[1,32], index: 6, kind: input, shape index: {}]   ;;  %s6728_s2 = inlined_call_operand.vmem [shape: f32[2,128,32], index: 2, kind: input, shape index: {}]   ;;  %s6729_s7 = inlined_call_operand.vmem [shape: f32[2,128,32], index: 7, kind: output, shape index: {}]  }
   0x1   :  { %v3361_v0 = vld [vmem:[%s6722_s0 + $0x80] sm:$0xff]  ;;  %v3366_v1 = vld [vmem:[%s6722_s0 + $0x88] sm:$0xff]  ;;  %v3387_v5 = vld [vmem:[%s6722_s0 + $0x10] sm:$0xff] }
   0x2   :  { %v3371_v2 = vld [vmem:[%s6722_s0] sm:$0xff]  ;;  %725 = vxpose.xlu1.b32.start [1/16] %v3361_v0, 128  ;;  %v3376_v3 = vpack.c.bf16 %v3366_v1, %v3361_v0  ;;  %v3381_v4 = vld [vmem:[%s6722_s0 + $0x8] sm:$0xff]  ;;  %v3392_v6 = vld [vmem:[%s6722_s0 + $0x18] sm:$0xff] }
   0x3   :  { %693 = vxpose.xlu0.b32.start [1/16] %v3371_v2, 128  ;;  %v3396_v7 = vpack.c.bf16 %v3381_v4, %v3371_v2  ;;  %v3400_v8 = vpack.c.bf16 %v3392_v6, %v3387_v5  ;;  %v3405_v9 = vld [vmem:[%s6722_s0 + $0x90] sm:$0xff]  ;;  %v3410_v10 = vld [vmem:[%s6722_s0 + $0x98] sm:$0xff]  ;;  %v3420_v12 = vld [vmem:[%s6722_s0 + $0x20] sm:$0xff] }
   0x4   :  { %3088 = vmatprep.subr.bf16.mxu1 %v3376_v3  ;;  %v3415_v11 = vpack.c.bf16 %v3410_v10, %v3405_v9  ;;  %v3425_v13 = vld [vmem:[%s6722_s0 + $0x28] sm:$0xff]  ;;  %3104 = vmatprep.mubr.bf16.mxu1 %v3376_v3  ;;  %v3433_v14 = vld [vmem:[%s6722_s0 + $0xa0] sm:$0xff]  ;;  %v3456_v18 = vld [vmem:[%s6722_s0 + $0x30] sm:$0xff] }
   0x5   :  { %3056 = vmatprep.subr.bf16.mxu0 %v3396_v7  ;;  %3089 = vmatpush3.bf16.msra.mxu1 %v3376_v3  ;;  %v3438_v15 = vld [vmem:[%s6722_s0 + $0xa8] sm:$0xff]  ;;  %v3446_v16 = vpack.c.bf16 %v3425_v13, %v3420_v12  ;;  %v3461_v19 = vld [vmem:[%s6722_s0 + $0x38] sm:$0xff]  ;;  %v3468_v20 = vld [vmem:[%s6722_s0 + $0xb0] sm:$0xff] }
   0x6   :  { %3057 = vmatpush3.bf16.msra.mxu0 %v3396_v7  ;;  %726 = vxpose.xlu1.b32.cont [2/16] %v3366_v1, 128  ;;  %v3451_v17 = vpack.c.bf16 %v3438_v15, %v3433_v14  ;;  %v3473_v21 = vld [vmem:[%s6722_s0 + $0xb8] sm:$0xff]  ;;  %v3481_v22 = vpack.c.bf16 %v3461_v19, %v3456_v18  ;;  %v3491_v24 = vld [vmem:[%s6722_s0 + $0x40] sm:$0xff]  ;;  %v3496_v25 = vld [vmem:[%s6722_s0 + $0x48] sm:$0xff] }
   0x7   :  { %694 = vxpose.xlu0.b32.cont [2/16] %v3381_v4, 128  ;;  %3058 = vmatprep.subr.bf16.mxu0 %v3400_v8  ;;  %v3486_v23 = vpack.c.bf16 %v3473_v21, %v3468_v20  ;;  %v3502_v26 = vld [vmem:[%s6722_s0 + $0xc0] sm:$0xff]  ;;  %v3507_v27 = vld [vmem:[%s6722_s0 + $0xc8] sm:$0xff]  ;;  %v3515_v28 = vpack.c.bf16 %v3496_v25, %v3491_v24  ;;  %v3525_v30 = vld [vmem:[%s6722_s0 + $0x50] sm:$0xff] }
   0x8   :  { %3090 = vmatprep.subr.bf16.mxu1 %v3415_v11  ;;  %3072 = vmatprep.mubr.bf16.mxu0 %v3396_v7  ;;  %v3520_v29 = vpack.c.bf16 %v3507_v27, %v3502_v26  ;;  %v3530_v31 = vld [vmem:[%s6722_s0 + $0x58] sm:$0xff]  ;;  %v3536_v32 = vld [vmem:[%s6722_s0 + $0xd0] sm:$0xff]  ;;  %v3559_v36 = vld [vmem:[%s6722_s0 + $0x60] sm:$0xff] }
   0x9   :  { %3091 = vmatpush3.bf16.msra.mxu1 %v3415_v11  ;;  %6838 = vst [vmem:[#allocation2_spill] sm:$0xff] %v3515_v28  ;;  %v3541_v33 = vld [vmem:[%s6722_s0 + $0xd8] sm:$0xff]  ;;  %v3549_v34 = vpack.c.bf16 %v3530_v31, %v3525_v30  ;;  %v3564_v37 = vld [vmem:[%s6722_s0 + $0x68] sm:$0xff]  ;;  %v3570_v38 = vld [vmem:[%s6722_s0 + $0xe0] sm:$0xff] }
   0xa   :  { %3059 = vmatpush3.bf16.msra.mxu0 %v3400_v8  ;;  %727 = vxpose.xlu1.b32.cont [3/16] %v3405_v9, 128  ;;  %6839 = vst [vmem:[#allocation3_spill] sm:$0xff] %v3520_v29  ;;  %v3554_v35 = vpack.c.bf16 %v3541_v33, %v3536_v32  ;;  %v3575_v39 = vld [vmem:[%s6722_s0 + $0xe8] sm:$0xff]  ;;  %v3583_v40 = vpack.c.bf16 %v3564_v37, %v3559_v36  ;;  %v3593_v42 = vld [vmem:[%s6722_s0 + $0x70] sm:$0xff]  ;;  %v3598_v43 = vld [vmem:[%s6722_s0 + $0x78] sm:$0xff] }
   0xb   :  { %695 = vxpose.xlu0.b32.cont [3/16] %v3387_v5, 128  ;;  %3060 = vmatprep.subr.bf16.mxu0 %v3446_v16  ;;  %6840 = vst [vmem:[#allocation4_spill] sm:$0xff] %v3549_v34  ;;  %6842 = vst [vmem:[#allocation6_spill] sm:$0xff] %v3575_v39  ;;  %v3588_v41 = vpack.c.bf16 %v3575_v39, %v3570_v38  ;;  %v3604_v44 = vld [vmem:[%s6722_s0 + $0xf0] sm:$0xff]  ;;  %v3609_v45 = vld [vmem:[%s6722_s0 + $0xf8] sm:$0xff]  ;;  %v3617_v46 = vpack.c.bf16 %v3598_v43, %v3593_v42 }
   0xc   :  { %3092 = vmatprep.subr.bf16.mxu1 %v3451_v17  ;;  %6841 = vst [vmem:[#allocation5_spill] sm:$0xff] %v3554_v35  ;;  %6843 = vst [vmem:[#allocation7_spill] sm:$0xff] %v3583_v40  ;;  %v3622_v47 = vpack.c.bf16 %v3609_v45, %v3604_v44  ;;  %v950_v48 = vld [vmem:[%s6723_s1 + $0x8] sm:$0xff]  ;;  %v951_v50 = vld [vmem:[%s6723_s1 + $0x10] sm:$0xff] }
   0xd   :  { %3093 = vmatpush3.bf16.msra.mxu1 %v3451_v17  ;;  %6844 = vst [vmem:[#allocation8_spill] sm:$0xff] %v3588_v41  ;;  %6845 = vst [vmem:[#allocation9_spill] sm:$0xff] %v3604_v44  ;;  %v952_v51 = vld [vmem:[%s6723_s1 + $0x18] sm:$0xff]  ;;  %v949_v52 = vld [vmem:[%s6723_s1] sm:$0xff] }
   0xe   :  { %3061 = vmatpush3.bf16.msra.mxu0 %v3446_v16  ;;  %728 = vxpose.xlu1.b32.cont [4/16] %v3410_v10, 128  ;;  %6846 = vst [vmem:[#allocation10_spill] sm:$0xff] %v3609_v45  ;;  %6847 = vst [vmem:[#allocation11_spill] sm:$0xff] %v3617_v46  ;;  %v953_v53 = vld [vmem:[%s6723_s1 + $0x20] sm:$0xff]  ;;  %v954_v54 = vld [vmem:[%s6723_s1 + $0x28] sm:$0xff] }
   0xf   :  { %696 = vxpose.xlu0.b32.cont [4/16] %v3392_v6, 128  ;;  %3062 = vmatprep.subr.bf16.mxu0 %v3481_v22  ;;  %6848 = vst [vmem:[#allocation12_spill] sm:$0xff] %v3622_v47  ;;  %v955_v55 = vld [vmem:[%s6723_s1 + $0x30] sm:$0xff]  ;;  %v956_v56 = vld [vmem:[%s6723_s1 + $0x38] sm:$0xff]  ;;  %v957_v57 = vld [vmem:[%s6723_s1 + $0x40] sm:$0xff] }
  0x10   :  { %3094 = vmatprep.subr.bf16.mxu1 %v3486_v23  ;;  %v958_v58 = vld [vmem:[%s6723_s1 + $0x48] sm:$0xff]  ;;  %v959_v59 = vld [vmem:[%s6723_s1 + $0x50] sm:$0xff]  ;;  %v960_v60 = vld [vmem:[%s6723_s1 + $0x58] sm:$0xff] }
  0x11   :  { %3095 = vmatpush3.bf16.msra.mxu1 %v3486_v23  ;;  %v961_v61 = vld [vmem:[%s6723_s1 + $0x60] sm:$0xff]  ;;  %v962_v62 = vld [vmem:[%s6723_s1 + $0x68] sm:$0xff]  ;;  %v963_v63 = vld [vmem:[%s6723_s1 + $0x70] sm:$0xff] }
  0x12   :  { %3063 = vmatpush3.bf16.msra.mxu0 %v3481_v22  ;;  %729 = vxpose.xlu1.b32.cont [5/16] %v3433_v14, 128 }
  0x13   :  { %697 = vxpose.xlu0.b32.cont [5/16] %v3420_v12, 128  ;;  %3064 = vmatprep.subr.bf16.mxu0 %v3515_v28 }
  0x14   :  { %3096 = vmatprep.subr.bf16.mxu1 %v3520_v29 }
  0x15   :  { %3097 = vmatpush3.bf16.msra.mxu1 %v3520_v29 }
  0x16   :  { %3065 = vmatpush3.bf16.msra.mxu0 %v3515_v28  ;;  %730 = vxpose.xlu1.b32.cont [6/16] %v3438_v15, 128 }
  0x17   :  { %698 = vxpose.xlu0.b32.cont [6/16] %v3425_v13, 128  ;;  %3066 = vmatprep.subr.bf16.mxu0 %v3549_v34 }
  0x18   :  { %3098 = vmatprep.subr.bf16.mxu1 %v3554_v35 }
  0x19   :  { %3099 = vmatpush3.bf16.msra.mxu1 %v3554_v35 }
  0x1a   :  { %3067 = vmatpush3.bf16.msra.mxu0 %v3549_v34  ;;  %731 = vxpose.xlu1.b32.cont [7/16] %v3468_v20, 128 }
  0x1b   :  { %699 = vxpose.xlu0.b32.cont [7/16] %v3456_v18, 128  ;;  %3068 = vmatprep.subr.bf16.mxu0 %v3583_v40 }
  0x1c   :  { %3100 = vmatprep.subr.bf16.mxu1 %v3588_v41 }
  0x1d   :  { %3101 = vmatpush3.bf16.msra.mxu1 %v3588_v41 }
  0x1e   :  { %3069 = vmatpush3.bf16.msra.mxu0 %v3583_v40  ;;  %732 = vxpose.xlu1.b32.cont [8/16] %v3473_v21, 128 }
  0x1f   :  { %700 = vxpose.xlu0.b32.cont [8/16] %v3461_v19, 128  ;;  %3070 = vmatprep.subr.bf16.mxu0 %v3617_v46 }
  0x20   :  { %3102 = vmatprep.subr.bf16.mxu1 %v3622_v47 }
  0x21   :  { %3103 = vmatpush3.bf16.msra.mxu1 %v3622_v47 }
  0x22   :  { %3071 = vmatpush3.bf16.msra.mxu0 %v3617_v46  ;;  %733 = vxpose.xlu1.b32.cont [9/16] %v3502_v26, 128 }
  0x23   :  { %701 = vxpose.xlu0.b32.cont [9/16] %v3491_v24, 128  ;;  %3120 = vmatprep.subr.bf16.mxu0 %v3396_v7 }
  0x24   :  { %3105 = vmatmul.mubr.bf16.vlgmr.msra.gmra.mrb[0].mxu1 %v3415_v11  ;;  %3152 = vmatprep.subr.bf16.mxu1 %v3376_v3 }
  0x25   :  { %3073 = vmatmul.mubr.bf16.vlgmr.msra.gmra.mrb[0].mxu0 %v3400_v8  ;;  %3108 = vmatprep.mubr.bf16.mxu1 %v3451_v17 }
  0x26   :  { %734 = vxpose.xlu1.b32.cont [10/16] %v3507_v27, 128  ;;  %3076 = vmatprep.mubr.bf16.mxu0 %v3446_v16 }
  0x27   :  { %702 = vxpose.xlu0.b32.cont [10/16] %v3496_v25, 128  ;;  %3153 = vmatpush3.bf16.msra.mxu1 %v3376_v3 }
  0x28   :  { %3121 = vmatpush3.bf16.msra.mxu0 %v3396_v7  ;;  %3154 = vmatprep.subr.bf16.mxu1 %v3415_v11 }
  0x29   :  { %3122 = vmatprep.subr.bf16.mxu0 %v3400_v8 }
  0x2a   :  { %735 = vxpose.xlu1.b32.cont [11/16] %v3536_v32, 128 }
  0x2b   :  { %703 = vxpose.xlu0.b32.cont [11/16] %v3525_v30, 128  ;;  %3155 = vmatpush3.bf16.msra.mxu1 %v3415_v11 }
  0x2c   :  { %3109 = vmatmul.mubr.bf16.gmra.mrb[4].mxu1 %v3486_v23  ;;  %3123 = vmatpush3.bf16.msra.mxu0 %v3400_v8 }
  0x2d   :  { %3077 = vmatmul.mubr.bf16.gmra.mrb[4].mxu0 %v3481_v22  ;;  %3112 = vmatprep.mubr.bf16.mxu1 %v3520_v29 }
  0x2e   :  { %736 = vxpose.xlu1.b32.cont [12/16] %v3541_v33, 128  ;;  %3080 = vmatprep.mubr.bf16.mxu0 %v3515_v28 }
  0x2f   :  { %704 = vxpose.xlu0.b32.cont [12/16] %v3530_v31, 128  ;;  %3124 = vmatprep.subr.bf16.mxu0 %v3446_v16 }
  0x30   :  { %3156 = vmatprep.subr.bf16.mxu1 %v3451_v17  ;;  %3125 = vmatpush3.bf16.msra.mxu0 %v3446_v16 }
  0x31   :  { %3157 = vmatpush3.bf16.msra.mxu1 %v3451_v17  ;;  %3126 = vmatprep.subr.bf16.mxu0 %v3481_v22 }
  0x32   :  { %737 = vxpose.xlu1.b32.cont [13/16] %v3570_v38, 128  ;;  %3158 = vmatprep.subr.bf16.mxu1 %v3486_v23 }
  0x33   :  { %705 = vxpose.xlu0.b32.cont [13/16] %v3559_v36, 128 }
  0x34   :  { %3113 = vmatmul.mubr.bf16.gmra.mrb[8].mxu1 %v3554_v35  ;;  %3127 = vmatpush3.bf16.msra.mxu0 %v3481_v22 }
  0x35   :  { %3081 = vmatmul.mubr.bf16.gmra.mrb[8].mxu0 %v3549_v34  ;;  %3116 = vmatprep.mubr.bf16.mxu1 %v3588_v41 }
  0x36   :  { %738 = vxpose.xlu1.b32.cont [14/16] %v3575_v39, 128  ;;  %3084 = vmatprep.mubr.bf16.mxu0 %v3583_v40 }
  0x37   :  { %706 = vxpose.xlu0.b32.cont [14/16] %v3564_v37, 128  ;;  %3159 = vmatpush3.bf16.msra.mxu1 %v3486_v23 }
  0x38   :  { %3128 = vmatprep.subr.bf16.mxu0 %v3515_v28  ;;  %3160 = vmatprep.subr.bf16.mxu1 %v3520_v29 }
  0x39   :  { %3129 = vmatpush3.bf16.msra.mxu0 %v3515_v28 }
  0x3a   :  { %739 = vxpose.xlu1.b32.cont [15/16] %v3604_v44, 128  ;;  %3130 = vmatprep.subr.bf16.mxu0 %v3549_v34 }
  0x3b   :  { %707 = vxpose.xlu0.b32.cont [15/16] %v3593_v42, 128  ;;  %3161 = vmatpush3.bf16.msra.mxu1 %v3520_v29 }
  0x3c   :  { %3117 = vmatmul.mubr.bf16.gmra.mrb[12].mxu1 %v3622_v47  ;;  %3162 = vmatprep.subr.bf16.mxu1 %v3554_v35 }
  0x3d   :  { %3085 = vmatmul.mubr.bf16.gmra.mrb[12].mxu0 %v3617_v46 }
  0x3e   :  { %740 = vxpose.xlu1.b32.end [16/16] %v3609_v45, 128  ;;  %3131 = vmatpush3.bf16.msra.mxu0 %v3549_v34 }
  0x3f   :  { %708 = vxpose.xlu0.b32.end [16/16] %v3598_v43, 128  ;;  %3163 = vmatpush3.bf16.msra.mxu1 %v3554_v35 }
  0x40   :  { %3132 = vmatprep.subr.bf16.mxu0 %v3583_v40  ;;  %3164 = vmatprep.subr.bf16.mxu1 %v3588_v41 }
  0x42   :  { %3133 = vmatpush3.bf16.msra.mxu0 %v3583_v40 }
  0x43   :  { %3165 = vmatpush3.bf16.msra.mxu1 %v3588_v41  ;;  %3134 = vmatprep.subr.bf16.mxu0 %v3617_v46 }
  0x44   :  { %3166 = vmatprep.subr.bf16.mxu1 %v3622_v47 }
  0x46   :  { %3135 = vmatpush3.bf16.msra.mxu0 %v3617_v46 }
  0x47   :  { %3167 = vmatpush3.bf16.msra.mxu1 %v3622_v47  ;;  %3184 = vmatprep.subr.bf16.mxu0 %v3396_v7 }
  0x48   :  { %3216 = vmatprep.subr.bf16.mxu1 %v3376_v3 }
  0x5c   :  { %3250 = vset.pattern.permute.xlu1 %v3317_v49 }
  0x5d   :  { %988 = vperm.xlu1 %3250, %v950_v48   ;;  %v964_v48 = vld [vmem:[%s6723_s1 + $0x78] sm:$0xff] }
  0x61   :  { %993 = vperm.xlu1 %3250, %v951_v50   ;;  %v966_v50 = vld [vmem:[%s6723_s1 + $0x88] sm:$0xff] }
  0x65   :  { %998 = vperm.xlu1 %3250, %v952_v51   ;;  %v967_v51 = vld [vmem:[%s6723_s1 + $0x90] sm:$0xff] }
  0x68   :  { %3249 = vset.pattern.permute.xlu0 %v3317_v49  ;;  %v965_v49 = vld [vmem:[%s6723_s1 + $0x80] sm:$0xff] }
  0x69   :  { %983 = vperm.xlu0 %3249, %v949_v52   ;;  %1003 = vperm.xlu1 %3250, %v953_v53   ;;  %v968_v53 = vld [vmem:[%s6723_s1 + $0x98] sm:$0xff] }
  0x6d   :  { %1008 = vperm.xlu0 %3249, %v954_v54   ;;  %1013 = vperm.xlu1 %3250, %v955_v55   ;;  %v969_v54 = vld [vmem:[%s6723_s1 + $0xa0] sm:$0xff] }
  0x71   :  { %1018 = vperm.xlu0 %3249, %v956_v56   ;;  %1023 = vperm.xlu1 %3250, %v957_v57   ;;  %v970_v56 = vld [vmem:[%s6723_s1 + $0xa8] sm:$0xff]  ;;  %v971_v57 = vld [vmem:[%s6723_s1 + $0xb0] sm:$0xff] }
  0x75   :  { %1028 = vperm.xlu0 %3249, %v958_v58   ;;  %1033 = vperm.xlu1 %3250, %v959_v59  }
  0x79   :  { %1038 = vperm.xlu0 %3249, %v960_v60   ;;  %1043 = vperm.xlu1 %3250, %v961_v61   ;;  %v972_v60 = vld [vmem:[%s6723_s1 + $0xb8] sm:$0xff]  ;;  %v973_v61 = vld [vmem:[%s6723_s1 + $0xc0] sm:$0xff] }
  0x7d   :  { %1048 = vperm.xlu0 %3249, %v962_v62   ;;  %1053 = vperm.xlu1 %3250, %v963_v63   ;;  %v974_v63 = vld [vmem:[%s6723_s1 + $0xc8] sm:$0xff] }
  0x81   :  { %1058 = vperm.xlu0 %3249, %v964_v48   ;;  %1063 = vperm.xlu1 %3250, %v965_v49   ;;  %v975_v48 = vld [vmem:[%s6723_s1 + $0xd0] sm:$0xff] }
  0x82   :  { %v3771_v59 = vpop.trf.xlu1 }
  0x83   :  { %v3753_v52 = vpop.trf.xlu0 }
  0x84   :  { %v1215_v40 = vmul.f32 %v3753_v52, %v3371_v2 }
  0x85   :  { %1068 = vperm.xlu0 %3249, %v966_v50   ;;  %1073 = vperm.xlu1 %3250, %v967_v51   ;;  %v976_v51 = vld [vmem:[%s6723_s1 + $0xd8] sm:$0xff] }
  0x86   :  { %v3787_v49 = vpop.trf.xlu1 }
  0x87   :  { %v3761_v55 = vpop.trf.xlu0  ;;  %6849 = vst [vmem:[#allocation13_spill] sm:$0xff] %v3787_v49 }
  0x89   :  { %1078 = vperm.xlu0 %3249, %v968_v53   ;;  %1083 = vperm.xlu1 %3250, %v969_v54   ;;  %v977_v53 = vld [vmem:[%s6723_s1 + $0xe0] sm:$0xff] }
  0x8a   :  { %v3797_v54 = vpop.trf.xlu1 }
  0x8b   :  { %v3769_v58 = vpop.trf.xlu0  ;;  %6850 = vst [vmem:[#allocation14_spill] sm:$0xff] %v3797_v54 }
  0x8c   :  { %v1217_v35 = vmul.f32 %v3769_v58, %v3387_v5 }
  0x8d   :  { %1088 = vperm.xlu0 %3249, %v970_v56   ;;  %1093 = vperm.xlu1 %3250, %v971_v57   ;;  %v978_v56 = vld [vmem:[%s6723_s1 + $0xe8] sm:$0xff]  ;;  %v979_v57 = vld [vmem:[%s6723_s1 + $0xf0] sm:$0xff] }
  0x8f   :  { %v3779_v62 = vpop.trf.xlu0 }
  0x90   :  { %v1218_v34 = vmul.f32 %v3779_v62, %v3392_v6 }
  0x91   :  { %1098 = vperm.xlu0 %3249, %v972_v60   ;;  %1103 = vperm.xlu1 %3250, %v973_v61   ;;  %v980_v61 = vld [vmem:[%s6723_s1 + $0xf8] sm:$0xff] }
  0x93   :  { %v3789_v50 = vpop.trf.xlu0 }
  0x95   :  { %1108 = vperm.xlu0 %3249, %v974_v63   ;;  %1113 = vperm.xlu1 %3250, %v975_v48   ;;  %v3810_v63 = vpop.trf.xlu1 }
  0x96   :  { %6851 = vst [vmem:[#allocation15_spill] sm:$0xff] %v3810_v63 }
  0x97   :  { %v3805_v60 = vpop.trf.xlu0 }
  0x98   :  { %v1220_v2 = vmul.f32 %v3805_v60, %v3425_v13 }
  0x99   :  { %1118 = vperm.xlu0 %3249, %v976_v51   ;;  %1123 = vperm.xlu1 %3250, %v977_v53   ;;  %v3814_v51 = vpop.trf.xlu1 }
  0x9a   :  { %6852 = vst [vmem:[#allocation16_spill] sm:$0xff] %v3814_v51 }
  0x9b   :  { %v3812_v48 = vpop.trf.xlu0 }
  0x9c   :  { %v1221_v5 = vmul.f32 %v3812_v48, %v3456_v18 }
  0x9d   :  { %1128 = vperm.xlu0 %3249, %v978_v56   ;;  %1133 = vperm.xlu1 %3250, %v979_v57   ;;  %v3818_v45 = vpop.trf.xlu1 }
  0x9e   :  { %6853 = vst [vmem:[#allocation17_spill] sm:$0xff] %v3818_v45 }
  0x9f   :  { %v3816_v53 = vpop.trf.xlu0 }
  0xa0   :  { %v1222_v6 = vmul.f32 %v3816_v53, %v3461_v19 }
  0xa1   :  { %1138 = vperm.xlu0 %3249, %v980_v61   ;;  %v3822_v39 = vpop.trf.xlu1  ;;  %v1216_v61 = vmul.f32 %v3761_v55, %v3381_v4  ;;  %v1219_v4 = vmul.f32 %v3789_v50, %v3420_v12 }
  0xa2   :  { %6854 = vst [vmem:[#allocation18_spill] sm:$0xff] %v3822_v39 }
  0xa3   :  { %v3820_v44 = vpop.trf.xlu0 }
  0xa4   :  { %v1223_v12 = vmul.f32 %v3820_v44, %v3491_v24 }
  0xa5   :  { %v3826_v57 = vpop.trf.xlu1 }
  0xa6   :  { %6855 = vst [vmem:[#allocation19_spill] sm:$0xff] %v3826_v57 }
  0xa7   :  { %v3824_v56 = vpop.trf.xlu0 }
  0xa8   :  { %v1224_v13 = vmul.f32 %v3824_v56, %v3496_v25 }
  0xa9   :  { %v3830_v41 = vpop.trf.xlu1 }
  0xaa   :  { %6856 = vst [vmem:[#allocation20_spill] sm:$0xff] %v3830_v41 }
  0xab   :  { %v3828_v47 = vpop.trf.xlu0 }
  0xac   :  { %v1225_v18 = vmul.f32 %v3828_v47, %v3525_v30 }
  0xad   :  { %v3840_v29 = vpop.trf.xlu1 }
  0xae   :  { %6857 = vst [vmem:[#allocation21_spill] sm:$0xff] %v3840_v29 }
  0xaf   :  { %v3834_v46 = vpop.trf.xlu0 }
  0xb0   :  { %v1226_v19 = vmul.f32 %v3834_v46, %v3530_v31 }
  0xb3   :  { %v3844_v28 = vpop.trf.xlu0 }
  0xb4   :  { %v1227_v24 = vmul.f32 %v3844_v28, %v3559_v36  ;;  %v1231_v36 = vmul.f32 %v3771_v59, %v3361_v0  ;;  %v1236_v0 = vmul.f32 %v3818_v45, %v3438_v15  ;;  %v1240_v15 = vmul.f32 %v3840_v29, %v3507_v27  ;;  %v6879_v29 = vld [vmem:[#allocation4_spill] sm:$0xff] }
  0xc0   :  { %1249 = vadd.xlane.f32.xlu0 %v1216_v61  ;;  %v3854_v61 = vpop.trf.xlu0 }
  0xc1   :  { %1247 = vadd.xlane.f32.xlu1 %v1215_v40  ;;  %v3850_v40 = vpop.trf.xlu1  ;;  %v1228_v25 = vmul.f32 %v3854_v61, %v3564_v37 }
  0xc2   :  { %6858 = vst [vmem:[#allocation22_spill] sm:$0xff] %v3850_v40 }
  0xc4   :  { %1251 = vadd.xlane.f32.xlu0 %v1217_v35  ;;  %v3864_v35 = vpop.trf.xlu0 }
  0xc5   :  { %1253 = vadd.xlane.f32.xlu1 %v1218_v34  ;;  %v3860_v34 = vpop.trf.xlu1  ;;  %v1229_v31 = vmul.f32 %v3864_v35, %v3593_v42  ;;  %v1234_v42 = vmul.f32 %v3810_v63, %v3410_v10  ;;  %v1238_v10 = vmul.f32 %v3826_v57, %v3473_v21 }
  0xc6   :  { %6859 = vst [vmem:[#allocation23_spill] sm:$0xff] %v3860_v34 }
  0xc8   :  { %1255 = vadd.xlane.f32.xlu0 %v1219_v4 }
  0xc9   :  { %1257 = vadd.xlane.f32.xlu1 %v1220_v2  ;;  %v3870_v4 = vpop.trf.xlu1  ;;  %v3874_v2 = vpop.trf.xlu0 }
  0xca   :  { %6860 = vst [vmem:[#allocation24_spill] sm:$0xff] %v3870_v4  ;;  %v1230_v30 = vmul.f32 %v3874_v2, %v3598_v43  ;;  %v1233_v43 = vmul.f32 %v3797_v54, %v3405_v9  ;;  %v1237_v9 = vmul.f32 %v3822_v39, %v3468_v20  ;;  %v1241_v20 = vmul.f32 %v3850_v40, %v3536_v32 }
  0xcc   :  { %1259 = vadd.xlane.f32.xlu0 %v1221_v5 }
  0xcd   :  { %1261 = vadd.xlane.f32.xlu1 %v1222_v6  ;;  %v3882_v5 = vpop.trf.xlu1  ;;  %v1232_v6 = vmul.f32 %v3787_v49, %v3366_v1  ;;  %v6888_v49 = vld [vmem:[#allocation8_spill] sm:$0xff] }
  0xd0   :  { %1263 = vadd.xlane.f32.xlu0 %v1223_v12  ;;  %v1235_v12 = vmul.f32 %v3814_v51, %v3433_v14  ;;  %v1239_v14 = vmul.f32 %v3830_v41, %v3502_v26  ;;  %v1243_v26 = vmul.f32 %v3870_v4, %v3570_v38  ;;  %v6883_v51 = vld [vmem:[#allocation7_spill] sm:$0xff] }
  0xd1   :  { %1265 = vadd.xlane.f32.xlu1 %v1224_v13  ;;  %v3888_v37 = vpop.trf.xlu1 }
  0xd4   :  { %1267 = vadd.xlane.f32.xlu0 %v1225_v18 }
  0xd5   :  { %1269 = vadd.xlane.f32.xlu1 %v1226_v19  ;;  %v3896_v13 = vpop.trf.xlu1 }
  0xd8   :  { %1271 = vadd.xlane.f32.xlu0 %v1227_v24 }
  0xd9   :  { %1273 = vadd.xlane.f32.xlu1 %v1228_v25  ;;  %v1242_v25 = vmul.f32 %v3860_v34, %v3541_v33 }
  0xdc   :  { %1275 = vadd.xlane.f32.xlu0 %v1229_v31  ;;  %v3908_v19 = vpop.permute.xlu1 %988 }
  0xdd   :  { %1277 = vadd.xlane.f32.xlu1 %v1230_v30  ;;  %6863 = vst [vmem:[#allocation27_spill] sm:$0xff] %v3908_v19  ;;  %v6876_v19 = vld [vmem:[#allocation2_spill] sm:$0xff] }
  0xe0   :  { %1279 = vadd.xlane.f32.xlu0 %v1231_v36  ;;  %v3918_v21 = vpop.permute.xlu1 %993 }
  0xe1   :  { %1281 = vadd.xlane.f32.xlu1 %v1232_v6  ;;  %6865 = vst [vmem:[#allocation29_spill] sm:$0xff] %v3918_v21 }
  0xe4   :  { %1283 = vadd.xlane.f32.xlu0 %v1233_v43  ;;  %v3932_v32 = vpop.permute.xlu1 %998 }
  0xe5   :  { %1285 = vadd.xlane.f32.xlu1 %v1234_v42  ;;  %6868 = vst [vmem:[#allocation32_spill] sm:$0xff] %v3932_v32 }
  0xe8   :  { %1287 = vadd.xlane.f32.xlu0 %v1235_v12  ;;  %v3900_v1 = vpop.permute.xlu0 %983 }
  0xe9   :  { %6861 = vst [vmem:[#allocation25_spill] sm:$0xff] %v3900_v1  ;;  %1289 = vadd.xlane.f32.xlu1 %v1236_v0 }
  0xec   :  { %1291 = vadd.xlane.f32.xlu0 %v1237_v9  ;;  %v3906_v18 = vpop.permute.xlu0 %1008 }
  0xed   :  { %6862 = vst [vmem:[#allocation26_spill] sm:$0xff] %v3906_v18  ;;  %1293 = vadd.xlane.f32.xlu1 %v1238_v10 }
  0xf0   :  { %1295 = vadd.xlane.f32.xlu0 %v1239_v14  ;;  %v3914_v24 = vpop.permute.xlu0 %1018 }
  0xf1   :  { %6864 = vst [vmem:[#allocation28_spill] sm:$0xff] %v3914_v24  ;;  %1297 = vadd.xlane.f32.xlu1 %v1240_v15 }
  0xf4   :  { %1299 = vadd.xlane.f32.xlu0 %v1241_v20  ;;  %v3922_v30 = vpop.permute.xlu0 %1028 }
  0xf5   :  { %6866 = vst [vmem:[#allocation30_spill] sm:$0xff] %v3922_v30  ;;  %1301 = vadd.xlane.f32.xlu1 %v1242_v25 }
  0xf7   :  { %v3926_v27 = vpop.f32.mrb[0].mxu1 }
  0xf8   :  { %1303 = vadd.xlane.f32.xlu0 %v1243_v26  ;;  %v3928_v31 = vpop.permute.xlu0 %1038  ;;  %v3930_v36 = vpop.f32.mrb[0].mxu0 }
  0xf9   :  { %6867 = vst [vmem:[#allocation31_spill] sm:$0xff] %v3928_v31  ;;  %v3934_v6 = vpop.f32.mrb[1].mxu0  ;;  %v3936_v43 = vpop.f32.mrb[1].mxu1 }
  0xfa   :  { %v3938_v33 = vpop.f32.mrb[2].mxu0  ;;  %v3942_v38 = vpop.f32.mrb[2].mxu1 }
  0xfb   :  { %v274_v42 = vpack.c.bf16 %v3938_v33, %v3930_v36  ;;  %v3944_v12 = vpop.f32.mrb[3].mxu0  ;;  %v282_v0 = vpack.c.bf16 %v3942_v38, %v3926_v27  ;;  %v3948_v9 = vpop.f32.mrb[3].mxu1 }
  0xfc   :  { %v3950_v10 = vpop.permute.xlu0 %1048  ;;  %v273_v14 = vpack.c.bf16 %v3944_v12, %v3934_v6  ;;  %v281_v15 = vpack.c.bf16 %v3948_v9, %v3936_v43  ;;  %v3963_v31 = vpop.permute.xlu1 %1003 }
  0xfd   :  { %6869 = vst [vmem:[#allocation33_spill] sm:$0xff] %v3950_v10  ;;  %6871 = vst [vmem:[#allocation35_spill] sm:$0xff] %v3963_v31 }
  0xfe   :  { %3136 = vmatprep.mubr.bf16.mxu0 %v273_v14  ;;  %3168 = vmatprep.mubr.bf16.mxu1 %v281_v15 }
  0xff   :  { %3137 = vmatmul.mubr.bf16.vlgmr.msra.gmra.mrb[16].mxu0 %v274_v42  ;;  %v3956_v20 = vpop.f32.mrb[4].mxu1  ;;  %3169 = vmatmul.mubr.bf16.vlgmr.msra.gmra.mrb[16].mxu1 %v282_v0 }
 0x100   :  { %v3958_v25 = vpop.permute.xlu0 %1058  ;;  %v3960_v26 = vpop.f32.mrb[4].mxu0  ;;  %3185 = vmatpush3.bf16.msra.mxu0 %v3396_v7  ;;  %3217 = vmatpush3.bf16.msra.mxu1 %v3376_v3 }
 0x101   :  { %6870 = vst [vmem:[#allocation34_spill] sm:$0xff] %v3958_v25  ;;  %v3965_v10 = vpop.f32.mrb[5].mxu0  ;;  %3186 = vmatprep.subr.bf16.mxu0 %v3400_v8  ;;  %v3969_v14 = vpop.f32.mrb[5].mxu1  ;;  %3218 = vmatprep.subr.bf16.mxu1 %v3415_v11 }
 0x102   :  { %v3971_v42 = vpop.f32.mrb[6].mxu0  ;;  %v3974_v0 = vpop.f32.mrb[6].mxu1 }
 0x103   :  { %v3976_v15 = vpop.f32.mrb[7].mxu0  ;;  %v276_v7 = vpack.c.bf16 %v3971_v42, %v3960_v26  ;;  %v3980_v25 = vpop.f32.mrb[7].mxu1  ;;  %v284_v24 = vpack.c.bf16 %v3974_v0, %v3956_v20 }
 0x104   :  { %v3982_v30 = vpop.permute.xlu0 %1068  ;;  %v275_v3 = vpack.c.bf16 %v3976_v15, %v3965_v10  ;;  %3187 = vmatpush3.bf16.msra.mxu0 %v3400_v8  ;;  %v283_v18 = vpack.c.bf16 %v3980_v25, %v3969_v14  ;;  %3219 = vmatpush3.bf16.msra.mxu1 %v3415_v11  ;;  %v4000_v8 = vpop.permute.xlu1 %1013 }
 0x105   :  { %6872 = vst [vmem:[#allocation36_spill] sm:$0xff] %v3982_v30  ;;  %3188 = vmatprep.subr.bf16.mxu0 %v3446_v16  ;;  %6874 = vst [vmem:[#allocation38_spill] sm:$0xff] %v4000_v8  ;;  %3220 = vmatprep.subr.bf16.mxu1 %v3451_v17 }
 0x106   :  { %3140 = vmatprep.mubr.bf16.mxu0 %v275_v3  ;;  %3172 = vmatprep.mubr.bf16.mxu1 %v283_v18 }
 0x107   :  { %v3993_v31 = vpop.f32.mrb[8].mxu1  ;;  %3141 = vmatmul.mubr.bf16.gmra.mrb[20].mxu0 %v276_v7  ;;  %3173 = vmatmul.mubr.bf16.gmra.mrb[20].mxu1 %v284_v24 }
 0x108   :  { %v3995_v30 = vpop.permute.xlu0 %1078  ;;  %v3997_v1 = vpop.f32.mrb[8].mxu0  ;;  %3189 = vmatpush3.bf16.msra.mxu0 %v3446_v16  ;;  %3221 = vmatpush3.bf16.msra.mxu1 %v3451_v17 }
 0x109   :  { %6873 = vst [vmem:[#allocation37_spill] sm:$0xff] %v3995_v30  ;;  %v4002_v32 = vpop.f32.mrb[9].mxu0  ;;  %3190 = vmatprep.subr.bf16.mxu0 %v3481_v22  ;;  %v4006_v11 = vpop.f32.mrb[9].mxu1  ;;  %3222 = vmatprep.subr.bf16.mxu1 %v3486_v23 }
 0x10a   :  { %v4008_v3 = vpop.f32.mrb[10].mxu0  ;;  %v4011_v18 = vpop.f32.mrb[10].mxu1 }
 0x10b   :  { %v4013_v7 = vpop.f32.mrb[11].mxu0  ;;  %v278_v16 = vpack.c.bf16 %v4008_v3, %v3997_v1  ;;  %v4018_v24 = vpop.f32.mrb[11].mxu1  ;;  %v286_v21 = vpack.c.bf16 %v4011_v18, %v3993_v31 }
 0x10c   :  { %v4020_v30 = vpop.permute.xlu0 %1088  ;;  %v277_v8 = vpack.c.bf16 %v4013_v7, %v4002_v32  ;;  %3191 = vmatpush3.bf16.msra.mxu0 %v3481_v22  ;;  %v285_v17 = vpack.c.bf16 %v4018_v24, %v4006_v11  ;;  %3223 = vmatpush3.bf16.msra.mxu1 %v3486_v23  ;;  %v4031_v4 = vpop.permute.xlu1 %1023 }
 0x10d   :  { %6875 = vst [vmem:[#allocation39_spill] sm:$0xff] %v4020_v30  ;;  %3192 = vmatprep.subr.bf16.mxu0 %v6876_v19  ;;  %6877 = vst [vmem:[#allocation2_spill] sm:$0xff] %v4031_v4 }
 0x10e   :  { %3144 = vmatprep.mubr.bf16.mxu0 %v277_v8  ;;  %3176 = vmatprep.mubr.bf16.mxu1 %v285_v17  ;;  %v6880_v8 = vld [vmem:[#allocation3_spill] sm:$0xff] }
 0x10f   :  { %v4033_v34 = vpop.f32.mrb[12].mxu1  ;;  %3145 = vmatmul.mubr.bf16.gmra.mrb[24].mxu0 %v278_v16  ;;  %3177 = vmatmul.mubr.bf16.gmra.mrb[24].mxu1 %v286_v21  ;;  %v1141_v16 = vlaneseq  ;;  %v6881_v21 = vld [vmem:[#allocation5_spill] sm:$0xff] }
 0x110   :  { %v4035_v30 = vpop.permute.xlu0 %1098  ;;  %v4037_v40 = vpop.f32.mrb[12].mxu0  ;;  %3193 = vmatpush3.bf16.msra.mxu0 %v6876_v19  ;;  %3224 = vmatprep.subr.bf16.mxu1 %v6880_v8 }
 0x111   :  { %6878 = vst [vmem:[#allocation40_spill] sm:$0xff] %v4035_v30  ;;  %v4040_v22 = vpop.f32.mrb[13].mxu0  ;;  %3194 = vmatprep.subr.bf16.mxu0 %v6879_v29  ;;  %v4044_v23 = vpop.f32.mrb[13].mxu1  ;;  %3225 = vmatpush3.bf16.msra.mxu1 %v6880_v8 }
 0x112   :  { %v4046_v4 = vpop.f32.mrb[14].mxu0  ;;  %v4051_v30 = vpop.f32.mrb[14].mxu1  ;;  %3226 = vmatprep.subr.bf16.mxu1 %v6881_v21 }
 0x113   :  { %v4049_v17 = vpop.f32.mrb[15].mxu0  ;;  %v280_v19 = vpack.c.bf16 %v4046_v4, %v4037_v40  ;;  %v4060_v39 = vpop.f32.mrb[15].mxu1  ;;  %v288_v8 = vpack.c.bf16 %v4051_v30, %v4033_v34 }
 0x114   :  { %v4056_v41 = vpop.permute.xlu0 %1108  ;;  %v279_v57 = vpack.c.bf16 %v4049_v17, %v4040_v22  ;;  %3195 = vmatpush3.bf16.msra.mxu0 %v6879_v29  ;;  %v287_v45 = vpack.c.bf16 %v4060_v39, %v4044_v23  ;;  %v4068_v63 = vpop.permute.xlu1 %1033  ;;  %v6887_v29 = vld [vmem:[#allocation11_spill] sm:$0xff] }
 0x115   :  { %6882 = vst [vmem:[#allocation4_spill] sm:$0xff] %v4056_v41  ;;  %3196 = vmatprep.subr.bf16.mxu0 %v6883_v51  ;;  %6884 = vst [vmem:[#allocation3_spill] sm:$0xff] %v4068_v63  ;;  %3227 = vmatpush3.bf16.msra.mxu1 %v6881_v21  ;;  %v4071_v41 = vshrl.u32 %v1141_v16, 7  ;;  %v4084_v16 = vld [vmem:[%s6724_s3] sm:$0xff] }
 0x116   :  { %3148 = vmatprep.mubr.bf16.mxu0 %v279_v57  ;;  %3180 = vmatprep.mubr.bf16.mxu1 %v287_v45  ;;  %v6889_v57 = vld [vmem:[#allocation12_spill] sm:$0xff]  ;;  %6890 = vst [vmem:[#allocation11_spill] sm:$0xff] %v4084_v16 }
 0x117   :  { %6885 = vst [vmem:[#allocation5_spill] sm:$0xff] %v4071_v41  ;;  %3149 = vmatmul.mubr.bf16.gmra.mrb[28].mxu0 %v280_v19  ;;  %3181 = vmatmul.mubr.bf16.gmra.mrb[28].mxu1 %v288_v8  ;;  %v1143_v63 = vsub.s32 0, %v4071_v41  ;;  %v2957_v8 = vld [vmem:[%s6725_s4] ss:$0 sm:$0xff] }
 0x118   :  { %v4073_v54 = vpop.permute.xlu0 %1118  ;;  %3197 = vmatpush3.bf16.msra.mxu0 %v6883_v51  ;;  %3228 = vmatprep.subr.bf16.mxu1 %v6888_v49  ;;  %v4086_v45 = vpop.permute.xlu1 %1043 }
 0x119   :  { %6886 = vst [vmem:[#allocation7_spill] sm:$0xff] %v4073_v54  ;;  %3198 = vmatprep.subr.bf16.mxu0 %v6887_v29  ;;  %3229 = vmatpush3.bf16.msra.mxu1 %v6888_v49  ;;  %6891 = vst [vmem:[#allocation8_spill] sm:$0xff] %v4086_v45  ;;  %v4093_v51 = vrot.slane %v4084_v16, %v1143_v63 }
 0x11a   :  { %3230 = vmatprep.subr.bf16.mxu1 %v6889_v57 }
 0x11b   :  { %6893 = vst [vmem:[#allocation41_spill] sm:$0xff] %v4093_v51 }
 0x11c   :  { %v4088_v19 = vpop.permute.xlu0 %1128  ;;  %3199 = vmatpush3.bf16.msra.mxu0 %v6887_v29  ;;  %v4099_v54 = vpop.permute.xlu1 %1053 }
 0x11d   :  { %6892 = vst [vmem:[#allocation12_spill] sm:$0xff] %v4088_v19  ;;  %3231 = vmatpush3.bf16.msra.mxu1 %v6889_v57  ;;  %6894 = vst [vmem:[#allocation42_spill] sm:$0xff] %v4099_v54 }
 0x120   :  { %v1139_v49 = vpop.permute.xlu0 %1138  ;;  %v4104_v19 = vpop.permute.xlu1 %1063 }
 0x121   :  { %v1176_v21 = vmul.f32 %v4093_v51, %v1139_v49  ;;  %6896 = vst [vmem:[#allocation44_spill] sm:$0xff] %v4104_v19 }
 0x123   :  { %v4101_v41 = vadd.f32 %v2957_v8, %v1176_v21 }
 0x124   :  { %v4110_v63 = vpop.permute.xlu1 %1073 }
 0x125   :  { %6895 = vst [vmem:[#allocation43_spill] sm:$0xff] %v4101_v41  ;;  %757 = vxpose.xlu0.b32.start [1/16] %v3934_v6, 128  ;;  %6897 = vst [vmem:[#allocation45_spill] sm:$0xff] %v4110_v63 }
 0x128   :  { %789 = vxpose.xlu1.b32.start [1/16] %v3936_v43, 128  ;;  %v4114_v29 = vpop.permute.xlu1 %1083 }
 0x129   :  { %758 = vxpose.xlu0.b32.cont [2/16] %v3944_v12, 128  ;;  %6898 = vst [vmem:[#allocation46_spill] sm:$0xff] %v4114_v29 }
 0x12c   :  { %790 = vxpose.xlu1.b32.cont [2/16] %v3948_v9, 128  ;;  %v4120_v57 = vpop.permute.xlu1 %1093 }
 0x12d   :  { %759 = vxpose.xlu0.b32.cont [3/16] %v3930_v36, 128  ;;  %6899 = vst [vmem:[#allocation47_spill] sm:$0xff] %v4120_v57 }
 0x130   :  { %791 = vxpose.xlu1.b32.cont [3/16] %v3926_v27, 128  ;;  %v4124_v49 = vpop.permute.xlu1 %1103 }
 0x131   :  { %760 = vxpose.xlu0.b32.cont [4/16] %v3938_v33, 128  ;;  %6900 = vst [vmem:[#allocation48_spill] sm:$0xff] %v4124_v49 }
 0x134   :  { %792 = vxpose.xlu1.b32.cont [4/16] %v3942_v38, 128  ;;  %v4130_v21 = vpop.permute.xlu1 %1113 }
 0x135   :  { %761 = vxpose.xlu0.b32.cont [5/16] %v3965_v10, 128  ;;  %6901 = vst [vmem:[#allocation49_spill] sm:$0xff] %v4130_v21 }
 0x138   :  { %793 = vxpose.xlu1.b32.cont [5/16] %v3969_v14, 128  ;;  %v4134_v8 = vpop.permute.xlu1 %1123 }
 0x139   :  { %762 = vxpose.xlu0.b32.cont [6/16] %v3976_v15, 128  ;;  %6902 = vst [vmem:[#allocation50_spill] sm:$0xff] %v4134_v8 }
 0x13c   :  { %794 = vxpose.xlu1.b32.cont [6/16] %v3980_v25, 128  ;;  %v4142_v49 = vpop.permute.xlu1 %1133 }
 0x13d   :  { %763 = vxpose.xlu0.b32.cont [7/16] %v3960_v26, 128  ;;  %6904 = vst [vmem:[#allocation52_spill] sm:$0xff] %v4142_v49 }
 0x140   :  { %795 = vxpose.xlu1.b32.cont [7/16] %v3956_v20, 128 }
 0x141   :  { %764 = vxpose.xlu0.b32.cont [8/16] %v3971_v42, 128 }
 0x144   :  { %796 = vxpose.xlu1.b32.cont [8/16] %v3974_v0, 128 }
 0x145   :  { %765 = vxpose.xlu0.b32.cont [9/16] %v4002_v32, 128 }
 0x148   :  { %797 = vxpose.xlu1.b32.cont [9/16] %v4006_v11, 128 }
 0x149   :  { %766 = vxpose.xlu0.b32.cont [10/16] %v4013_v7, 128 }
 0x14c   :  { %798 = vxpose.xlu1.b32.cont [10/16] %v4018_v24, 128 }
 0x14d   :  { %v4137_v57 = vpop.xlane.xlu0 %1249  ;;  %767 = vxpose.xlu0.b32.cont [11/16] %v3997_v1, 128 }
 0x14e   :  { %6903 = vst [vmem:[#allocation51_spill] sm:$0xff] %v4137_v57  ;;  %v4148_v21 = vpop.xlane.xlu1 %1247 }
 0x14f   :  { %6906 = vst [vmem:[#allocation54_spill] sm:$0xff] %v4148_v21 }
 0x150   :  { %799 = vxpose.xlu1.b32.cont [11/16] %v3993_v31, 128 }
 0x151   :  { %768 = vxpose.xlu0.b32.cont [12/16] %v4008_v3, 128  ;;  %v4144_v29 = vpop.xlane.xlu0 %1251 }
 0x152   :  { %6905 = vst [vmem:[#allocation53_spill] sm:$0xff] %v4144_v29  ;;  %v4154_v57 = vpop.xlane.xlu1 %1253 }
 0x153   :  { %6908 = vst [vmem:[#allocation56_spill] sm:$0xff] %v4154_v57 }
 0x154   :  { %800 = vxpose.xlu1.b32.cont [12/16] %v4011_v18, 128 }
 0x155   :  { %769 = vxpose.xlu0.b32.cont [13/16] %v4040_v22, 128  ;;  %v4151_v8 = vpop.xlane.xlu0 %1255 }
 0x156   :  { %6907 = vst [vmem:[#allocation55_spill] sm:$0xff] %v4151_v8  ;;  %v4162_v29 = vpop.xlane.xlu1 %1257 }
 0x157   :  { %6910 = vst [vmem:[#allocation58_spill] sm:$0xff] %v4162_v29 }
 0x158   :  { %801 = vxpose.xlu1.b32.cont [13/16] %v4044_v23, 128 }
 0x159   :  { %770 = vxpose.xlu0.b32.cont [14/16] %v4049_v17, 128  ;;  %v4158_v49 = vpop.xlane.xlu0 %1259 }
 0x15a   :  { %6909 = vst [vmem:[#allocation57_spill] sm:$0xff] %v4158_v49  ;;  %v4167_v8 = vpop.xlane.xlu1 %1261 }
 0x15b   :  { %6912 = vst [vmem:[#allocation60_spill] sm:$0xff] %v4167_v8  ;;  %v6923_v8 = vld [vmem:[#allocation6_spill] sm:$0xff] }
 0x15c   :  { %802 = vxpose.xlu1.b32.cont [14/16] %v4060_v39, 128 }
 0x15d   :  { %771 = vxpose.xlu0.b32.cont [15/16] %v4037_v40, 128  ;;  %v4165_v21 = vpop.xlane.xlu0 %1263 }
 0x15e   :  { %6911 = vst [vmem:[#allocation59_spill] sm:$0xff] %v4165_v21  ;;  %v4171_v57 = vpop.xlane.xlu1 %1265 }
 0x15f   :  { %6914 = vst [vmem:[#allocation62_spill] sm:$0xff] %v4171_v57 }
 0x160   :  { %803 = vxpose.xlu1.b32.cont [15/16] %v4033_v34, 128 }
 0x161   :  { %772 = vxpose.xlu0.b32.end [16/16] %v4046_v4, 128  ;;  %v4169_v63 = vpop.xlane.xlu0 %1267 }
 0x162   :  { %6913 = vst [vmem:[#allocation61_spill] sm:$0xff] %v4169_v63  ;;  %v4175_v54 = vpop.xlane.xlu1 %1269  ;;  %v1244_v63 = vmul.f32 %v3882_v5, %v6923_v8  ;;  %v1380_v8 = vmul.f32 %v3761_v55, %v3944_v12  ;;  %v1384_v55 = vmul.f32 %v3805_v60, %v3976_v15  ;;  %v1388_v60 = vmul.f32 %v3824_v56, %v4013_v7 }
 0x163   :  { %6916 = vst [vmem:[#allocation64_spill] sm:$0xff] %v4175_v54 }
 0x164   :  { %804 = vxpose.xlu1.b32.end [16/16] %v4051_v30, 128 }
 0x165   :  { %v4173_v19 = vpop.xlane.xlu0 %1271 }
 0x166   :  { %6915 = vst [vmem:[#allocation63_spill] sm:$0xff] %v4173_v19  ;;  %v4179_v45 = vpop.xlane.xlu1 %1273  ;;  %v6925_v19 = vld [vmem:[#allocation9_spill] sm:$0xff] }
 0x167   :  { %6918 = vst [vmem:[#allocation66_spill] sm:$0xff] %v4179_v45  ;;  %v1245_v54 = vmul.f32 %v3888_v37, %v6925_v19  ;;  %v6927_v45 = vld [vmem:[#allocation10_spill] sm:$0xff]  ;;  %v1381_v19 = vmul.f32 %v3930_v36, %v3769_v58  ;;  %v1385_v58 = vmul.f32 %v3960_v26, %v3812_v48  ;;  %v1389_v48 = vmul.f32 %v3997_v1, %v3828_v47 }
 0x169   :  { %v4177_v49 = vpop.xlane.xlu0 %1275 }
 0x16a   :  { %6917 = vst [vmem:[#allocation65_spill] sm:$0xff] %v4177_v49  ;;  %v4183_v29 = vpop.xlane.xlu1 %1277 }
 0x16b   :  { %6920 = vst [vmem:[#allocation68_spill] sm:$0xff] %v4183_v29 }
 0x16d   :  { %v4181_v51 = vpop.xlane.xlu0 %1279 }
 0x16e   :  { %6919 = vst [vmem:[#allocation67_spill] sm:$0xff] %v4181_v51  ;;  %v4187_v21 = vpop.xlane.xlu1 %1281  ;;  %v1246_v51 = vmul.f32 %v3896_v13, %v6927_v45 }
 0x16f   :  { %6922 = vst [vmem:[#allocation70_spill] sm:$0xff] %v4187_v21 }
 0x171   :  { %v4185_v41 = vpop.xlane.xlu0 %1283 }
 0x172   :  { %6921 = vst [vmem:[#allocation69_spill] sm:$0xff] %v4185_v41  ;;  %v4195_v49 = vpop.xlane.xlu1 %1285  ;;  %v1379_v41 = vmul.f32 %v3753_v52, %v3934_v6  ;;  %v1383_v52 = vmul.f32 %v3789_v50, %v3965_v10  ;;  %v1387_v50 = vmul.f32 %v3820_v44, %v4002_v32 }
 0x173   :  { %6926 = vst [vmem:[#allocation9_spill] sm:$0xff] %v4195_v49 }
 0x175   :  { %v4191_v57 = vpop.xlane.xlu0 %1287 }
 0x176   :  { %6924 = vst [vmem:[#allocation6_spill] sm:$0xff] %v4191_v57  ;;  %v4205_v57 = vpop.xlane.xlu1 %1289 }
 0x177   :  { %6929 = vst [vmem:[#allocation71_spill] sm:$0xff] %v4205_v57  ;;  %v6955_v57 = vld [vmem:[#allocation24_spill] sm:$0xff] }
 0x178   :  { %v1407_v49 = vmul.f32 %v6955_v57, %v4044_v23 }
 0x179   :  { %v4199_v29 = vpop.xlane.xlu0 %1291 }
 0x17a   :  { %6928 = vst [vmem:[#allocation10_spill] sm:$0xff] %v4199_v29  ;;  %v4213_v45 = vpop.xlane.xlu1 %1293 }
 0x17b   :  { %6931 = vst [vmem:[#allocation73_spill] sm:$0xff] %v4213_v45  ;;  %v6953_v45 = vld [vmem:[#allocation22_spill] sm:$0xff] }
 0x17c   :  { %v1405_v29 = vmul.f32 %v3993_v31, %v6953_v45 }
 0x18b   :  { %1305 = vadd.xlane.f32.xlu1 %v1244_v63  ;;  %v4209_v63 = vpop.xlane.xlu0 %1295 }
 0x18c   :  { %6930 = vst [vmem:[#allocation72_spill] sm:$0xff] %v4209_v63 }
 0x18e   :  { %1307 = vadd.xlane.f32.xlu0 %v1245_v54  ;;  %v1382_v54 = vmul.f32 %v3938_v33, %v3779_v62  ;;  %v1386_v62 = vmul.f32 %v3971_v42, %v3816_v53 }
 0x18f   :  { %1309 = vadd.xlane.f32.xlu1 %v1246_v51  ;;  %v4225_v51 = vpop.xlane.xlu1 %1297 }
 0x190   :  { %6933 = vst [vmem:[#allocation75_spill] sm:$0xff] %v4225_v51  ;;  %v6951_v51 = vld [vmem:[#allocation20_spill] sm:$0xff] }
 0x191   :  { %v1403_v63 = vmul.f32 %v6951_v51, %v4006_v11 }
 0x192   :  { %1411 = vadd.xlane.f32.xlu0 %v1379_v41  ;;  %v4219_v41 = vpop.xlane.xlu0 %1299 }
 0x193   :  { %1413 = vadd.xlane.f32.xlu1 %v1380_v8  ;;  %6932 = vst [vmem:[#allocation74_spill] sm:$0xff] %v4219_v41 }
 0x196   :  { %1415 = vadd.xlane.f32.xlu0 %v1381_v19  ;;  %v4229_v8 = vpop.xlane.xlu0 %1303  ;;  %v4233_v19 = vpop.xlane.xlu1 %1301 }
 0x197   :  { %1417 = vadd.xlane.f32.xlu1 %v1382_v54  ;;  %6934 = vst [vmem:[#allocation76_spill] sm:$0xff] %v4229_v8  ;;  %6935 = vst [vmem:[#allocation77_spill] sm:$0xff] %v4233_v19  ;;  %v1390_v54 = vmul.f32 %v4008_v3, %v3834_v46  ;;  %v6949_v19 = vld [vmem:[#allocation18_spill] sm:$0xff] }
 0x198   :  { %v1401_v41 = vmul.f32 %v3956_v20, %v6949_v19 }
 0x19a   :  { %1419 = vadd.xlane.f32.xlu0 %v1383_v52  ;;  %v1391_v52 = vmul.f32 %v3844_v28, %v4040_v22 }
 0x19b   :  { %1421 = vadd.xlane.f32.xlu1 %v1384_v55  ;;  %v1392_v55 = vmul.f32 %v3854_v61, %v4049_v17 }
 0x19e   :  { %1423 = vadd.xlane.f32.xlu0 %v1385_v58  ;;  %v1393_v58 = vmul.f32 %v4037_v40, %v3864_v35 }
 0x19f   :  { %1425 = vadd.xlane.f32.xlu1 %v1386_v62  ;;  %v1394_v62 = vmul.f32 %v4046_v4, %v3874_v2 }
 0x1a2   :  { %1427 = vadd.xlane.f32.xlu0 %v1387_v50  ;;  %v1395_v50 = vmul.f32 %v3771_v59, %v3936_v43 }
 0x1a3   :  { %1429 = vadd.xlane.f32.xlu1 %v1388_v60  ;;  %v6941_v60 = vld [vmem:[#allocation13_spill] sm:$0xff] }
 0x1a5   :  { %v4237_v53 = vpop.trf.xlu0 }
 0x1a6   :  { %6936 = vst [vmem:[#allocation78_spill] sm:$0xff] %v4237_v53  ;;  %1431 = vadd.xlane.f32.xlu0 %v1389_v48  ;;  %v1396_v48 = vmul.f32 %v6941_v60, %v3948_v9  ;;  %v1543_v57 = vmul.f32 %v4237_v53, %v3934_v6 }
 0x1a7   :  { %1433 = vadd.xlane.f32.xlu1 %v1390_v54  ;;  %v6943_v54 = vld [vmem:[#allocation14_spill] sm:$0xff] }
 0x1a8   :  { %v4241_v44 = vpop.trf.xlu1 }
 0x1a9   :  { %6937 = vst [vmem:[#allocation79_spill] sm:$0xff] %v4241_v44  ;;  %v4245_v56 = vpop.trf.xlu0 }
 0x1aa   :  { %6938 = vst [vmem:[#allocation80_spill] sm:$0xff] %v4245_v56  ;;  %1435 = vadd.xlane.f32.xlu0 %v1391_v52  ;;  %v1397_v52 = vmul.f32 %v3926_v27, %v6943_v54 }
 0x1ab   :  { %1437 = vadd.xlane.f32.xlu1 %v1392_v55  ;;  %v6944_v55 = vld [vmem:[#allocation15_spill] sm:$0xff] }
 0x1ac   :  { %v4249_v47 = vpop.trf.xlu1 }
 0x1ad   :  { %6939 = vst [vmem:[#allocation81_spill] sm:$0xff] %v4249_v47  ;;  %v4253_v46 = vpop.trf.xlu0 }
 0x1ae   :  { %1439 = vadd.xlane.f32.xlu0 %v1393_v58  ;;  %v1398_v58 = vmul.f32 %v3942_v38, %v6944_v55 }
 0x1af   :  { %1441 = vadd.xlane.f32.xlu1 %v1394_v62  ;;  %v6946_v62 = vld [vmem:[#allocation16_spill] sm:$0xff] }
 0x1b0   :  { %v4257_v28 = vpop.trf.xlu1  ;;  %v1399_v8 = vmul.f32 %v6946_v62, %v3969_v14 }
 0x1b1   :  { %6940 = vst [vmem:[#allocation82_spill] sm:$0xff] %v4257_v28  ;;  %v4261_v61 = vpop.trf.xlu0 }
 0x1b2   :  { %1443 = vadd.xlane.f32.xlu0 %v1395_v50  ;;  %v6947_v50 = vld [vmem:[#allocation17_spill] sm:$0xff] }
 0x1b3   :  { %1445 = vadd.xlane.f32.xlu1 %v1396_v48  ;;  %v1400_v48 = vmul.f32 %v6947_v50, %v3980_v25 }
 0x1b4   :  { %v4265_v35 = vpop.trf.xlu1 }
 0x1b5   :  { %6942 = vst [vmem:[#allocation13_spill] sm:$0xff] %v4265_v35  ;;  %v4269_v2 = vpop.trf.xlu0 }
 0x1b6   :  { %1447 = vadd.xlane.f32.xlu0 %v1397_v52  ;;  %v6950_v52 = vld [vmem:[#allocation19_spill] sm:$0xff] }
 0x1b7   :  { %1449 = vadd.xlane.f32.xlu1 %v1398_v58  ;;  %v1402_v58 = vmul.f32 %v3974_v0, %v6950_v52 }
 0x1b8   :  { %v4273_v59 = vpop.trf.xlu1 }
 0x1b9   :  { %6945 = vst [vmem:[#allocation14_spill] sm:$0xff] %v4273_v59  ;;  %v4277_v60 = vpop.trf.xlu0 }
 0x1ba   :  { %1451 = vadd.xlane.f32.xlu0 %v1399_v8  ;;  %v6952_v8 = vld [vmem:[#allocation21_spill] sm:$0xff] }
 0x1bb   :  { %1453 = vadd.xlane.f32.xlu1 %v1400_v48  ;;  %v1404_v48 = vmul.f32 %v6952_v8, %v4018_v24 }
 0x1bc   :  { %v4281_v54 = vpop.trf.xlu1 }
 0x1bd   :  { %6948 = vst [vmem:[#allocation15_spill] sm:$0xff] %v4281_v54  ;;  %v4285_v55 = vpop.trf.xlu0 }
 0x1be   :  { %1455 = vadd.xlane.f32.xlu0 %v1401_v41  ;;  %v6954_v41 = vld [vmem:[#allocation23_spill] sm:$0xff] }
 0x1bf   :  { %1457 = vadd.xlane.f32.xlu1 %v1402_v58  ;;  %v1406_v58 = vmul.f32 %v4011_v18, %v6954_v41 }
 0x1c0   :  { %v4289_v62 = vpop.trf.xlu1 }
 0x1c1   :  { %v4293_v50 = vpop.trf.xlu0 }
 0x1c2   :  { %1459 = vadd.xlane.f32.xlu0 %v1403_v63  ;;  %v1408_v63 = vmul.f32 %v3882_v5, %v4060_v39  ;;  %v1544_v5 = vmul.f32 %v4245_v56, %v3944_v12  ;;  %v1560_v12 = vmul.f32 %v4249_v47, %v3948_v9  ;;  %v1545_v47 = vmul.f32 %v3930_v36, %v4253_v46 }
 0x1c3   :  { %1461 = vadd.xlane.f32.xlu1 %v1404_v48  ;;  %v1409_v48 = vmul.f32 %v4033_v34, %v3888_v37  ;;  %v1561_v36 = vmul.f32 %v3926_v27, %v4257_v28 }
 0x1c4   :  { %v4297_v19 = vpop.trf.xlu1 }
 0x1c5   :  { %v4301_v52 = vpop.trf.xlu0 }
 0x1c6   :  { %1463 = vadd.xlane.f32.xlu0 %v1405_v29  ;;  %v1410_v29 = vmul.f32 %v4051_v30, %v3896_v13  ;;  %v1559_v13 = vmul.f32 %v4241_v44, %v3936_v43 }
 0x1c7   :  { %1465 = vadd.xlane.f32.xlu1 %v1406_v58 }
 0x1c8   :  { %v4305_v51 = vpop.trf.xlu1 }
 0x1c9   :  { %v4309_v8 = vpop.trf.xlu0 }
 0x1ca   :  { %1467 = vadd.xlane.f32.xlu0 %v1407_v49 }
 0x1cb   :  { %1469 = vadd.xlane.f32.xlu1 %v1408_v63 }
 0x1cc   :  { %v4313_v45 = vpop.trf.xlu1 }
 0x1cd   :  { %v4317_v41 = vpop.trf.xlu0 }
 0x1ce   :  { %1471 = vadd.xlane.f32.xlu0 %v1409_v48 }
 0x1cf   :  { %1473 = vadd.xlane.f32.xlu1 %v1410_v29 }
 0x1d0   :  { %v4323_v58 = vpop.trf.xlu1 }
 0x1d1   :  { %v4327_v49 = vpop.trf.xlu0 }
 0x1d2   :  { %1575 = vadd.xlane.f32.xlu0 %v1543_v57  ;;  %v4329_v63 = vpop.f32.mrb[16].mxu0  ;;  %v4331_v37 = vpop.f32.mrb[16].mxu1 }
 0x1d3   :  { %6956 = vst [vmem:[#allocation16_spill] sm:$0xff] %v4331_v37  ;;  %v4333_v21 = vpop.f32.mrb[17].mxu0  ;;  %1577 = vadd.xlane.f32.xlu1 %v1544_v5  ;;  %v4337_v48 = vpop.f32.mrb[17].mxu1 }
 0x1d4   :  { %6957 = vst [vmem:[#allocation17_spill] sm:$0xff] %v4337_v48  ;;  %v4339_v6 = vpop.f32.mrb[18].mxu0  ;;  %v4343_v29 = vpop.f32.mrb[18].mxu1 }
 0x1d5   :  { %6958 = vst [vmem:[#allocation18_spill] sm:$0xff] %v4339_v6  ;;  %6959 = vst [vmem:[#allocation19_spill] sm:$0xff] %v4343_v29  ;;  %v484_v57 = vpack.c.bf16 %v4339_v6, %v4329_v63  ;;  %v4347_v16 = vpop.trf.xlu1  ;;  %v492_v5 = vpack.c.bf16 %v4343_v29, %v4331_v37  ;;  %v4351_v56 = vpop.f32.mrb[19].mxu1  ;;  %v1546_v29 = vmul.f32 %v3938_v33, %v4261_v61 }
 0x1d6   :  { %6960 = vst [vmem:[#allocation20_spill] sm:$0xff] %v4351_v56  ;;  %v4353_v43 = vpop.trf.xlu0  ;;  %1607 = vadd.xlane.f32.xlu0 %v1559_v13  ;;  %v4355_v44 = vpop.f32.mrb[19].mxu0  ;;  %v491_v9 = vpack.c.bf16 %v4351_v56, %v4337_v48 }
 0x1d7   :  { %1609 = vadd.xlane.f32.xlu1 %v1560_v12  ;;  %v483_v53 = vpack.c.bf16 %v4355_v44, %v4333_v21 }
 0x1d8   :  { %3232 = vmatprep.mubr.bf16.mxu1 %v491_v9 }
 0x1d9   :  { %v4365_v37 = vpop.trf.xlu1  ;;  %3200 = vmatprep.mubr.bf16.mxu0 %v483_v53  ;;  %3233 = vmatmul.mubr.bf16.vlgmr.msra.gmra.mrb[32].mxu1 %v492_v5  ;;  %v1562_v53 = vmul.f32 %v3942_v38, %v4265_v35  ;;  %v1547_v35 = vmul.f32 %v4269_v2, %v3965_v10 }
 0x1da   :  { %v4367_v6 = vpop.trf.xlu0  ;;  %1579 = vadd.xlane.f32.xlu0 %v1545_v47  ;;  %v4369_v13 = vpop.f32.mrb[20].mxu0  ;;  %3201 = vmatmul.mubr.bf16.vlgmr.msra.gmra.mrb[32].mxu0 %v484_v57 }
 0x1db   :  { %1581 = vadd.xlane.f32.xlu1 %v1546_v29  ;;  %v4371_v12 = vpop.f32.mrb[21].mxu0  ;;  %v4373_v56 = vpop.f32.mrb[20].mxu1 }
 0x1dc   :  { %6961 = vst [vmem:[#allocation21_spill] sm:$0xff] %v4371_v12  ;;  %6962 = vst [vmem:[#allocation22_spill] sm:$0xff] %v4373_v56  ;;  %v4377_v48 = vpop.f32.mrb[22].mxu0  ;;  %v4379_v33 = vpop.f32.mrb[21].mxu1  ;;  %v4383_v47 = vmul.f32 %v4373_v56, %v4289_v62 }
 0x1dd   :  { %v4387_v29 = vpop.trf.xlu1  ;;  %v4389_v9 = vpop.f32.mrb[23].mxu0  ;;  %v486_v57 = vpack.c.bf16 %v4377_v48, %v4369_v13 }
 0x1de   :  { %6963 = vst [vmem:[#allocation23_spill] sm:$0xff] %v4383_v47  ;;  %6964 = vst [vmem:[#allocation24_spill] sm:$0xff] %v4389_v9  ;;  %1611 = vadd.xlane.f32.xlu0 %v1561_v36  ;;  %v4393_v27 = vpop.f32.mrb[22].mxu1  ;;  %v485_v5 = vpack.c.bf16 %v4389_v9, %v4371_v12  ;;  %v1548_v9 = vmul.f32 %v4277_v60, %v3976_v15  ;;  %v1563_v15 = vmul.f32 %v4273_v59, %v3969_v14 }
 0x1df   :  { %6965 = vst [vmem:[#allocation83_spill] sm:$0xff] %v4393_v27  ;;  %1613 = vadd.xlane.f32.xlu1 %v1562_v53  ;;  %v4397_v28 = vpop.f32.mrb[23].mxu1  ;;  %v494_v47 = vpack.c.bf16 %v4393_v27, %v4373_v56  ;;  %v4403_v38 = vmul.f32 %v4393_v27, %v4297_v19  ;;  %v4411_v53 = vpop.trf.xlu0 }
 0x1e0   :  { %6966 = vst [vmem:[#allocation84_spill] sm:$0xff] %v4397_v28  ;;  %3204 = vmatprep.mubr.bf16.mxu0 %v485_v5  ;;  %v493_v36 = vpack.c.bf16 %v4397_v28, %v4379_v33 }
 0x1e1   :  { %6967 = vst [vmem:[#allocation85_spill] sm:$0xff] %v4403_v38  ;;  %v4413_v12 = vpop.trf.xlu1 }
 0x1e2   :  { %1583 = vadd.xlane.f32.xlu0 %v1547_v35  ;;  %v4415_v56 = vpop.f32.mrb[24].mxu0  ;;  %3236 = vmatprep.mubr.bf16.mxu1 %v493_v36  ;;  %v4419_v27 = vpop.f32.mrb[24].mxu1 }
 0x1e3   :  { %1585 = vadd.xlane.f32.xlu1 %v1548_v9  ;;  %v4417_v38 = vpop.f32.mrb[25].mxu0  ;;  %6968 = vst [vmem:[#allocation86_spill] sm:$0xff] %v4419_v27  ;;  %3205 = vmatmul.mubr.bf16.gmra.mrb[36].mxu0 %v486_v57  ;;  %v4423_v10 = vmul.f32 %v4415_v56, %v4317_v41  ;;  %v4429_v28 = vpop.f32.mrb[25].mxu1  ;;  %v4433_v35 = vmul.f32 %v4419_v27, %v4323_v58 }
 0x1e4   :  { %v4427_v5 = vpop.f32.mrb[26].mxu0  ;;  %3237 = vmatmul.mubr.bf16.gmra.mrb[36].mxu1 %v494_v47  ;;  %v1564_v9 = vmul.f32 %v4281_v54, %v3980_v25  ;;  %v4447_v59 = vmul.f32 %v4305_v51, %v4429_v28  ;;  %v4449_v47 = vpop.f32.mrb[26].mxu1 }
 0x1e5   :  { %6969 = vst [vmem:[#allocation87_spill] sm:$0xff] %v4423_v10  ;;  %6970 = vst [vmem:[#allocation88_spill] sm:$0xff] %v4427_v5  ;;  %v4437_v57 = vpop.f32.mrb[27].mxu0  ;;  %v488_v36 = vpack.c.bf16 %v4427_v5, %v4415_v56  ;;  %v4443_v14 = vmul.f32 %v4427_v5, %v4327_v49  ;;  %v4453_v25 = vpop.f32.mrb[27].mxu1  ;;  %v496_v54 = vpack.c.bf16 %v4449_v47, %v4419_v27 }
 0x1e6   :  { %6971 = vst [vmem:[#allocation89_spill] sm:$0xff] %v4433_v35  ;;  %6973 = vst [vmem:[#allocation91_spill] sm:$0xff] %v4447_v59  ;;  %1615 = vadd.xlane.f32.xlu0 %v1563_v15  ;;  %v487_v35 = vpack.c.bf16 %v4437_v57, %v4417_v38  ;;  %v4459_v10 = vmul.f32 %v4449_v47, %v4347_v16  ;;  %v495_v15 = vpack.c.bf16 %v4453_v25, %v4429_v28  ;;  %v788_v5 = vpop.trf.xlu0  ;;  %v4471_v27 = vpop.trf.xlu1 }
 0x1e7   :  { %6972 = vst [vmem:[#allocation90_spill] sm:$0xff] %v4443_v14  ;;  %6974 = vst [vmem:[#allocation92_spill] sm:$0xff] %v4449_v47  ;;  %1617 = vadd.xlane.f32.xlu1 %v1564_v9  ;;  %v1549_v14 = vmul.f32 %v3960_v26, %v4285_v55  ;;  %v4467_v59 = vmul.f32 %v4313_v45, %v4453_v25  ;;  %v1550_v9 = vmul.f32 %v3971_v42, %v4293_v50 }
 0x1e8   :  { %6975 = vst [vmem:[#allocation93_spill] sm:$0xff] %v4453_v25  ;;  %6976 = vst [vmem:[#allocation94_spill] sm:$0xff] %v4459_v10  ;;  %3208 = vmatprep.mubr.bf16.mxu0 %v487_v35  ;;  %3240 = vmatprep.mubr.bf16.mxu1 %v495_v15  ;;  %v1565_v42 = vmul.f32 %v3956_v20, %v4289_v62 }
 0x1e9   :  { %6977 = vst [vmem:[#allocation95_spill] sm:$0xff] %v4467_v59 }
 0x1ea   :  { %1587 = vadd.xlane.f32.xlu0 %v1549_v14  ;;  %v4473_v47 = vpop.f32.mrb[28].mxu0  ;;  %v4477_v35 = vpop.f32.mrb[28].mxu1 }
 0x1eb   :  { %1589 = vadd.xlane.f32.xlu1 %v1550_v9  ;;  %v4475_v26 = vpop.f32.mrb[29].mxu0  ;;  %6978 = vst [vmem:[#allocation96_spill] sm:$0xff] %v4477_v35  ;;  %3209 = vmatmul.mubr.bf16.gmra.mrb[40].mxu0 %v488_v36  ;;  %v4481_v10 = vmul.f32 %v4473_v47, %v4411_v53  ;;  %v4487_v25 = vpop.f32.mrb[29].mxu1  ;;  %v4495_v15 = vmul.f32 %v4477_v35, %v4413_v12 }
 0x1ec   :  { %v4485_v59 = vpop.f32.mrb[30].mxu0  ;;  %3241 = vmatmul.mubr.bf16.gmra.mrb[40].mxu1 %v496_v54  ;;  %v4491_v14 = vmul.f32 %v4353_v43, %v4475_v26  ;;  %v1566_v36 = vmul.f32 %v3974_v0, %v4297_v19  ;;  %v4510_v62 = vmul.f32 %v4365_v37, %v4487_v25 }
 0x1ed   :  { %6979 = vst [vmem:[#allocation97_spill] sm:$0xff] %v4481_v10  ;;  %6980 = vst [vmem:[#allocation98_spill] sm:$0xff] %v4485_v59  ;;  %v4499_v9 = vpop.f32.mrb[31].mxu0  ;;  %v4501_v10 = vpop.f32.mrb[30].mxu1  ;;  %v490_v20 = vpack.c.bf16 %v4485_v59, %v4473_v47  ;;  %v4506_v54 = vmul.f32 %v4485_v59, %v788_v5  ;;  %v1551_v59 = vmul.f32 %v4301_v52, %v4002_v32 }
 0x1ee   :  { %6981 = vst [vmem:[#allocation99_spill] sm:$0xff] %v4491_v14  ;;  %6982 = vst [vmem:[#allocation100_spill] sm:$0xff] %v4495_v15  ;;  %1619 = vadd.xlane.f32.xlu0 %v1565_v42  ;;  %v4512_v14 = vpop.f32.mrb[31].mxu1  ;;  %v489_v0 = vpack.c.bf16 %v4499_v9, %v4475_v26  ;;  %v498_v19 = vpack.c.bf16 %v4501_v10, %v4477_v35  ;;  %v4520_v15 = vmul.f32 %v4367_v6, %v4499_v9 }
 0x1ef   :  { %6983 = vst [vmem:[#allocation101_spill] sm:$0xff] %v4506_v54  ;;  %6984 = vst [vmem:[#allocation102_spill] sm:$0xff] %v4510_v62  ;;  %v4524_v54 = vmul.f32 %v4501_v10, %v4471_v27  ;;  %1621 = vadd.xlane.f32.xlu1 %v1566_v36  ;;  %v497_v42 = vpack.c.bf16 %v4512_v14, %v4487_v25  ;;  %v4530_v62 = vmul.f32 %v4387_v29, %v4512_v14 }
 0x1f0   :  { %3212 = vmatprep.mubr.bf16.mxu0 %v489_v0  ;;  %v1552_v35 = vmul.f32 %v4309_v8, %v4013_v7  ;;  %v1567_v36 = vmul.f32 %v4305_v51, %v4006_v11  ;;  %v1553_v32 = vmul.f32 %v3997_v1, %v4317_v41  ;;  %v1554_v0 = vmul.f32 %v4008_v3, %v4327_v49  ;;  %v6988_v51 = vld [vmem:[#allocation80_spill] sm:$0xff] }
 0x1f1   :  { %6985 = vst [vmem:[#allocation103_spill] sm:$0xff] %v4524_v54  ;;  %3244 = vmatprep.mubr.bf16.mxu1 %v497_v42  ;;  %v1568_v54 = vmul.f32 %v4313_v45, %v4018_v24  ;;  %v1569_v7 = vmul.f32 %v3993_v31, %v4323_v58  ;;  %v1570_v11 = vmul.f32 %v4011_v18, %v4347_v16  ;;  %v6991_v58 = vld [vmem:[#allocation11_spill] sm:$0xff] }
 0x1f2   :  { %1591 = vadd.xlane.f32.xlu0 %v1551_v59  ;;  %v1555_v24 = vmul.f32 %v4353_v43, %v4040_v22  ;;  %v1556_v59 = vmul.f32 %v4367_v6, %v4049_v17  ;;  %v1571_v1 = vmul.f32 %v4365_v37, %v4044_v23  ;;  %v1572_v3 = vmul.f32 %v4387_v29, %v4060_v39  ;;  %v6986_v23 = vld [vmem:[#allocation18_spill] sm:$0xff]  ;;  %v6994_v43 = vld [vmem:[#allocation21_spill] sm:$0xff] }
 0x1f3   :  { %1593 = vadd.xlane.f32.xlu1 %v1552_v35  ;;  %3213 = vmatmul.mubr.bf16.gmra.mrb[44].mxu0 %v490_v20  ;;  %v1557_v31 = vmul.f32 %v4037_v40, %v4411_v53  ;;  %v1558_v18 = vmul.f32 %v4046_v4, %v788_v5  ;;  %v1573_v22 = vmul.f32 %v4033_v34, %v4413_v12  ;;  %v6987_v40 = vld [vmem:[#allocation78_spill] sm:$0xff]  ;;  %v6989_v34 = vld [vmem:[#allocation5_spill] sm:$0xff] }
 0x1f4   :  { %3245 = vmatmul.mubr.bf16.gmra.mrb[44].mxu1 %v498_v19  ;;  %v1574_v17 = vmul.f32 %v4051_v30, %v4471_v27  ;;  %v1709_v39 = vmul.f32 %v4329_v63, %v4253_v46  ;;  %v1710_v16 = vmul.f32 %v6986_v23, %v4261_v61  ;;  %v1707_v4 = vmul.f32 %v6987_v40, %v4333_v21  ;;  %v6995_v27 = vld [vmem:[#allocation24_spill] sm:$0xff] }
 0x1f5   :  { %v1708_v45 = vmul.f32 %v6988_v51, %v4355_v44  ;;  %v1313_v41 = vsub.s32 1, %v6989_v34  ;;  %v1713_v46 = vmul.f32 %v4369_v13, %v4285_v55  ;;  %v1714_v61 = vmul.f32 %v4377_v48, %v4293_v50  ;;  %v6996_v55 = vld [vmem:[#allocation43_spill] sm:$0xff] }
 0x1f6   :  { %1623 = vadd.xlane.f32.xlu0 %v1567_v36  ;;  %v1711_v12 = vmul.f32 %v4269_v2, %v6994_v43  ;;  %v1712_v53 = vmul.f32 %v4277_v60, %v6995_v27  ;;  %v1715_v20 = vmul.f32 %v4301_v52, %v4417_v38 }
 0x1f7   :  { %1625 = vadd.xlane.f32.xlu1 %v1568_v54  ;;  %v4579_v49 = vrot.slane %v6991_v58, %v1313_v41  ;;  %v1716_v54 = vmul.f32 %v4309_v8, %v4437_v57 }
 0x1f9   :  { %6992 = vst [vmem:[#allocation78_spill] sm:$0xff] %v4579_v49 }
 0x1fa   :  { %1595 = vadd.xlane.f32.xlu0 %v1553_v32 }
 0x1fb   :  { %1597 = vadd.xlane.f32.xlu1 %v1554_v0 }
 0x1fe   :  { %1627 = vadd.xlane.f32.xlu0 %v1569_v7 }
 0x1ff   :  { %1629 = vadd.xlane.f32.xlu1 %v1570_v11 }
 0x202   :  { %1599 = vadd.xlane.f32.xlu0 %v1555_v24 }
 0x203   :  { %1601 = vadd.xlane.f32.xlu1 %v1556_v59 }
 0x206   :  { %1631 = vadd.xlane.f32.xlu0 %v1571_v1 }
 0x207   :  { %1633 = vadd.xlane.f32.xlu1 %v1572_v3 }
 0x20a   :  { %1603 = vadd.xlane.f32.xlu0 %v1557_v31 }
 0x20b   :  { %1605 = vadd.xlane.f32.xlu1 %v1558_v18 }
 0x20e   :  { %1635 = vadd.xlane.f32.xlu0 %v1573_v22 }
 0x20f   :  { %1637 = vadd.xlane.f32.xlu1 %v1574_v17 }
 0x212   :  { %1743 = vadd.xlane.f32.xlu0 %v1709_v39 }
 0x213   :  { %1745 = vadd.xlane.f32.xlu1 %v1710_v16 }
 0x216   :  { %1739 = vadd.xlane.f32.xlu0 %v1707_v4 }
 0x217   :  { %1741 = vadd.xlane.f32.xlu1 %v1708_v45 }
 0x218   :  { %v4572_v30 = vpop.xlane.xlu1 %1305 }
 0x219   :  { %6990 = vst [vmem:[#allocation18_spill] sm:$0xff] %v4572_v30 }
 0x21a   :  { %1751 = vadd.xlane.f32.xlu0 %v1713_v46  ;;  %v7025_v46 = vld [vmem:[#allocation17_spill] sm:$0xff] }
 0x21b   :  { %v4581_v37 = vpop.xlane.xlu0 %1307  ;;  %1753 = vadd.xlane.f32.xlu1 %v1714_v61  ;;  %v1477_v61 = vsub.s32 2, %v6989_v34 }
 0x21c   :  { %6993 = vst [vmem:[#allocation80_spill] sm:$0xff] %v4581_v37  ;;  %v1310_v6 = vpop.xlane.xlu1 %1309  ;;  %v7097_v37 = vld [vmem:[#allocation101_spill] sm:$0xff] }
 0x21d   :  { %v1346_v29 = vmul.f32 %v4579_v49, %v1310_v6  ;;  %v7100_v49 = vld [vmem:[#allocation81_spill] sm:$0xff] }
 0x21e   :  { %1747 = vadd.xlane.f32.xlu0 %v1711_v12 }
 0x21f   :  { %v1378_v5 = vadd.f32 %v1346_v29, %v6996_v55  ;;  %v4589_v50 = vpop.xlane.xlu0 %1411  ;;  %1749 = vadd.xlane.f32.xlu1 %v1712_v53  ;;  %v7028_v29 = vld [vmem:[#allocation20_spill] sm:$0xff]  ;;  %v4660_v53 = vrot.slane %v6991_v58, %v1477_v61 }
 0x220   :  { %6997 = vst [vmem:[#allocation11_spill] sm:$0xff] %v4589_v50  ;;  %v4591_v35 = vpop.xlane.xlu1 %1413 }
 0x221   :  { %6998 = vst [vmem:[#allocation21_spill] sm:$0xff] %v4591_v35  ;;  %7029 = vst [vmem:[#allocation20_spill] sm:$0xff] %v4660_v53 }
 0x222   :  { %1755 = vadd.xlane.f32.xlu0 %v1715_v20 }
 0x223   :  { %v4597_v2 = vpop.xlane.xlu0 %1415  ;;  %1757 = vadd.xlane.f32.xlu1 %v1716_v54 }
 0x224   :  { %6999 = vst [vmem:[#allocation24_spill] sm:$0xff] %v4597_v2  ;;  %v4599_v19 = vpop.xlane.xlu1 %1417 }
 0x225   :  { %7000 = vst [vmem:[#allocation43_spill] sm:$0xff] %v4599_v19 }
 0x227   :  { %v4601_v60 = vpop.xlane.xlu0 %1419 }
 0x228   :  { %7001 = vst [vmem:[#allocation104_spill] sm:$0xff] %v4601_v60  ;;  %v4603_v42 = vpop.xlane.xlu1 %1421 }
 0x229   :  { %7002 = vst [vmem:[#allocation105_spill] sm:$0xff] %v4603_v42 }
 0x22b   :  { %v4605_v36 = vpop.xlane.xlu0 %1423 }
 0x22c   :  { %7003 = vst [vmem:[#allocation106_spill] sm:$0xff] %v4605_v36  ;;  %v4607_v32 = vpop.xlane.xlu1 %1425 }
 0x22d   :  { %7004 = vst [vmem:[#allocation107_spill] sm:$0xff] %v4607_v32  ;;  %v7088_v32 = vld [vmem:[#allocation90_spill] sm:$0xff] }
 0x22f   :  { %v4609_v0 = vpop.xlane.xlu0 %1427 }
 0x230   :  { %7005 = vst [vmem:[#allocation108_spill] sm:$0xff] %v4609_v0  ;;  %v4611_v52 = vpop.xlane.xlu1 %1429 }
 0x231   :  { %7006 = vst [vmem:[#allocation109_spill] sm:$0xff] %v4611_v52 }
 0x233   :  { %v4613_v7 = vpop.xlane.xlu0 %1431 }
 0x234   :  { %7007 = vst [vmem:[#allocation110_spill] sm:$0xff] %v4613_v7  ;;  %v4615_v8 = vpop.xlane.xlu1 %1433  ;;  %v7085_v7 = vld [vmem:[#allocation87_spill] sm:$0xff] }
 0x235   :  { %7008 = vst [vmem:[#allocation111_spill] sm:$0xff] %v4615_v8 }
 0x237   :  { %v4617_v11 = vpop.xlane.xlu0 %1435 }
 0x238   :  { %7009 = vst [vmem:[#allocation112_spill] sm:$0xff] %v4617_v11  ;;  %v4619_v24 = vpop.xlane.xlu1 %1437 }
 0x239   :  { %7010 = vst [vmem:[#allocation113_spill] sm:$0xff] %v4619_v24 }
 0x23b   :  { %v4621_v59 = vpop.xlane.xlu0 %1439 }
 0x23c   :  { %7011 = vst [vmem:[#allocation114_spill] sm:$0xff] %v4621_v59  ;;  %v4623_v1 = vpop.xlane.xlu1 %1441 }
 0x23d   :  { %7012 = vst [vmem:[#allocation115_spill] sm:$0xff] %v4623_v1 }
 0x23f   :  { %v4625_v3 = vpop.xlane.xlu0 %1443 }
 0x240   :  { %7013 = vst [vmem:[#allocation116_spill] sm:$0xff] %v4625_v3  ;;  %v4627_v31 = vpop.xlane.xlu1 %1445 }
 0x241   :  { %7014 = vst [vmem:[#allocation117_spill] sm:$0xff] %v4627_v31 }
 0x243   :  { %v4629_v18 = vpop.xlane.xlu0 %1447 }
 0x244   :  { %7015 = vst [vmem:[#allocation118_spill] sm:$0xff] %v4629_v18  ;;  %v4631_v22 = vpop.xlane.xlu1 %1449  ;;  %v7064_v18 = vld [vmem:[#allocation96_spill] sm:$0xff] }
 0x245   :  { %7016 = vst [vmem:[#allocation119_spill] sm:$0xff] %v4631_v22 }
 0x247   :  { %v4633_v17 = vpop.xlane.xlu0 %1451 }
 0x248   :  { %7017 = vst [vmem:[#allocation120_spill] sm:$0xff] %v4633_v17  ;;  %v4635_v39 = vpop.xlane.xlu1 %1453 }
 0x249   :  { %7018 = vst [vmem:[#allocation121_spill] sm:$0xff] %v4635_v39 }
 0x24b   :  { %v4637_v16 = vpop.xlane.xlu0 %1455 }
 0x24c   :  { %7019 = vst [vmem:[#allocation122_spill] sm:$0xff] %v4637_v16  ;;  %v4639_v40 = vpop.xlane.xlu1 %1457 }
 0x24d   :  { %7020 = vst [vmem:[#allocation123_spill] sm:$0xff] %v4639_v40 }
 0x24f   :  { %v4641_v4 = vpop.xlane.xlu0 %1459  ;;  %821 = vxpose.xlu0.b32.start [1/16] %v4333_v21, 128 }
 0x250   :  { %7021 = vst [vmem:[#allocation124_spill] sm:$0xff] %v4641_v4  ;;  %v4644_v51 = vpop.xlane.xlu1 %1461 }
 0x251   :  { %7022 = vst [vmem:[#allocation125_spill] sm:$0xff] %v4644_v51  ;;  %v7034_v51 = vld [vmem:[#allocation19_spill] sm:$0xff] }
 0x253   :  { %v4646_v45 = vpop.xlane.xlu0 %1463  ;;  %822 = vxpose.xlu0.b32.cont [2/16] %v4355_v44, 128 }
 0x254   :  { %7023 = vst [vmem:[#allocation126_spill] sm:$0xff] %v4646_v45  ;;  %v4649_v41 = vpop.xlane.xlu1 %1465 }
 0x255   :  { %7024 = vst [vmem:[#allocation127_spill] sm:$0xff] %v4649_v41  ;;  %v7031_v41 = vld [vmem:[#allocation16_spill] sm:$0xff] }
 0x256   :  { %853 = vxpose.xlu1.b32.start [1/16] %v7025_v46, 128 }
 0x257   :  { %v4653_v6 = vpop.xlane.xlu0 %1467  ;;  %823 = vxpose.xlu0.b32.cont [3/16] %v4329_v63, 128 }
 0x258   :  { %7026 = vst [vmem:[#allocation17_spill] sm:$0xff] %v4653_v6  ;;  %v4656_v12 = vpop.xlane.xlu1 %1469 }
 0x259   :  { %7027 = vst [vmem:[#allocation128_spill] sm:$0xff] %v4656_v12 }
 0x25a   :  { %854 = vxpose.xlu1.b32.cont [2/16] %v7028_v29, 128 }
 0x25b   :  { %v4662_v55 = vpop.xlane.xlu0 %1471  ;;  %824 = vxpose.xlu0.b32.cont [4/16] %v6986_v23, 128 }
 0x25c   :  { %7030 = vst [vmem:[#allocation129_spill] sm:$0xff] %v4662_v55  ;;  %v1474_v20 = vpop.xlane.xlu1 %1473 }
 0x25d   :  { %v1510_v54 = vmul.f32 %v4660_v53, %v1474_v20 }
 0x25e   :  { %855 = vxpose.xlu1.b32.cont [3/16] %v7031_v41, 128 }
 0x25f   :  { %v1542_v45 = vadd.f32 %v1510_v54, %v1378_v5  ;;  %v4667_v6 = vpop.xlane.xlu0 %1575  ;;  %825 = vxpose.xlu0.b32.cont [5/16] %v6994_v43, 128  ;;  %v7039_v54 = vld [vmem:[#allocation84_spill] sm:$0xff] }
 0x260   :  { %7032 = vst [vmem:[#allocation16_spill] sm:$0xff] %v4667_v6  ;;  %v4670_v12 = vpop.xlane.xlu1 %1577 }
 0x261   :  { %7033 = vst [vmem:[#allocation130_spill] sm:$0xff] %v4670_v12 }
 0x262   :  { %856 = vxpose.xlu1.b32.cont [4/16] %v7034_v51, 128 }
 0x263   :  { %v4673_v61 = vpop.xlane.xlu0 %1607  ;;  %826 = vxpose.xlu0.b32.cont [6/16] %v6995_v27, 128 }
 0x264   :  { %7035 = vst [vmem:[#allocation19_spill] sm:$0xff] %v4673_v61  ;;  %v4676_v55 = vpop.xlane.xlu1 %1609  ;;  %v7042_v61 = vld [vmem:[#allocation22_spill] sm:$0xff] }
 0x265   :  { %7036 = vst [vmem:[#allocation131_spill] sm:$0xff] %v4676_v55 }
 0x266   :  { %857 = vxpose.xlu1.b32.cont [5/16] %v4379_v33, 128 }
 0x267   :  { %v4679_v20 = vpop.xlane.xlu0 %1579  ;;  %827 = vxpose.xlu0.b32.cont [7/16] %v4369_v13, 128 }
 0x268   :  { %7037 = vst [vmem:[#allocation132_spill] sm:$0xff] %v4679_v20  ;;  %v4682_v5 = vpop.xlane.xlu1 %1581  ;;  %v7045_v20 = vld [vmem:[#allocation83_spill] sm:$0xff] }
 0x269   :  { %7038 = vst [vmem:[#allocation133_spill] sm:$0xff] %v4682_v5 }
 0x26a   :  { %858 = vxpose.xlu1.b32.cont [6/16] %v7039_v54, 128 }
 0x26b   :  { %v4685_v6 = vpop.xlane.xlu0 %1611  ;;  %828 = vxpose.xlu0.b32.cont [8/16] %v4377_v48, 128 }
 0x26c   :  { %7040 = vst [vmem:[#allocation84_spill] sm:$0xff] %v4685_v6  ;;  %v4688_v12 = vpop.xlane.xlu1 %1613 }
 0x26d   :  { %7041 = vst [vmem:[#allocation134_spill] sm:$0xff] %v4688_v12 }
 0x26e   :  { %859 = vxpose.xlu1.b32.cont [7/16] %v7042_v61, 128 }
 0x26f   :  { %v4691_v4 = vpop.xlane.xlu0 %1583  ;;  %829 = vxpose.xlu0.b32.cont [9/16] %v4417_v38, 128 }
 0x270   :  { %7043 = vst [vmem:[#allocation22_spill] sm:$0xff] %v4691_v4  ;;  %v4694_v55 = vpop.xlane.xlu1 %1585  ;;  %v7050_v4 = vld [vmem:[#allocation93_spill] sm:$0xff] }
 0x271   :  { %7044 = vst [vmem:[#allocation135_spill] sm:$0xff] %v4694_v55  ;;  %v7052_v55 = vld [vmem:[#allocation88_spill] sm:$0xff] }
 0x272   :  { %860 = vxpose.xlu1.b32.cont [8/16] %v7045_v20, 128 }
 0x273   :  { %v4697_v40 = vpop.xlane.xlu0 %1615  ;;  %830 = vxpose.xlu0.b32.cont [10/16] %v4437_v57, 128 }
 0x274   :  { %7046 = vst [vmem:[#allocation83_spill] sm:$0xff] %v4697_v40  ;;  %v4700_v5 = vpop.xlane.xlu1 %1617  ;;  %v7054_v40 = vld [vmem:[#allocation86_spill] sm:$0xff] }
 0x275   :  { %7047 = vst [vmem:[#allocation136_spill] sm:$0xff] %v4700_v5 }
 0x276   :  { %861 = vxpose.xlu1.b32.cont [9/16] %v4429_v28, 128 }
 0x277   :  { %v4703_v6 = vpop.xlane.xlu0 %1587  ;;  %831 = vxpose.xlu0.b32.cont [11/16] %v4415_v56, 128 }
 0x278   :  { %7048 = vst [vmem:[#allocation137_spill] sm:$0xff] %v4703_v6  ;;  %v4706_v12 = vpop.xlane.xlu1 %1589  ;;  %v7057_v6 = vld [vmem:[#allocation92_spill] sm:$0xff] }
 0x279   :  { %7049 = vst [vmem:[#allocation138_spill] sm:$0xff] %v4706_v12 }
 0x27a   :  { %862 = vxpose.xlu1.b32.cont [10/16] %v7050_v4, 128 }
 0x27b   :  { %v4709_v16 = vpop.xlane.xlu0 %1619  ;;  %832 = vxpose.xlu0.b32.cont [12/16] %v7052_v55, 128 }
 0x27c   :  { %7051 = vst [vmem:[#allocation93_spill] sm:$0xff] %v4709_v16  ;;  %v4712_v39 = vpop.xlane.xlu1 %1621  ;;  %v7061_v16 = vld [vmem:[#allocation98_spill] sm:$0xff] }
 0x27d   :  { %7053 = vst [vmem:[#allocation88_spill] sm:$0xff] %v4712_v39 }
 0x27e   :  { %863 = vxpose.xlu1.b32.cont [11/16] %v7054_v40, 128 }
 0x27f   :  { %833 = vxpose.xlu0.b32.cont [13/16] %v4475_v26, 128  ;;  %v4716_v5 = vpop.xlane.xlu0 %1591 }
 0x280   :  { %7055 = vst [vmem:[#allocation86_spill] sm:$0xff] %v4716_v5  ;;  %v4718_v17 = vpop.xlane.xlu1 %1593 }
 0x281   :  { %7056 = vst [vmem:[#allocation139_spill] sm:$0xff] %v4718_v17 }
 0x282   :  { %864 = vxpose.xlu1.b32.cont [12/16] %v7057_v6, 128 }
 0x283   :  { %834 = vxpose.xlu0.b32.cont [14/16] %v4499_v9, 128  ;;  %v4724_v22 = vpop.xlane.xlu0 %1623 }
 0x284   :  { %v4722_v12 = vpop.xlane.xlu1 %1625  ;;  %7059 = vst [vmem:[#allocation140_spill] sm:$0xff] %v4724_v22 }
 0x285   :  { %7058 = vst [vmem:[#allocation92_spill] sm:$0xff] %v4722_v12 }
 0x286   :  { %865 = vxpose.xlu1.b32.cont [13/16] %v4487_v25, 128 }
 0x287   :  { %835 = vxpose.xlu0.b32.cont [15/16] %v4473_v47, 128  ;;  %v4732_v5 = vpop.xlane.xlu0 %1595 }
 0x288   :  { %v4728_v39 = vpop.xlane.xlu1 %1597  ;;  %7062 = vst [vmem:[#allocation98_spill] sm:$0xff] %v4732_v5 }
 0x289   :  { %7060 = vst [vmem:[#allocation141_spill] sm:$0xff] %v4728_v39  ;;  %v1641_v39 = vsub.s32 3, %v6989_v34 }
 0x28a   :  { %866 = vxpose.xlu1.b32.cont [14/16] %v4512_v14, 128 }
 0x28b   :  { %836 = vxpose.xlu0.b32.end [16/16] %v7061_v16, 128  ;;  %v4739_v12 = vpop.xlane.xlu0 %1627  ;;  %v4750_v5 = vrot.slane %v6991_v58, %v1641_v39 }
 0x28c   :  { %v4734_v17 = vpop.xlane.xlu1 %1629  ;;  %7066 = vst [vmem:[#allocation143_spill] sm:$0xff] %v4739_v12 }
 0x28d   :  { %7063 = vst [vmem:[#allocation142_spill] sm:$0xff] %v4734_v17  ;;  %7070 = vst [vmem:[#allocation147_spill] sm:$0xff] %v4750_v5 }
 0x28e   :  { %867 = vxpose.xlu1.b32.cont [15/16] %v7064_v18, 128 }
 0x28f   :  { %v4745_v3 = vpop.xlane.xlu0 %1599 }
 0x290   :  { %v4737_v31 = vpop.xlane.xlu1 %1601  ;;  %7068 = vst [vmem:[#allocation145_spill] sm:$0xff] %v4745_v3 }
 0x291   :  { %7065 = vst [vmem:[#allocation96_spill] sm:$0xff] %v4737_v31 }
 0x292   :  { %868 = vxpose.xlu1.b32.end [16/16] %v4501_v10, 128 }
 0x293   :  { %v4753_v24 = vpop.xlane.xlu0 %1631 }
 0x294   :  { %v4742_v22 = vpop.xlane.xlu1 %1633  ;;  %7071 = vst [vmem:[#allocation148_spill] sm:$0xff] %v4753_v24 }
 0x295   :  { %7067 = vst [vmem:[#allocation144_spill] sm:$0xff] %v4742_v22 }
 0x297   :  { %v4757_v12 = vpop.xlane.xlu0 %1603 }
 0x298   :  { %v4747_v1 = vpop.xlane.xlu1 %1605  ;;  %7073 = vst [vmem:[#allocation150_spill] sm:$0xff] %v4757_v12 }
 0x299   :  { %7069 = vst [vmem:[#allocation146_spill] sm:$0xff] %v4747_v1 }
 0x29b   :  { %v4759_v11 = vpop.xlane.xlu0 %1635 }
 0x29c   :  { %v1638_v17 = vpop.xlane.xlu1 %1637  ;;  %7074 = vst [vmem:[#allocation151_spill] sm:$0xff] %v4759_v11 }
 0x29d   :  { %v1674_v59 = vmul.f32 %v4750_v5, %v1638_v17 }
 0x29f   :  { %v4755_v31 = vadd.f32 %v1674_v59, %v1542_v45  ;;  %v4765_v3 = vpop.xlane.xlu0 %1743 }
 0x2a0   :  { %7076 = vst [vmem:[#allocation153_spill] sm:$0xff] %v4765_v3  ;;  %v4779_v12 = vpop.xlane.xlu1 %1745 }
 0x2a1   :  { %7072 = vst [vmem:[#allocation149_spill] sm:$0xff] %v4755_v31  ;;  %7080 = vst [vmem:[#allocation157_spill] sm:$0xff] %v4779_v12  ;;  %v1724_v31 = vmul.f32 %v7100_v49, %v7028_v29 }
 0x2a3   :  { %v4781_v11 = vpop.xlane.xlu0 %1739 }
 0x2a4   :  { %7081 = vst [vmem:[#allocation158_spill] sm:$0xff] %v4781_v11  ;;  %v7091_v11 = vld [vmem:[#allocation99_spill] sm:$0xff]  ;;  %v4802_v60 = vpop.xlane.xlu1 %1741 }
 0x2a5   :  { %7092 = vst [vmem:[#allocation99_spill] sm:$0xff] %v4802_v60 }
 0x2a7   :  { %v4805_v19 = vpop.xlane.xlu0 %1751 }
 0x2a8   :  { %7093 = vst [vmem:[#allocation164_spill] sm:$0xff] %v4805_v19  ;;  %v4831_v34 = vpop.xlane.xlu1 %1753 }
 0x2a9   :  { %7102 = vst [vmem:[#allocation81_spill] sm:$0xff] %v4831_v34 }
 0x2ac   :  { %v4771_v39 = vpop.f32.mrb[32].mxu1 }
 0x2ad   :  { %v4761_v22 = vpop.f32.mrb[32].mxu0  ;;  %v4773_v17 = vpop.f32.mrb[33].mxu1 }
 0x2ae   :  { %v4763_v8 = vpop.f32.mrb[33].mxu0  ;;  %7078 = vst [vmem:[#allocation155_spill] sm:$0xff] %v4773_v17  ;;  %v4775_v59 = vpop.f32.mrb[34].mxu1  ;;  %v7123_v17 = vld [vmem:[#allocation103_spill] sm:$0xff] }
 0x2af   :  { %7075 = vst [vmem:[#allocation152_spill] sm:$0xff] %v4763_v8  ;;  %v4767_v1 = vpop.f32.mrb[34].mxu0  ;;  %v4777_v45 = vpop.f32.mrb[35].mxu1 }
 0x2b0   :  { %v4769_v58 = vpop.f32.mrb[35].mxu0  ;;  %7079 = vst [vmem:[#allocation156_spill] sm:$0xff] %v4777_v45 }
 0x2b1   :  { %7077 = vst [vmem:[#allocation154_spill] sm:$0xff] %v4769_v58 }
 0x2b6   :  { %v4783_v24 = vpop.f32.mrb[36].mxu0 }
 0x2b7   :  { %7082 = vst [vmem:[#allocation159_spill] sm:$0xff] %v4783_v24  ;;  %v4785_v5 = vpop.f32.mrb[37].mxu0  ;;  %v4787_v3 = vpop.f32.mrb[36].mxu1  ;;  %v7116_v24 = vld [vmem:[#allocation91_spill] sm:$0xff] }
 0x2b8   :  { %7083 = vst [vmem:[#allocation160_spill] sm:$0xff] %v4785_v5  ;;  %7084 = vst [vmem:[#allocation161_spill] sm:$0xff] %v4787_v3  ;;  %1759 = vadd.xlane.f32.xlu0 %v7085_v7  ;;  %v4790_v52 = vpop.f32.mrb[38].mxu0  ;;  %v4792_v0 = vpop.f32.mrb[37].mxu1 }
 0x2b9   :  { %7086 = vst [vmem:[#allocation87_spill] sm:$0xff] %v4790_v52  ;;  %7087 = vst [vmem:[#allocation162_spill] sm:$0xff] %v4792_v0  ;;  %1761 = vadd.xlane.f32.xlu1 %v7088_v32  ;;  %v4795_v36 = vpop.f32.mrb[39].mxu0  ;;  %v4797_v42 = vpop.f32.mrb[38].mxu1  ;;  %v7095_v32 = vld [vmem:[#allocation97_spill] sm:$0xff] }
 0x2ba   :  { %7089 = vst [vmem:[#allocation90_spill] sm:$0xff] %v4795_v36  ;;  %v4799_v12 = vpop.f32.mrb[39].mxu1  ;;  %v7105_v0 = vld [vmem:[#allocation13_spill] sm:$0xff] }
 0x2bb   :  { %7090 = vst [vmem:[#allocation163_spill] sm:$0xff] %v4799_v12  ;;  %v1726_v5 = vmul.f32 %v7034_v51, %v7105_v0 }
 0x2bc   :  { %1763 = vadd.xlane.f32.xlu0 %v7091_v11 }
 0x2bd   :  { %1765 = vadd.xlane.f32.xlu1 %v4520_v15  ;;  %v7099_v15 = vld [vmem:[#allocation79_spill] sm:$0xff] }
 0x2be   :  { %v4807_v7 = vpop.f32.mrb[40].mxu0  ;;  %v1723_v19 = vmul.f32 %v7099_v15, %v7025_v46 }
 0x2bf   :  { %7094 = vst [vmem:[#allocation165_spill] sm:$0xff] %v4807_v7  ;;  %v4809_v2 = vpop.f32.mrb[41].mxu0  ;;  %v4811_v35 = vpop.f32.mrb[40].mxu1  ;;  %v7103_v7 = vld [vmem:[#allocation82_spill] sm:$0xff] }
 0x2c0   :  { %1767 = vadd.xlane.f32.xlu0 %v7095_v32  ;;  %v4814_v53 = vpop.f32.mrb[42].mxu0  ;;  %v4816_v50 = vpop.f32.mrb[41].mxu1 }
 0x2c1   :  { %7096 = vst [vmem:[#allocation97_spill] sm:$0xff] %v4814_v53  ;;  %1769 = vadd.xlane.f32.xlu1 %v7097_v37  ;;  %v4819_v11 = vpop.f32.mrb[43].mxu0  ;;  %v4821_v60 = vpop.f32.mrb[42].mxu1  ;;  %v1725_v37 = vmul.f32 %v7031_v41, %v7103_v7  ;;  %v7109_v7 = vld [vmem:[#allocation14_spill] sm:$0xff] }
 0x2c2   :  { %7098 = vst [vmem:[#allocation101_spill] sm:$0xff] %v4819_v11  ;;  %v4825_v30 = vpop.f32.mrb[43].mxu1  ;;  %v4829_v32 = vpop.xlane.xlu0 %1747  ;;  %v1727_v34 = vmul.f32 %v7109_v7, %v4379_v33 }
 0x2c3   :  { %7101 = vst [vmem:[#allocation79_spill] sm:$0xff] %v4829_v32 }
 0x2c4   :  { %1771 = vadd.xlane.f32.xlu0 %v1723_v19 }
 0x2c5   :  { %1773 = vadd.xlane.f32.xlu1 %v1724_v31 }
 0x2c6   :  { %v4835_v53 = vpop.f32.mrb[44].mxu0  ;;  %v4855_v0 = vpop.xlane.xlu0 %1755 }
 0x2c7   :  { %7104 = vst [vmem:[#allocation82_spill] sm:$0xff] %v4835_v53  ;;  %v4839_v15 = vpop.f32.mrb[45].mxu0  ;;  %v4841_v36 = vpop.f32.mrb[44].mxu1  ;;  %7110 = vst [vmem:[#allocation14_spill] sm:$0xff] %v4855_v0  ;;  %v7117_v0 = vld [vmem:[#allocation95_spill] sm:$0xff] }
 0x2c8   :  { %7106 = vst [vmem:[#allocation13_spill] sm:$0xff] %v4839_v15  ;;  %1775 = vadd.xlane.f32.xlu0 %v1725_v37  ;;  %v4843_v49 = vpop.f32.mrb[46].mxu0  ;;  %v4845_v19 = vpop.f32.mrb[45].mxu1  ;;  %v7111_v15 = vld [vmem:[#allocation15_spill] sm:$0xff] }
 0x2c9   :  { %7107 = vst [vmem:[#allocation166_spill] sm:$0xff] %v4843_v49  ;;  %1777 = vadd.xlane.f32.xlu1 %v1726_v5  ;;  %v4847_v31 = vpop.f32.mrb[47].mxu0  ;;  %v4849_v32 = vpop.f32.mrb[46].mxu1  ;;  %v1728_v3 = vmul.f32 %v7111_v15, %v7039_v54  ;;  %v7113_v5 = vld [vmem:[#allocation23_spill] sm:$0xff] }
 0x2ca   :  { %7108 = vst [vmem:[#allocation167_spill] sm:$0xff] %v4847_v31  ;;  %v4853_v53 = vpop.f32.mrb[47].mxu1  ;;  %v4859_v37 = vpop.xlane.xlu1 %1749  ;;  %v7114_v31 = vld [vmem:[#allocation85_spill] sm:$0xff] }
 0x2cb   :  { %7112 = vst [vmem:[#allocation15_spill] sm:$0xff] %v4859_v37 }
 0x2cc   :  { %1779 = vadd.xlane.f32.xlu0 %v1727_v34  ;;  %v7118_v34 = vld [vmem:[#allocation89_spill] sm:$0xff] }
 0x2cd   :  { %1781 = vadd.xlane.f32.xlu1 %v1728_v3  ;;  %v7119_v3 = vld [vmem:[#allocation94_spill] sm:$0xff] }
 0x2ce   :  { %v4865_v52 = vpop.xlane.xlu1 %1757 }
 0x2cf   :  { %v4861_v49 = vpop.trf.xlu0  ;;  %7115 = vst [vmem:[#allocation23_spill] sm:$0xff] %v4865_v52 }
 0x2d0   :  { %1783 = vadd.xlane.f32.xlu0 %v7113_v5 }
 0x2d1   :  { %1785 = vadd.xlane.f32.xlu1 %v7114_v31  ;;  %v7121_v31 = vld [vmem:[#allocation102_spill] sm:$0xff] }
 0x2d3   :  { %v4867_v7 = vpop.trf.xlu0 }
 0x2d4   :  { %1787 = vadd.xlane.f32.xlu0 %v7116_v24  ;;  %v1872_v58 = vmul.f32 %v4867_v7, %v4355_v44 }
 0x2d5   :  { %1789 = vadd.xlane.f32.xlu1 %v7117_v0  ;;  %v7122_v0 = vld [vmem:[#allocation100_spill] sm:$0xff] }
 0x2d6   :  { %v4871_v45 = vpop.trf.xlu1 }
 0x2d7   :  { %v4873_v15 = vpop.trf.xlu0 }
 0x2d8   :  { %1791 = vadd.xlane.f32.xlu0 %v7118_v34  ;;  %v1871_v34 = vmul.f32 %v4861_v49, %v4333_v21  ;;  %v1873_v21 = vmul.f32 %v4329_v63, %v4873_v15 }
 0x2d9   :  { %1793 = vadd.xlane.f32.xlu1 %v7119_v3 }
 0x2da   :  { %v4877_v37 = vpop.trf.xlu1 }
 0x2db   :  { %7120 = vst [vmem:[#allocation85_spill] sm:$0xff] %v4877_v37  ;;  %v4879_v5 = vpop.trf.xlu0 }
 0x2dc   :  { %1795 = vadd.xlane.f32.xlu0 %v7121_v31 }
 0x2dd   :  { %1797 = vadd.xlane.f32.xlu1 %v4530_v62  ;;  %v1887_v62 = vmul.f32 %v4871_v45, %v7025_v46 }
 0x2de   :  { %v4883_v52 = vpop.trf.xlu1 }
 0x2df   :  { %v4885_v24 = vpop.trf.xlu0 }
 0x2e0   :  { %1799 = vadd.xlane.f32.xlu0 %v7122_v0 }
 0x2e1   :  { %1801 = vadd.xlane.f32.xlu1 %v7123_v17  ;;  %v1888_v17 = vmul.f32 %v4877_v37, %v7028_v29  ;;  %v1889_v29 = vmul.f32 %v7031_v41, %v4883_v52 }
 0x2e2   :  { %v4891_v3 = vpop.trf.xlu1 }
 0x2e3   :  { %v4895_v8 = vpop.trf.xlu0 }
 0x2e4   :  { %1903 = vadd.xlane.f32.xlu0 %v1871_v34  ;;  %v1874_v34 = vmul.f32 %v6986_v23, %v4879_v5  ;;  %v1875_v23 = vmul.f32 %v4885_v24, %v6994_v43 }
 0x2e5   :  { %1905 = vadd.xlane.f32.xlu1 %v1872_v58 }
 0x2e6   :  { %v4899_v31 = vpop.trf.xlu1 }
 0x2e7   :  { %v4903_v0 = vpop.trf.xlu0 }
 0x2e8   :  { %1935 = vadd.xlane.f32.xlu0 %v1887_v62  ;;  %v1890_v62 = vmul.f32 %v7034_v51, %v4891_v3  ;;  %v1891_v51 = vmul.f32 %v4899_v31, %v4379_v33 }
 0x2e9   :  { %1937 = vadd.xlane.f32.xlu1 %v1888_v17 }
 0x2ea   :  { %v874_v44 = vpop.trf.xlu1 }
 0x2eb   :  { %v4910_v58 = vmul.f32 %v874_v44, %v4799_v12  ;;  %v4912_v46 = vpop.trf.xlu0 }
 0x2ec   :  { %1907 = vadd.xlane.f32.xlu0 %v1873_v21  ;;  %v1876_v21 = vmul.f32 %v4895_v8, %v6995_v27  ;;  %v1877_v27 = vmul.f32 %v4369_v13, %v4903_v0 }
 0x2ed   :  { %7124 = vst [vmem:[#allocation91_spill] sm:$0xff] %v4910_v58  ;;  %1909 = vadd.xlane.f32.xlu1 %v1874_v34 }
 0x2ee   :  { %v4916_v37 = vpop.trf.xlu1 }
 0x2ef   :  { %v845_v63 = vpop.trf.xlu0  ;;  %v1893_v33 = vmul.f32 %v7042_v61, %v4916_v37 }
 0x2f0   :  { %v4921_v17 = vmul.f32 %v845_v63, %v4809_v2  ;;  %1939 = vadd.xlane.f32.xlu0 %v1889_v29 }
 0x2f1   :  { %1941 = vadd.xlane.f32.xlu1 %v1890_v62  ;;  %v1892_v62 = vmul.f32 %v874_v44, %v7039_v54 }
 0x2f2   :  { %v876_v12 = vpop.trf.xlu1 }
 0x2f3   :  { %v4928_v41 = vmul.f32 %v4797_v42, %v876_v12  ;;  %v846_v34 = vpop.trf.xlu0  ;;  %v1894_v44 = vmul.f32 %v7045_v20, %v876_v12 }
 0x2f4   :  { %v4931_v58 = vmul.f32 %v846_v34, %v4819_v11  ;;  %1911 = vadd.xlane.f32.xlu0 %v1875_v23  ;;  %v1878_v23 = vmul.f32 %v4377_v48, %v4912_v46  ;;  %v1879_v48 = vmul.f32 %v845_v63, %v4417_v38 }
 0x2f5   :  { %7125 = vst [vmem:[#allocation95_spill] sm:$0xff] %v4928_v41  ;;  %1913 = vadd.xlane.f32.xlu1 %v1876_v21 }
 0x2f6   :  { %v877_v29 = vpop.trf.xlu1 }
 0x2f7   :  { %v4937_v43 = vmul.f32 %v877_v29, %v4816_v50  ;;  %v4941_v41 = vpop.trf.xlu0  ;;  %v1895_v61 = vmul.f32 %v877_v29, %v4429_v28 }
 0x2f8   :  { %1943 = vadd.xlane.f32.xlu0 %v1891_v51  ;;  %v1881_v38 = vmul.f32 %v4415_v56, %v4941_v41 }
 0x2f9   :  { %1945 = vadd.xlane.f32.xlu1 %v1892_v62 }
 0x2fa   :  { %v878_v11 = vpop.trf.xlu1 }
 0x2fb   :  { %v4946_v21 = vmul.f32 %v878_v11, %v4825_v30  ;;  %v4954_v13 = vpop.trf.xlu0 }
 0x2fc   :  { %1915 = vadd.xlane.f32.xlu0 %v1877_v27  ;;  %v1882_v63 = vmul.f32 %v7052_v55, %v4954_v13 }
 0x2fd   :  { %7126 = vst [vmem:[#allocation89_spill] sm:$0xff] %v4946_v21  ;;  %1917 = vadd.xlane.f32.xlu1 %v1878_v23  ;;  %v1880_v21 = vmul.f32 %v846_v34, %v4437_v57  ;;  %v1896_v23 = vmul.f32 %v878_v11, %v7050_v4 }
 0x2fe   :  { %v879_v54 = vpop.trf.xlu1 }
 0x2ff   :  { %v4952_v51 = vmul.f32 %v4811_v35, %v879_v54  ;;  %v4962_v12 = vpop.trf.xlu0  ;;  %v1897_v4 = vmul.f32 %v7054_v40, %v879_v54 }
 0x300   :  { %1947 = vadd.xlane.f32.xlu0 %v1893_v33  ;;  %v1883_v56 = vmul.f32 %v4962_v12, %v4475_v26 }
 0x301   :  { %1949 = vadd.xlane.f32.xlu1 %v1894_v44 }
 0x302   :  { %v880_v62 = vpop.trf.xlu1 }
 0x303   :  { %v4959_v27 = vmul.f32 %v4821_v60, %v880_v62  ;;  %v4975_v28 = vpop.trf.xlu0  ;;  %v1898_v29 = vmul.f32 %v7057_v6, %v880_v62 }
 0x304   :  { %1919 = vadd.xlane.f32.xlu0 %v1879_v48  ;;  %v1884_v48 = vmul.f32 %v4975_v28, %v4499_v9 }
 0x305   :  { %1921 = vadd.xlane.f32.xlu1 %v1880_v21 }
 0x306   :  { %v881_v20 = vpop.trf.xlu1 }
 0x307   :  { %v4966_v33 = vmul.f32 %v881_v20, %v4845_v19  ;;  %v851_v55 = vpop.trf.xlu0  ;;  %v1899_v40 = vmul.f32 %v881_v20, %v4487_v25  ;;  %v2037_v25 = vmul.f32 %v4761_v22, %v4873_v15  ;;  %v7128_v20 = vld [vmem:[#allocation154_spill] sm:$0xff]  ;;  %v7129_v15 = vld [vmem:[#allocation155_spill] sm:$0xff] }
 0x308   :  { %1951 = vadd.xlane.f32.xlu0 %v1895_v61  ;;  %v1885_v62 = vmul.f32 %v4473_v47, %v851_v55  ;;  %v2053_v47 = vmul.f32 %v4771_v39, %v4883_v52  ;;  %v7132_v52 = vld [vmem:[#allocation159_spill] sm:$0xff] }
 0x309   :  { %1953 = vadd.xlane.f32.xlu1 %v1896_v23 }
 0x30a   :  { %v882_v57 = vpop.trf.xlu1 }
 0x30b   :  { %v4973_v34 = vmul.f32 %v882_v57, %v4853_v53  ;;  %v1900_v6 = vmul.f32 %v882_v57, %v4512_v14  ;;  %v852_v54 = vpop.trf.xlu0  ;;  %v2038_v14 = vmul.f32 %v4767_v1, %v4879_v5  ;;  %v2051_v5 = vmul.f32 %v4871_v45, %v7129_v15  ;;  %v7130_v57 = vld [vmem:[#allocation156_spill] sm:$0xff] }
 0x30c   :  { %1923 = vadd.xlane.f32.xlu0 %v1881_v38  ;;  %v1886_v26 = vmul.f32 %v7061_v16, %v852_v54  ;;  %v2054_v16 = vmul.f32 %v4775_v59, %v4891_v3  ;;  %v2036_v38 = vmul.f32 %v4867_v7, %v7128_v20  ;;  %v2041_v3 = vmul.f32 %v7132_v52, %v4903_v0  ;;  %v7136_v45 = vld [vmem:[#allocation160_spill] sm:$0xff]  ;;  %v7138_v0 = vld [vmem:[#allocation162_spill] sm:$0xff] }
 0x30d   :  { %1925 = vadd.xlane.f32.xlu1 %v1882_v63  ;;  %v7131_v63 = vld [vmem:[#allocation85_spill] sm:$0xff] }
 0x30e   :  { %v883_v11 = vpop.trf.xlu1 }
 0x30f   :  { %v4980_v21 = vmul.f32 %v4841_v36, %v883_v11  ;;  %v1901_v9 = vmul.f32 %v7064_v18, %v883_v11  ;;  %v7127_v18 = vld [vmem:[#allocation152_spill] sm:$0xff]  ;;  %v7133_v11 = vld [vmem:[#allocation87_spill] sm:$0xff] }
 0x310   :  { %1955 = vadd.xlane.f32.xlu0 %v1897_v4  ;;  %v2052_v4 = vmul.f32 %v7131_v63, %v7130_v57 }
 0x311   :  { %1957 = vadd.xlane.f32.xlu1 %v1898_v29  ;;  %v2042_v29 = vmul.f32 %v7133_v11, %v4912_v46  ;;  %v7139_v46 = vld [vmem:[#allocation97_spill] sm:$0xff] }
 0x312   :  { %v884_v44 = vpop.trf.xlu1 }
 0x313   :  { %v4987_v61 = vmul.f32 %v4849_v32, %v884_v44  ;;  %v1902_v23 = vmul.f32 %v4501_v10, %v884_v44  ;;  %v2035_v10 = vmul.f32 %v4861_v49, %v7127_v18  ;;  %v7134_v49 = vld [vmem:[#allocation161_spill] sm:$0xff] }
 0x314   :  { %1927 = vadd.xlane.f32.xlu0 %v1883_v56  ;;  %v2057_v7 = vmul.f32 %v7134_v49, %v4916_v37  ;;  %v7135_v56 = vld [vmem:[#allocation90_spill] sm:$0xff]  ;;  %v7140_v37 = vld [vmem:[#allocation165_spill] sm:$0xff] }
 0x315   :  { %1929 = vadd.xlane.f32.xlu1 %v1884_v48  ;;  %v2040_v44 = vmul.f32 %v4895_v8, %v7135_v56  ;;  %v2039_v48 = vmul.f32 %v4885_v24, %v7136_v45 }
 0x318   :  { %1959 = vadd.xlane.f32.xlu0 %v1899_v40  ;;  %v7137_v40 = vld [vmem:[#allocation91_spill] sm:$0xff] }
 0x319   :  { %1961 = vadd.xlane.f32.xlu1 %v1900_v6  ;;  %v2055_v6 = vmul.f32 %v4899_v31, %v7138_v0 }
 0x31c   :  { %1931 = vadd.xlane.f32.xlu0 %v1885_v62  ;;  %v2046_v62 = vmul.f32 %v7139_v46, %v4954_v13  ;;  %v7142_v13 = vld [vmem:[#allocation82_spill] sm:$0xff] }
 0x31d   :  { %1933 = vadd.xlane.f32.xlu1 %v1886_v26  ;;  %v2045_v26 = vmul.f32 %v7140_v37, %v4941_v41 }
 0x320   :  { %1963 = vadd.xlane.f32.xlu0 %v1901_v9  ;;  %v7141_v9 = vld [vmem:[#allocation166_spill] sm:$0xff] }
 0x321   :  { %1965 = vadd.xlane.f32.xlu1 %v1902_v23  ;;  %v2050_v23 = vmul.f32 %v7141_v9, %v852_v54 }
 0x324   :  { %2071 = vadd.xlane.f32.xlu0 %v2037_v25  ;;  %v2049_v25 = vmul.f32 %v7142_v13, %v851_v55 }
 0x325   :  { %2073 = vadd.xlane.f32.xlu1 %v2038_v14 }
 0x328   :  { %2103 = vadd.xlane.f32.xlu0 %v2053_v47  ;;  %v7143_v47 = vld [vmem:[#allocation167_spill] sm:$0xff] }
 0x329   :  { %2105 = vadd.xlane.f32.xlu1 %v2054_v16  ;;  %v2048_v41 = vmul.f32 %v4975_v28, %v7143_v47 }
 0x32c   :  { %2067 = vadd.xlane.f32.xlu0 %v2035_v10 }
 0x32d   :  { %2069 = vadd.xlane.f32.xlu1 %v2036_v38 }
 0x330   :  { %2099 = vadd.xlane.f32.xlu0 %v2051_v5 }
 0x331   :  { %2101 = vadd.xlane.f32.xlu1 %v2052_v4 }
 0x334   :  { %2079 = vadd.xlane.f32.xlu0 %v2041_v3 }
 0x335   :  { %2081 = vadd.xlane.f32.xlu1 %v2042_v29 }
 0x338   :  { %2111 = vadd.xlane.f32.xlu0 %v2057_v7 }
 0x339   :  { %2077 = vadd.xlane.f32.xlu1 %v2040_v44 }
 0x33c   :  { %2075 = vadd.xlane.f32.xlu0 %v2039_v48  ;;  %v7159_v48 = vld [vmem:[#allocation5_spill] sm:$0xff] }
 0x33d   :  { %2109 = vadd.xlane.f32.xlu1 %v7137_v40  ;;  %v1805_v40 = vsub.s32 4, %v7159_v48 }
 0x340   :  { %2107 = vadd.xlane.f32.xlu0 %v2055_v6 }
 0x341   :  { %2089 = vadd.xlane.f32.xlu1 %v2046_v62 }
 0x344   :  { %2087 = vadd.xlane.f32.xlu0 %v2045_v26  ;;  %v5080_v26 = vld [vmem:[%s6724_s3] sm:$0xff] }
 0x345   :  { %v5028_v8 = vpop.xlane.xlu0 %1759  ;;  %2085 = vadd.xlane.f32.xlu1 %v4931_v58  ;;  %v7145_v58 = vld [vmem:[#allocation13_spill] sm:$0xff] }
 0x346   :  { %v5031_v24 = vpop.xlane.xlu1 %1761  ;;  %v2047_v10 = vmul.f32 %v4962_v12, %v7145_v58 }
 0x348   :  { %2083 = vadd.xlane.f32.xlu0 %v4921_v17 }
 0x349   :  { %v5035_v31 = vpop.xlane.xlu0 %1763  ;;  %2097 = vadd.xlane.f32.xlu1 %v2050_v23  ;;  %v5083_v23 = vrot.slane %v5080_v26, %v1805_v40 }
 0x34a   :  { %v5038_v14 = vpop.xlane.xlu1 %1765 }
 0x34c   :  { %2095 = vadd.xlane.f32.xlu0 %v2049_v25 }
 0x34d   :  { %v5042_v16 = vpop.xlane.xlu0 %1767  ;;  %2093 = vadd.xlane.f32.xlu1 %v2048_v41 }
 0x34e   :  { %7144 = vst [vmem:[#allocation94_spill] sm:$0xff] %v5042_v16  ;;  %v5046_v54 = vpop.xlane.xlu1 %1769 }
 0x34f   :  { %7146 = vst [vmem:[#allocation102_spill] sm:$0xff] %v5046_v54 }
 0x350   :  { %2091 = vadd.xlane.f32.xlu0 %v2047_v10 }
 0x351   :  { %v5048_v17 = vpop.xlane.xlu0 %1771 }
 0x352   :  { %7147 = vst [vmem:[#allocation100_spill] sm:$0xff] %v5048_v17  ;;  %v5050_v38 = vpop.xlane.xlu1 %1773  ;;  %v7284_v17 = vld [vmem:[#allocation76_spill] sm:$0xff] }
 0x353   :  { %7148 = vst [vmem:[#allocation103_spill] sm:$0xff] %v5050_v38  ;;  %v7268_v38 = vld [vmem:[#allocation63_spill] sm:$0xff] }
 0x355   :  { %v5052_v55 = vpop.xlane.xlu0 %1775 }
 0x356   :  { %7149 = vst [vmem:[#allocation152_spill] sm:$0xff] %v5052_v55  ;;  %v5054_v5 = vpop.xlane.xlu1 %1777 }
 0x357   :  { %7150 = vst [vmem:[#allocation154_spill] sm:$0xff] %v5054_v5 }
 0x359   :  { %v5056_v63 = vpop.xlane.xlu0 %1779 }
 0x35a   :  { %7151 = vst [vmem:[#allocation155_spill] sm:$0xff] %v5056_v63  ;;  %v5058_v28 = vpop.xlane.xlu1 %1781 }
 0x35b   :  { %7152 = vst [vmem:[#allocation156_spill] sm:$0xff] %v5058_v28 }
 0x35d   :  { %v5060_v4 = vpop.xlane.xlu0 %1783 }
 0x35e   :  { %7153 = vst [vmem:[#allocation85_spill] sm:$0xff] %v5060_v4  ;;  %v5062_v3 = vpop.xlane.xlu1 %1785 }
 0x35f   :  { %7154 = vst [vmem:[#allocation159_spill] sm:$0xff] %v5062_v3 }
 0x361   :  { %v5064_v12 = vpop.xlane.xlu0 %1787 }
 0x362   :  { %7155 = vst [vmem:[#allocation87_spill] sm:$0xff] %v5064_v12  ;;  %v5066_v29 = vpop.xlane.xlu1 %1789 }
 0x363   :  { %7156 = vst [vmem:[#allocation161_spill] sm:$0xff] %v5066_v29 }
 0x365   :  { %v5068_v7 = vpop.xlane.xlu0 %1791 }
 0x366   :  { %7157 = vst [vmem:[#allocation90_spill] sm:$0xff] %v5068_v7  ;;  %v5070_v44 = vpop.xlane.xlu1 %1793 }
 0x367   :  { %7158 = vst [vmem:[#allocation160_spill] sm:$0xff] %v5070_v44  ;;  %v7163_v44 = vld [vmem:[#allocation149_spill] sm:$0xff] }
 0x369   :  { %v5073_v6 = vpop.xlane.xlu0 %1795 }
 0x36a   :  { %7160 = vst [vmem:[#allocation91_spill] sm:$0xff] %v5073_v6  ;;  %v5075_v62 = vpop.xlane.xlu1 %1797 }
 0x36b   :  { %7161 = vst [vmem:[#allocation162_spill] sm:$0xff] %v5075_v62 }
 0x36d   :  { %v5085_v25 = vpop.xlane.xlu0 %1799 }
 0x36e   :  { %7162 = vst [vmem:[#allocation97_spill] sm:$0xff] %v5085_v25  ;;  %v1802_v41 = vpop.xlane.xlu1 %1801 }
 0x36f   :  { %v1838_v10 = vmul.f32 %v5083_v23, %v1802_v41 }
 0x371   :  { %v1870_v7 = vadd.f32 %v1838_v10, %v7163_v44  ;;  %v5089_v29 = vpop.xlane.xlu0 %1903 }
 0x372   :  { %7164 = vst [vmem:[#allocation165_spill] sm:$0xff] %v5089_v29  ;;  %v5091_v6 = vpop.xlane.xlu1 %1905  ;;  %v7267_v29 = vld [vmem:[#allocation64_spill] sm:$0xff] }
 0x373   :  { %7165 = vst [vmem:[#allocation166_spill] sm:$0xff] %v5091_v6 }
 0x375   :  { %v5093_v62 = vpop.xlane.xlu0 %1935 }
 0x376   :  { %7166 = vst [vmem:[#allocation82_spill] sm:$0xff] %v5093_v62  ;;  %v5095_v12 = vpop.xlane.xlu1 %1937 }
 0x377   :  { %7167 = vst [vmem:[#allocation167_spill] sm:$0xff] %v5095_v12 }
 0x379   :  { %v5097_v3 = vpop.xlane.xlu0 %1907 }
 0x37a   :  { %7168 = vst [vmem:[#allocation13_spill] sm:$0xff] %v5097_v3  ;;  %v5099_v4 = vpop.xlane.xlu1 %1909 }
 0x37b   :  { %7169 = vst [vmem:[#allocation5_spill] sm:$0xff] %v5099_v4 }
 0x37d   :  { %v5101_v40 = vpop.xlane.xlu0 %1939  ;;  %885 = vxpose.xlu0.b32.start [1/16] %v7127_v18, 128 }
 0x37e   :  { %7170 = vst [vmem:[#allocation149_spill] sm:$0xff] %v5101_v40  ;;  %v5104_v25 = vpop.xlane.xlu1 %1941 }
 0x37f   :  { %7171 = vst [vmem:[#allocation168_spill] sm:$0xff] %v5104_v25 }
 0x380   :  { %917 = vxpose.xlu1.b32.start [1/16] %v7129_v15, 128 }
 0x381   :  { %v5107_v44 = vpop.xlane.xlu0 %1911  ;;  %886 = vxpose.xlu0.b32.cont [2/16] %v7128_v20, 128 }
 0x382   :  { %7172 = vst [vmem:[#allocation169_spill] sm:$0xff] %v5107_v44  ;;  %v5110_v41 = vpop.xlane.xlu1 %1913 }
 0x383   :  { %7173 = vst [vmem:[#allocation170_spill] sm:$0xff] %v5110_v41 }
 0x384   :  { %918 = vxpose.xlu1.b32.cont [2/16] %v7130_v57, 128 }
 0x385   :  { %v5113_v10 = vpop.xlane.xlu0 %1943  ;;  %887 = vxpose.xlu0.b32.cont [3/16] %v4761_v22, 128 }
 0x386   :  { %7174 = vst [vmem:[#allocation171_spill] sm:$0xff] %v5113_v10  ;;  %v5116_v4 = vpop.xlane.xlu1 %1945 }
 0x387   :  { %7175 = vst [vmem:[#allocation172_spill] sm:$0xff] %v5116_v4 }
 0x388   :  { %919 = vxpose.xlu1.b32.cont [3/16] %v4771_v39, 128 }
 0x389   :  { %v5119_v40 = vpop.xlane.xlu0 %1915  ;;  %888 = vxpose.xlu0.b32.cont [4/16] %v4767_v1, 128 }
 0x38a   :  { %7176 = vst [vmem:[#allocation173_spill] sm:$0xff] %v5119_v40  ;;  %v5122_v25 = vpop.xlane.xlu1 %1917  ;;  %v7182_v40 = vld [vmem:[#allocation163_spill] sm:$0xff] }
 0x38b   :  { %7177 = vst [vmem:[#allocation174_spill] sm:$0xff] %v5122_v25 }
 0x38c   :  { %920 = vxpose.xlu1.b32.cont [4/16] %v4775_v59, 128 }
 0x38d   :  { %v5125_v44 = vpop.xlane.xlu0 %1947  ;;  %889 = vxpose.xlu0.b32.cont [5/16] %v7136_v45, 128 }
 0x38e   :  { %7178 = vst [vmem:[#allocation175_spill] sm:$0xff] %v5125_v44  ;;  %v5128_v41 = vpop.xlane.xlu1 %1949 }
 0x38f   :  { %7179 = vst [vmem:[#allocation176_spill] sm:$0xff] %v5128_v41 }
 0x390   :  { %921 = vxpose.xlu1.b32.cont [5/16] %v7138_v0, 128 }
 0x391   :  { %v5131_v10 = vpop.xlane.xlu0 %1919  ;;  %890 = vxpose.xlu0.b32.cont [6/16] %v7135_v56, 128 }
 0x392   :  { %7180 = vst [vmem:[#allocation177_spill] sm:$0xff] %v5131_v10  ;;  %v5134_v4 = vpop.xlane.xlu1 %1921 }
 0x393   :  { %7181 = vst [vmem:[#allocation178_spill] sm:$0xff] %v5134_v4 }
 0x394   :  { %922 = vxpose.xlu1.b32.cont [6/16] %v7182_v40, 128 }
 0x395   :  { %v5137_v3 = vpop.xlane.xlu0 %1951  ;;  %891 = vxpose.xlu0.b32.cont [7/16] %v7132_v52, 128 }
 0x396   :  { %7183 = vst [vmem:[#allocation163_spill] sm:$0xff] %v5137_v3  ;;  %v5140_v25 = vpop.xlane.xlu1 %1953 }
 0x397   :  { %7184 = vst [vmem:[#allocation179_spill] sm:$0xff] %v5140_v25  ;;  %v7190_v25 = vld [vmem:[#allocation101_spill] sm:$0xff] }
 0x398   :  { %923 = vxpose.xlu1.b32.cont [7/16] %v7134_v49, 128 }
 0x399   :  { %v5143_v44 = vpop.xlane.xlu0 %1923  ;;  %892 = vxpose.xlu0.b32.cont [8/16] %v7133_v11, 128 }
 0x39a   :  { %7185 = vst [vmem:[#allocation180_spill] sm:$0xff] %v5143_v44  ;;  %v5146_v41 = vpop.xlane.xlu1 %1925 }
 0x39b   :  { %7186 = vst [vmem:[#allocation181_spill] sm:$0xff] %v5146_v41 }
 0x39c   :  { %924 = vxpose.xlu1.b32.cont [8/16] %v4797_v42, 128 }
 0x39d   :  { %v5149_v10 = vpop.xlane.xlu0 %1955  ;;  %893 = vxpose.xlu0.b32.cont [9/16] %v4809_v2, 128 }
 0x39e   :  { %7187 = vst [vmem:[#allocation182_spill] sm:$0xff] %v5149_v10  ;;  %v5152_v4 = vpop.xlane.xlu1 %1957 }
 0x39f   :  { %7188 = vst [vmem:[#allocation183_spill] sm:$0xff] %v5152_v4  ;;  %v1969_v4 = vsub.s32 5, %v7159_v48 }
 0x3a0   :  { %925 = vxpose.xlu1.b32.cont [9/16] %v4816_v50, 128 }
 0x3a1   :  { %v5155_v3 = vpop.xlane.xlu0 %1927  ;;  %894 = vxpose.xlu0.b32.cont [10/16] %v7190_v25, 128 }
 0x3a2   :  { %7189 = vst [vmem:[#allocation184_spill] sm:$0xff] %v5155_v3  ;;  %v5158_v12 = vpop.xlane.xlu1 %1929 }
 0x3a3   :  { %7191 = vst [vmem:[#allocation101_spill] sm:$0xff] %v5158_v12  ;;  %v5175_v12 = vrot.slane %v5080_v26, %v1969_v4 }
 0x3a4   :  { %926 = vxpose.xlu1.b32.cont [10/16] %v4825_v30, 128 }
 0x3a5   :  { %v5161_v44 = vpop.xlane.xlu0 %1959  ;;  %895 = vxpose.xlu0.b32.cont [11/16] %v7140_v37, 128  ;;  %7196 = vst [vmem:[#allocation189_spill] sm:$0xff] %v5175_v12 }
 0x3a6   :  { %7192 = vst [vmem:[#allocation185_spill] sm:$0xff] %v5161_v44  ;;  %v5164_v41 = vpop.xlane.xlu1 %1961 }
 0x3a7   :  { %7193 = vst [vmem:[#allocation186_spill] sm:$0xff] %v5164_v41 }
 0x3a8   :  { %927 = vxpose.xlu1.b32.cont [11/16] %v4811_v35, 128 }
 0x3a9   :  { %896 = vxpose.xlu0.b32.cont [12/16] %v7139_v46, 128  ;;  %v5171_v3 = vpop.xlane.xlu0 %1931 }
 0x3aa   :  { %v5169_v10 = vpop.xlane.xlu1 %1933  ;;  %7195 = vst [vmem:[#allocation188_spill] sm:$0xff] %v5171_v3 }
 0x3ab   :  { %7194 = vst [vmem:[#allocation187_spill] sm:$0xff] %v5169_v10 }
 0x3ac   :  { %928 = vxpose.xlu1.b32.cont [12/16] %v4821_v60, 128 }
 0x3ad   :  { %897 = vxpose.xlu0.b32.cont [13/16] %v7145_v58, 128  ;;  %v5180_v62 = vpop.xlane.xlu0 %1963 }
 0x3ae   :  { %v1966_v44 = vpop.xlane.xlu1 %1965  ;;  %7197 = vst [vmem:[#allocation190_spill] sm:$0xff] %v5180_v62 }
 0x3af   :  { %v2002_v41 = vmul.f32 %v5175_v12, %v1966_v44 }
 0x3b0   :  { %929 = vxpose.xlu1.b32.cont [13/16] %v4845_v19, 128 }
 0x3b1   :  { %v5182_v6 = vadd.f32 %v2002_v41, %v1870_v7  ;;  %898 = vxpose.xlu0.b32.cont [14/16] %v7143_v47, 128  ;;  %v5187_v10 = vpop.xlane.xlu0 %2071 }
 0x3b2   :  { %7198 = vst [vmem:[#allocation191_spill] sm:$0xff] %v5187_v10  ;;  %v5194_v44 = vpop.xlane.xlu1 %2073 }
 0x3b3   :  { %7200 = vst [vmem:[#allocation193_spill] sm:$0xff] %v5194_v44 }
 0x3b4   :  { %930 = vxpose.xlu1.b32.cont [14/16] %v4853_v53, 128 }
 0x3b5   :  { %899 = vxpose.xlu0.b32.cont [15/16] %v7142_v13, 128  ;;  %v5192_v4 = vpop.xlane.xlu0 %2103 }
 0x3b6   :  { %7199 = vst [vmem:[#allocation192_spill] sm:$0xff] %v5192_v4  ;;  %v5198_v41 = vpop.xlane.xlu1 %2105 }
 0x3b7   :  { %7202 = vst [vmem:[#allocation195_spill] sm:$0xff] %v5198_v41 }
 0x3b8   :  { %931 = vxpose.xlu1.b32.cont [15/16] %v4841_v36, 128 }
 0x3b9   :  { %900 = vxpose.xlu0.b32.end [16/16] %v7141_v9, 128  ;;  %v5196_v7 = vpop.xlane.xlu0 %2067 }
 0x3ba   :  { %7201 = vst [vmem:[#allocation194_spill] sm:$0xff] %v5196_v7  ;;  %v5202_v3 = vpop.xlane.xlu1 %2069  ;;  %v7212_v7 = vld [vmem:[#allocation95_spill] sm:$0xff] }
 0x3bb   :  { %7204 = vst [vmem:[#allocation197_spill] sm:$0xff] %v5202_v3 }
 0x3bc   :  { %932 = vxpose.xlu1.b32.end [16/16] %v4849_v32, 128 }
 0x3bd   :  { %v5200_v62 = vpop.xlane.xlu0 %2099 }
 0x3be   :  { %7203 = vst [vmem:[#allocation196_spill] sm:$0xff] %v5200_v62  ;;  %v5206_v10 = vpop.xlane.xlu1 %2101 }
 0x3bf   :  { %7206 = vst [vmem:[#allocation199_spill] sm:$0xff] %v5206_v10 }
 0x3c1   :  { %v5204_v28 = vpop.xlane.xlu0 %2079 }
 0x3c2   :  { %7205 = vst [vmem:[#allocation198_spill] sm:$0xff] %v5204_v28  ;;  %v5210_v63 = vpop.xlane.xlu1 %2081  ;;  %v7215_v28 = vld [vmem:[#allocation89_spill] sm:$0xff] }
 0x3c3   :  { %7208 = vst [vmem:[#allocation201_spill] sm:$0xff] %v5210_v63  ;;  %v7257_v63 = vld [vmem:[#allocation54_spill] sm:$0xff] }
 0x3c5   :  { %v5208_v54 = vpop.xlane.xlu0 %2111 }
 0x3c6   :  { %7207 = vst [vmem:[#allocation200_spill] sm:$0xff] %v5208_v54  ;;  %v5214_v4 = vpop.xlane.xlu1 %2077 }
 0x3c7   :  { %7210 = vst [vmem:[#allocation203_spill] sm:$0xff] %v5214_v4 }
 0x3c9   :  { %v5212_v5 = vpop.xlane.xlu0 %2075 }
 0x3ca   :  { %7209 = vst [vmem:[#allocation202_spill] sm:$0xff] %v5212_v5  ;;  %v5219_v41 = vpop.xlane.xlu1 %2109 }
 0x3cb   :  { %7213 = vst [vmem:[#allocation95_spill] sm:$0xff] %v5219_v41  ;;  %v7259_v41 = vld [vmem:[#allocation56_spill] sm:$0xff] }
 0x3cd   :  { %v5216_v44 = vpop.xlane.xlu0 %2107 }
 0x3ce   :  { %7211 = vst [vmem:[#allocation204_spill] sm:$0xff] %v5216_v44  ;;  %v5225_v10 = vpop.xlane.xlu1 %2089  ;;  %v7260_v44 = vld [vmem:[#allocation55_spill] sm:$0xff] }
 0x3cf   :  { %7216 = vst [vmem:[#allocation89_spill] sm:$0xff] %v5225_v10 }
 0x3d1   :  { %v5222_v62 = vpop.xlane.xlu0 %2087 }
 0x3d2   :  { %7214 = vst [vmem:[#allocation205_spill] sm:$0xff] %v5222_v62 }
 0x3d5   :  { %v5229_v54 = vpop.xlane.xlu0 %2083 }
 0x3d6   :  { %7217 = vst [vmem:[#allocation206_spill] sm:$0xff] %v5229_v54 }
 0x3e3   :  { %2113 = vadd.xlane.f32.xlu1 %v7212_v7  ;;  %v5233_v7 = vpop.xlane.xlu1 %2085 }
 0x3e4   :  { %7218 = vst [vmem:[#allocation207_spill] sm:$0xff] %v5233_v7 }
 0x3e6   :  { %2115 = vadd.xlane.f32.xlu0 %v4937_v43  ;;  %v5236_v43 = vpop.xlane.xlu0 %2095 }
 0x3e7   :  { %2117 = vadd.xlane.f32.xlu1 %v7215_v28  ;;  %7219 = vst [vmem:[#allocation208_spill] sm:$0xff] %v5236_v43  ;;  %v5239_v28 = vpop.xlane.xlu1 %2097 }
 0x3e8   :  { %7220 = vst [vmem:[#allocation209_spill] sm:$0xff] %v5239_v28 }
 0x3ea   :  { %2119 = vadd.xlane.f32.xlu0 %v4952_v51  ;;  %v5241_v10 = vpop.xlane.xlu0 %2091 }
 0x3eb   :  { %2121 = vadd.xlane.f32.xlu1 %v4959_v27  ;;  %7221 = vst [vmem:[#allocation210_spill] sm:$0xff] %v5241_v10  ;;  %v5243_v51 = vpop.xlane.xlu1 %2093 }
 0x3ec   :  { %7222 = vst [vmem:[#allocation211_spill] sm:$0xff] %v5243_v51 }
 0x3ee   :  { %2123 = vadd.xlane.f32.xlu0 %v4966_v33 }
 0x3ef   :  { %2125 = vadd.xlane.f32.xlu1 %v4973_v34 }
 0x3f2   :  { %2127 = vadd.xlane.f32.xlu0 %v4980_v21 }
 0x3f3   :  { %2129 = vadd.xlane.f32.xlu1 %v4987_v61 }
 0x3fd   :  { %v901_v27 = vpop.trf.xlu0 }
 0x3fe   :  { %v2199_v62 = vmul.f32 %v901_v27, %v7127_v18 }
 0x400   :  { %2231 = vadd.xlane.f32.xlu0 %v2199_v62  ;;  %v933_v33 = vpop.trf.xlu1 }
 0x401   :  { %v902_v34 = vpop.trf.xlu0  ;;  %v2215_v7 = vmul.f32 %v933_v33, %v7129_v15 }
 0x402   :  { %v2200_v21 = vmul.f32 %v902_v34, %v7128_v20 }
 0x404   :  { %2233 = vadd.xlane.f32.xlu1 %v2200_v21  ;;  %2263 = vadd.xlane.f32.xlu0 %v2215_v7  ;;  %v934_v43 = vpop.trf.xlu1 }
 0x405   :  { %v903_v61 = vpop.trf.xlu0  ;;  %v2216_v28 = vmul.f32 %v934_v43, %v7130_v57 }
 0x406   :  { %v2201_v10 = vmul.f32 %v4761_v22, %v903_v61 }
 0x408   :  { %2235 = vadd.xlane.f32.xlu0 %v2201_v10  ;;  %2265 = vadd.xlane.f32.xlu1 %v2216_v28  ;;  %v935_v51 = vpop.trf.xlu1 }
 0x409   :  { %v904_v54 = vpop.trf.xlu0  ;;  %v2217_v18 = vmul.f32 %v4771_v39, %v935_v51 }
 0x40a   :  { %v2202_v62 = vmul.f32 %v4767_v1, %v904_v54 }
 0x40c   :  { %2237 = vadd.xlane.f32.xlu1 %v2202_v62  ;;  %2267 = vadd.xlane.f32.xlu0 %v2217_v18  ;;  %v936_v15 = vpop.trf.xlu1 }
 0x40d   :  { %v905_v20 = vpop.trf.xlu0  ;;  %v2218_v7 = vmul.f32 %v4775_v59, %v936_v15 }
 0x40e   :  { %v2203_v27 = vmul.f32 %v905_v20, %v7136_v45 }
 0x410   :  { %2239 = vadd.xlane.f32.xlu0 %v2203_v27  ;;  %2269 = vadd.xlane.f32.xlu1 %v2218_v7  ;;  %v937_v57 = vpop.trf.xlu1 }
 0x411   :  { %v906_v22 = vpop.trf.xlu0  ;;  %v2219_v10 = vmul.f32 %v937_v57, %v7138_v0 }
 0x412   :  { %v2204_v43 = vmul.f32 %v906_v22, %v7135_v56 }
 0x414   :  { %2241 = vadd.xlane.f32.xlu1 %v2204_v43  ;;  %2271 = vadd.xlane.f32.xlu0 %v2219_v10  ;;  %v938_v39 = vpop.trf.xlu1 }
 0x415   :  { %v907_v1 = vpop.trf.xlu0  ;;  %v2220_v54 = vmul.f32 %v938_v39, %v7182_v40 }
 0x416   :  { %v2205_v28 = vmul.f32 %v7132_v52, %v907_v1 }
 0x418   :  { %2243 = vadd.xlane.f32.xlu0 %v2205_v28  ;;  %2273 = vadd.xlane.f32.xlu1 %v2220_v54  ;;  %v939_v59 = vpop.trf.xlu1  ;;  %v7223_v28 = vld [vmem:[#allocation27_spill] sm:$0xff] }
 0x419   :  { %v908_v45 = vpop.trf.xlu0  ;;  %v2221_v51 = vmul.f32 %v7134_v49, %v939_v59  ;;  %v7224_v59 = vld [vmem:[#allocation41_spill] sm:$0xff] }
 0x41a   :  { %v2206_v33 = vmul.f32 %v7133_v11, %v908_v45  ;;  %v1146_v45 = vmul.f32 %v7224_v59, %v7223_v28  ;;  %v7239_v28 = vld [vmem:[#allocation34_spill] sm:$0xff] }
 0x41c   :  { %2245 = vadd.xlane.f32.xlu1 %v2206_v33  ;;  %2275 = vadd.xlane.f32.xlu0 %v2221_v51  ;;  %v940_v0 = vpop.trf.xlu1  ;;  %v7226_v51 = vld [vmem:[#allocation32_spill] sm:$0xff] }
 0x41d   :  { %v909_v56 = vpop.trf.xlu0  ;;  %v2222_v34 = vmul.f32 %v4797_v42, %v940_v0  ;;  %v1148_v33 = vmul.f32 %v7224_v59, %v7226_v51  ;;  %v7227_v0 = vld [vmem:[#allocation25_spill] sm:$0xff]  ;;  %v7241_v51 = vld [vmem:[#allocation36_spill] sm:$0xff] }
 0x41e   :  { %v2207_v21 = vmul.f32 %v909_v56, %v4809_v2  ;;  %v7228_v56 = vld [vmem:[#allocation35_spill] sm:$0xff] }
 0x420   :  { %2247 = vadd.xlane.f32.xlu0 %v2207_v21  ;;  %2277 = vadd.xlane.f32.xlu1 %v2222_v34  ;;  %v941_v40 = vpop.trf.xlu1  ;;  %v7229_v34 = vld [vmem:[#allocation26_spill] sm:$0xff] }
 0x421   :  { %v910_v52 = vpop.trf.xlu0  ;;  %v2223_v61 = vmul.f32 %v941_v40, %v4816_v50  ;;  %v1150_v21 = vmul.f32 %v7224_v59, %v7229_v34 }
 0x422   :  { %v2208_v18 = vmul.f32 %v910_v52, %v7190_v25  ;;  %v7231_v52 = vld [vmem:[#allocation28_spill] sm:$0xff] }
 0x424   :  { %2249 = vadd.xlane.f32.xlu1 %v2208_v18  ;;  %2279 = vadd.xlane.f32.xlu0 %v2223_v61  ;;  %v942_v49 = vpop.trf.xlu1  ;;  %v1152_v61 = vmul.f32 %v7224_v59, %v7231_v52  ;;  %v7232_v18 = vld [vmem:[#allocation2_spill] sm:$0xff] }
 0x425   :  { %v911_v11 = vpop.trf.xlu0  ;;  %v2224_v62 = vmul.f32 %v942_v49, %v4825_v30  ;;  %v1153_v49 = vmul.f32 %v7224_v59, %v7232_v18 }
 0x426   :  { %v2209_v15 = vmul.f32 %v7140_v37, %v911_v11  ;;  %v7233_v11 = vld [vmem:[#allocation30_spill] sm:$0xff] }
 0x428   :  { %2251 = vadd.xlane.f32.xlu0 %v2209_v15  ;;  %2281 = vadd.xlane.f32.xlu1 %v2224_v62  ;;  %v943_v42 = vpop.trf.xlu1  ;;  %v1154_v62 = vmul.f32 %v7224_v59, %v7233_v11  ;;  %v7234_v15 = vld [vmem:[#allocation3_spill] sm:$0xff] }
 0x429   :  { %v912_v2 = vpop.trf.xlu0  ;;  %v2225_v20 = vmul.f32 %v4811_v35, %v943_v42  ;;  %v1155_v42 = vmul.f32 %v7224_v59, %v7234_v15 }
 0x42a   :  { %v2210_v7 = vmul.f32 %v7139_v46, %v912_v2  ;;  %v7235_v2 = vld [vmem:[#allocation31_spill] sm:$0xff] }
 0x42c   :  { %2253 = vadd.xlane.f32.xlu1 %v2210_v7  ;;  %2283 = vadd.xlane.f32.xlu0 %v2225_v20  ;;  %v944_v50 = vpop.trf.xlu1  ;;  %v1156_v20 = vmul.f32 %v7224_v59, %v7235_v2  ;;  %v3316_v7 = vld [vmem:[%s6725_s4] ss:$0 sm:$0xff] }
 0x42d   :  { %v913_v25 = vpop.trf.xlu0  ;;  %v2226_v27 = vmul.f32 %v4821_v60, %v944_v50  ;;  %v1184_v50 = vadd.f32 %v3316_v7, %v1146_v45  ;;  %v1160_v45 = vmul.f32 %v7224_v59, %v7239_v28  ;;  %v7251_v28 = vld [vmem:[#allocation7_spill] sm:$0xff] }
 0x42e   :  { %v2211_v57 = vmul.f32 %v913_v25, %v7145_v58 }
 0x430   :  { %2255 = vadd.xlane.f32.xlu0 %v2211_v57  ;;  %2285 = vadd.xlane.f32.xlu1 %v2226_v27  ;;  %v945_v30 = vpop.trf.xlu1  ;;  %v5306_v27 = vadd.f32 %v3316_v7, %v1148_v33  ;;  %v1162_v33 = vmul.f32 %v7224_v59, %v7241_v51 }
 0x431   :  { %v914_v37 = vpop.trf.xlu0  ;;  %v2227_v22 = vmul.f32 %v945_v30, %v4845_v19 }
 0x432   :  { %v2212_v10 = vmul.f32 %v914_v37, %v7143_v47  ;;  %v5310_v37 = vadd.f32 %v3316_v7, %v1150_v21  ;;  %v7244_v21 = vld [vmem:[#allocation46_spill] sm:$0xff] }
 0x434   :  { %2257 = vadd.xlane.f32.xlu1 %v2212_v10  ;;  %2287 = vadd.xlane.f32.xlu0 %v2227_v22  ;;  %v946_v35 = vpop.trf.xlu1  ;;  %v7236_v10 = vld [vmem:[#allocation8_spill] sm:$0xff] }
 0x435   :  { %v915_v46 = vpop.trf.xlu0  ;;  %v2228_v43 = vmul.f32 %v946_v35, %v4853_v53  ;;  %v7225_v53 = vld [vmem:[#allocation29_spill] sm:$0xff]  ;;  %v1157_v35 = vmul.f32 %v7224_v59, %v7236_v10  ;;  %v7249_v10 = vld [vmem:[#allocation4_spill] sm:$0xff] }
 0x436   :  { %v2213_v39 = vmul.f32 %v7142_v13, %v915_v46  ;;  %v1147_v13 = vmul.f32 %v7224_v59, %v7225_v53  ;;  %v1190_v46 = vadd.f32 %v3316_v7, %v1152_v61  ;;  %v7240_v53 = vld [vmem:[#allocation44_spill] sm:$0xff]  ;;  %v7246_v61 = vld [vmem:[#allocation47_spill] sm:$0xff] }
 0x437   :  { %v1195_v34 = vadd.f32 %v3316_v7, %v1157_v35  ;;  %v1167_v18 = vmul.f32 %v7224_v59, %v7246_v61  ;;  %v1170_v35 = vmul.f32 %v7224_v59, %v7249_v10  ;;  %v7253_v10 = vld [vmem:[#allocation12_spill] sm:$0xff] }
 0x438   :  { %2259 = vadd.xlane.f32.xlu0 %v2213_v39  ;;  %2289 = vadd.xlane.f32.xlu1 %v2228_v43  ;;  %v947_v60 = vpop.trf.xlu1  ;;  %v5304_v25 = vadd.f32 %v3316_v7, %v1147_v13  ;;  %v5316_v43 = vadd.f32 %v3316_v7, %v1153_v49  ;;  %v7237_v39 = vld [vmem:[#allocation33_spill] sm:$0xff]  ;;  %v1161_v13 = vmul.f32 %v7224_v59, %v7240_v53 }
 0x439   :  { %v916_v58 = vpop.trf.xlu0  ;;  %v2229_v1 = vmul.f32 %v4841_v36, %v947_v60  ;;  %v1145_v36 = vmul.f32 %v7224_v59, %v7227_v0  ;;  %v1158_v60 = vmul.f32 %v7224_v59, %v7237_v39  ;;  %v7242_v0 = vld [vmem:[#allocation45_spill] sm:$0xff]  ;;  %v1172_v53 = vmul.f32 %v7224_v59, %v7251_v28 }
 0x43a   :  { %v2214_v54 = vmul.f32 %v7141_v9, %v916_v58  ;;  %v1149_v9 = vmul.f32 %v7224_v59, %v7228_v56  ;;  %v7238_v58 = vld [vmem:[#allocation42_spill] sm:$0xff]  ;;  %v7243_v56 = vld [vmem:[#allocation37_spill] sm:$0xff]  ;;  %v1199_v51 = vadd.f32 %v3316_v7, %v1161_v13  ;;  %v1174_v13 = vmul.f32 %v7224_v59, %v7253_v10 }
 0x43b   :  { %v1183_v57 = vadd.f32 %v3316_v7, %v1145_v36  ;;  %v1163_v36 = vmul.f32 %v7224_v59, %v7242_v0  ;;  %v1196_v49 = vadd.f32 %v3316_v7, %v1158_v60  ;;  %v7250_v39 = vld [vmem:[#allocation49_spill] sm:$0xff]  ;;  %v5354_v60 = vadd.f32 %v3316_v7, %v1162_v33  ;;  %v7254_v33 = vld [vmem:[#allocation52_spill] sm:$0xff] }
 0x43c   :  { %2261 = vadd.xlane.f32.xlu1 %v2214_v54  ;;  %2291 = vadd.xlane.f32.xlu0 %v2229_v1  ;;  %v948_v19 = vpop.trf.xlu1  ;;  %v5308_v30 = vadd.f32 %v3316_v7, %v1149_v9  ;;  %v1159_v1 = vmul.f32 %v7224_v59, %v7238_v58  ;;  %v1192_v54 = vadd.f32 %v3316_v7, %v1154_v62  ;;  %v7247_v62 = vld [vmem:[#allocation40_spill] sm:$0xff] }
 0x43d   :  { %v2230_v47 = vmul.f32 %v4849_v32, %v948_v19  ;;  %v7230_v32 = vld [vmem:[#allocation38_spill] sm:$0xff]  ;;  %v5322_v19 = vadd.f32 %v3316_v7, %v1155_v42  ;;  %v1164_v9 = vmul.f32 %v7224_v59, %v7243_v56  ;;  %v1168_v15 = vmul.f32 %v7224_v59, %v7247_v62  ;;  %v7248_v42 = vld [vmem:[#allocation48_spill] sm:$0xff] }
 0x43e   :  { %v1151_v40 = vmul.f32 %v7224_v59, %v7230_v32  ;;  %v1165_v32 = vmul.f32 %v7224_v59, %v7244_v21  ;;  %v5342_v11 = vadd.f32 %v3316_v7, %v1159_v1  ;;  %v1169_v2 = vmul.f32 %v7224_v59, %v7248_v42 }
 0x43f   :  { %v1171_v58 = vmul.f32 %v7224_v59, %v7250_v39  ;;  %v5356_v1 = vadd.f32 %v3316_v7, %v1163_v36  ;;  %v5358_v0 = vadd.f32 %v3316_v7, %v1164_v9  ;;  %v1206_v62 = vadd.f32 %v3316_v7, %v1168_v15  ;;  %v7258_v15 = vld [vmem:[#allocation53_spill] sm:$0xff] }
 0x440   :  { %2293 = vadd.xlane.f32.xlu1 %v2230_v47  ;;  %v5312_v22 = vadd.f32 %v3316_v7, %v1151_v40  ;;  %v5324_v47 = vadd.f32 %v3316_v7, %v1156_v20  ;;  %v7245_v40 = vld [vmem:[#allocation39_spill] sm:$0xff]  ;;  %v1198_v20 = vadd.f32 %v3316_v7, %v1160_v45  ;;  %v5360_v56 = vadd.f32 %v3316_v7, %v1165_v32 }
 0x441   :  { %v1166_v52 = vmul.f32 %v7224_v59, %v7245_v40  ;;  %v5364_v45 = vadd.f32 %v3316_v7, %v1167_v18  ;;  %v7252_v40 = vld [vmem:[#allocation50_spill] sm:$0xff]  ;;  %v5368_v42 = vadd.f32 %v3316_v7, %v1169_v2  ;;  %v1175_v36 = vmul.f32 %v7224_v59, %v7254_v33  ;;  %v7262_v33 = vld [vmem:[#allocation57_spill] sm:$0xff] }
 0x442   :  { %v1173_v61 = vmul.f32 %v7224_v59, %v7252_v40  ;;  %v1208_v9 = vadd.f32 %v3316_v7, %v1170_v35  ;;  %v5374_v39 = vadd.f32 %v3316_v7, %v1171_v58  ;;  %v5376_v32 = vadd.f32 %v3316_v7, %v1172_v53  ;;  %v7256_v18 = vld [vmem:[#allocation78_spill] sm:$0xff] }
 0x443   :  { %v5362_v21 = vadd.f32 %v3316_v7, %v1166_v52  ;;  %v7255_v52 = vld [vmem:[#allocation51_spill] sm:$0xff]  ;;  %v1315_v40 = vmul.f32 %v7256_v18, %v7257_v63  ;;  %v1317_v2 = vmul.f32 %v7256_v18, %v7258_v15  ;;  %v1318_v10 = vmul.f32 %v7256_v18, %v7259_v41  ;;  %v7261_v58 = vld [vmem:[#allocation58_spill] sm:$0xff] }
 0x444   :  { %v1316_v28 = vmul.f32 %v7256_v18, %v7255_v52  ;;  %v1319_v59 = vmul.f32 %v7256_v18, %v7260_v44  ;;  %v1211_v35 = vadd.f32 %v3316_v7, %v1173_v61  ;;  %v1320_v53 = vmul.f32 %v7256_v18, %v7261_v58  ;;  %v7263_v52 = vld [vmem:[#allocation60_spill] sm:$0xff]  ;;  %v7264_v15 = vld [vmem:[#allocation59_spill] sm:$0xff]  ;;  %v7265_v41 = vld [vmem:[#allocation62_spill] sm:$0xff] }
 0x445   :  { %v1321_v4 = vmul.f32 %v7256_v18, %v7262_v33  ;;  %v1322_v5 = vmul.f32 %v7256_v18, %v7263_v52  ;;  %v1212_v63 = vadd.f32 %v3316_v7, %v1174_v13  ;;  %v5394_v3 = vadd.f32 %v3316_v7, %v1175_v36  ;;  %v7266_v61 = vld [vmem:[#allocation61_spill] sm:$0xff] }
 0x446   :  { %v1323_v55 = vmul.f32 %v7256_v18, %v7264_v15  ;;  %v1324_v12 = vmul.f32 %v7256_v18, %v7265_v41  ;;  %v5400_v44 = vadd.f32 %v1316_v28, %v1184_v50  ;;  %v1325_v58 = vmul.f32 %v7256_v18, %v7266_v61  ;;  %v7269_v41 = vld [vmem:[#allocation66_spill] sm:$0xff] }
 0x447   :  { %v1326_v33 = vmul.f32 %v7256_v18, %v7267_v29  ;;  %v1327_v52 = vmul.f32 %v7256_v18, %v7268_v38  ;;  %v1347_v13 = vadd.f32 %v1315_v40, %v1183_v57  ;;  %v5409_v7 = vadd.f32 %v1317_v2, %v5304_v25 }
 0x448   :  { %v5412_v36 = vadd.f32 %v1318_v10, %v5306_v27  ;;  %v5415_v15 = vadd.f32 %v1319_v59, %v5308_v30  ;;  %v5418_v50 = vadd.f32 %v1320_v53, %v5310_v37  ;;  %v5421_v28 = vadd.f32 %v1321_v4, %v5312_v22  ;;  %v7270_v27 = vld [vmem:[#allocation65_spill] sm:$0xff]  ;;  %v7271_v30 = vld [vmem:[#allocation68_spill] sm:$0xff]  ;;  %v7272_v22 = vld [vmem:[#allocation67_spill] sm:$0xff] }
 0x449   :  { %v5423_v29 = vadd.f32 %v1322_v5, %v1190_v46  ;;  %v1328_v38 = vmul.f32 %v7256_v18, %v7269_v41  ;;  %v1355_v25 = vadd.f32 %v1323_v55, %v5316_v43  ;;  %v5428_v57 = vadd.f32 %v1324_v12, %v1192_v54  ;;  %v7273_v10 = vld [vmem:[#allocation70_spill] sm:$0xff]  ;;  %v7274_v12 = vld [vmem:[#allocation69_spill] sm:$0xff] }
 0x44a   :  { %v1329_v40 = vmul.f32 %v7256_v18, %v7270_v27  ;;  %v1330_v2 = vmul.f32 %v7256_v18, %v7271_v30  ;;  %v1357_v37 = vadd.f32 %v1325_v58, %v5322_v19  ;;  %v5436_v4 = vadd.f32 %v1326_v33, %v5324_v47  ;;  %v7275_v54 = vld [vmem:[#allocation9_spill] sm:$0xff]  ;;  %v7276_v53 = vld [vmem:[#allocation6_spill] sm:$0xff]  ;;  %v7277_v47 = vld [vmem:[#allocation71_spill] sm:$0xff] }
 0x44b   :  { %v5438_v5 = vadd.f32 %v1327_v52, %v1195_v34  ;;  %v1331_v46 = vmul.f32 %v7256_v18, %v7272_v22  ;;  %v1332_v55 = vmul.f32 %v7256_v18, %v7273_v10  ;;  %v1333_v43 = vmul.f32 %v7256_v18, %v7274_v12  ;;  %v7278_v58 = vld [vmem:[#allocation10_spill] sm:$0xff]  ;;  %v7279_v52 = vld [vmem:[#allocation73_spill] sm:$0xff]  ;;  %v7280_v22 = vld [vmem:[#allocation72_spill] sm:$0xff] }
 0x44c   :  { %v1334_v59 = vmul.f32 %v7256_v18, %v7275_v54  ;;  %v1335_v19 = vmul.f32 %v7256_v18, %v7276_v53  ;;  %v1360_v61 = vadd.f32 %v1328_v38, %v1196_v49  ;;  %v1336_v34 = vmul.f32 %v7256_v18, %v7277_v47  ;;  %v7281_v12 = vld [vmem:[#allocation75_spill] sm:$0xff]  ;;  %v7282_v38 = vld [vmem:[#allocation74_spill] sm:$0xff]  ;;  %v7283_v47 = vld [vmem:[#allocation77_spill] sm:$0xff] }
 0x44d   :  { %v1337_v33 = vmul.f32 %v7256_v18, %v7278_v58  ;;  %v1338_v41 = vmul.f32 %v7256_v18, %v7279_v52  ;;  %v1361_v27 = vadd.f32 %v1329_v40, %v5342_v11  ;;  %v5457_v30 = vadd.f32 %v1330_v2, %v1198_v20 }
 0x44e   :  { %v1339_v10 = vmul.f32 %v7256_v18, %v7280_v22  ;;  %v1340_v54 = vmul.f32 %v7256_v18, %v7281_v12  ;;  %v1363_v49 = vadd.f32 %v1331_v46, %v1199_v51  ;;  %v1341_v53 = vmul.f32 %v7256_v18, %v7282_v38 }
 0x44f   :  { %v1342_v58 = vmul.f32 %v7256_v18, %v7283_v47  ;;  %v1343_v52 = vmul.f32 %v7256_v18, %v7284_v17  ;;  %v1364_v11 = vadd.f32 %v1332_v55, %v5354_v60  ;;  %v5471_v20 = vadd.f32 %v1333_v43, %v5356_v1  ;;  %v7285_v17 = vld [vmem:[#allocation18_spill] sm:$0xff] }
 0x450   :  { %v5474_v40 = vadd.f32 %v1334_v59, %v5358_v0  ;;  %v5477_v2 = vadd.f32 %v1335_v19, %v5360_v56  ;;  %v5480_v51 = vadd.f32 %v1336_v34, %v5362_v21  ;;  %v5483_v46 = vadd.f32 %v1337_v33, %v5364_v45  ;;  %v7286_v0 = vld [vmem:[#allocation80_spill] sm:$0xff]  ;;  %v7287_v56 = vld [vmem:[#allocation11_spill] sm:$0xff]  ;;  %v7289_v34 = vld [vmem:[#allocation21_spill] sm:$0xff] }
 0x451   :  { %v5485_v22 = vadd.f32 %v1338_v41, %v1206_v62  ;;  %v1344_v60 = vmul.f32 %v7256_v18, %v7285_v17  ;;  %v1371_v1 = vadd.f32 %v1339_v10, %v5368_v42  ;;  %v5490_v55 = vadd.f32 %v1340_v54, %v1208_v9  ;;  %v7288_v59 = vld [vmem:[#allocation20_spill] sm:$0xff]  ;;  %v7291_v9 = vld [vmem:[#allocation43_spill] sm:$0xff]  ;;  %v7293_v54 = vld [vmem:[#allocation105_spill] sm:$0xff] }
 0x452   :  { %v1345_v43 = vmul.f32 %v7256_v18, %v7286_v0  ;;  %v1479_v19 = vmul.f32 %v7288_v59, %v7287_v56  ;;  %v1373_v21 = vadd.f32 %v1341_v53, %v5374_v39  ;;  %v5498_v45 = vadd.f32 %v1342_v58, %v5376_v32  ;;  %v7290_v41 = vld [vmem:[#allocation24_spill] sm:$0xff]  ;;  %v7294_v32 = vld [vmem:[#allocation106_spill] sm:$0xff]  ;;  %v7295_v53 = vld [vmem:[#allocation107_spill] sm:$0xff] }
 0x453   :  { %v5500_v62 = vadd.f32 %v1343_v52, %v1211_v35  ;;  %v1480_v33 = vmul.f32 %v7288_v59, %v7289_v34  ;;  %v1481_v42 = vmul.f32 %v7288_v59, %v7290_v41  ;;  %v1482_v10 = vmul.f32 %v7288_v59, %v7291_v9  ;;  %v7292_v18 = vld [vmem:[#allocation104_spill] sm:$0xff]  ;;  %v7297_v56 = vld [vmem:[#allocation109_spill] sm:$0xff]  ;;  %v7298_v41 = vld [vmem:[#allocation110_spill] sm:$0xff] }
 0x454   :  { %v1483_v12 = vmul.f32 %v7288_v59, %v7292_v18  ;;  %v1484_v39 = vmul.f32 %v7288_v59, %v7293_v54  ;;  %v1376_v38 = vadd.f32 %v1344_v60, %v1212_v63  ;;  %v1485_v35 = vmul.f32 %v7288_v59, %v7294_v32  ;;  %v7296_v58 = vld [vmem:[#allocation108_spill] sm:$0xff]  ;;  %v7299_v60 = vld [vmem:[#allocation111_spill] sm:$0xff] }
 0x455   :  { %v1486_v47 = vmul.f32 %v7288_v59, %v7295_v53  ;;  %v1487_v52 = vmul.f32 %v7288_v59, %v7296_v58  ;;  %v1377_v17 = vadd.f32 %v1345_v43, %v5394_v3  ;;  %v5519_v0 = vadd.f32 %v1479_v19, %v1347_v13  ;;  %v7300_v54 = vld [vmem:[#allocation112_spill] sm:$0xff]  ;;  %v7301_v53 = vld [vmem:[#allocation113_spill] sm:$0xff] }
 0x456   :  { %v1488_v34 = vmul.f32 %v7288_v59, %v7297_v56  ;;  %v1489_v9 = vmul.f32 %v7288_v59, %v7298_v41  ;;  %v1512_v63 = vadd.f32 %v1480_v33, %v5400_v44  ;;  %v1490_v18 = vmul.f32 %v7288_v59, %v7299_v60  ;;  %v7302_v41 = vld [vmem:[#allocation114_spill] sm:$0xff]  ;;  %v7309_v60 = vld [vmem:[#allocation121_spill] sm:$0xff] }
 0x457   :  { %v1491_v32 = vmul.f32 %v7288_v59, %v7300_v54  ;;  %v1492_v58 = vmul.f32 %v7288_v59, %v7301_v53  ;;  %v5533_v3 = vadd.f32 %v1481_v42, %v5409_v7  ;;  %v5536_v13 = vadd.f32 %v1482_v10, %v5412_v36  ;;  %v7304_v10 = vld [vmem:[#allocation116_spill] sm:$0xff]  ;;  %v7311_v54 = vld [vmem:[#allocation123_spill] sm:$0xff] }
 0x458   :  { %v5539_v43 = vadd.f32 %v1483_v12, %v5415_v15  ;;  %v5542_v44 = vadd.f32 %v1484_v39, %v5418_v50  ;;  %v5545_v19 = vadd.f32 %v1485_v35, %v5421_v28  ;;  %v5548_v33 = vadd.f32 %v1486_v47, %v5423_v29  ;;  %v7303_v15 = vld [vmem:[#allocation115_spill] sm:$0xff]  ;;  %v7305_v39 = vld [vmem:[#allocation117_spill] sm:$0xff]  ;;  %v7306_v35 = vld [vmem:[#allocation118_spill] sm:$0xff] }
 0x459   :  { %v5550_v56 = vadd.f32 %v1487_v52, %v1355_v25  ;;  %v1493_v7 = vmul.f32 %v7288_v59, %v7302_v41  ;;  %v5555_v36 = vadd.f32 %v1488_v34, %v5428_v57  ;;  %v5557_v42 = vadd.f32 %v1489_v9, %v1357_v37  ;;  %v7307_v47 = vld [vmem:[#allocation119_spill] sm:$0xff]  ;;  %v7308_v34 = vld [vmem:[#allocation120_spill] sm:$0xff] }
 0x45a   :  { %v1494_v50 = vmul.f32 %v7288_v59, %v7303_v15  ;;  %v1495_v28 = vmul.f32 %v7288_v59, %v7304_v10  ;;  %v5564_v12 = vadd.f32 %v1490_v18, %v5436_v4  ;;  %v5567_v29 = vadd.f32 %v1491_v32, %v5438_v5  ;;  %v7310_v5 = vld [vmem:[#allocation122_spill] sm:$0xff]  ;;  %v7312_v53 = vld [vmem:[#allocation124_spill] sm:$0xff]  ;;  %v7313_v10 = vld [vmem:[#allocation125_spill] sm:$0xff] }
 0x45b   :  { %v5569_v25 = vadd.f32 %v1492_v58, %v1360_v61  ;;  %v1496_v57 = vmul.f32 %v7288_v59, %v7305_v39  ;;  %v1497_v37 = vmul.f32 %v7288_v59, %v7306_v35  ;;  %v1498_v52 = vmul.f32 %v7288_v59, %v7307_v47  ;;  %v7314_v35 = vld [vmem:[#allocation126_spill] sm:$0xff]  ;;  %v7315_v47 = vld [vmem:[#allocation127_spill] sm:$0xff] }
 0x45c   :  { %v1499_v9 = vmul.f32 %v7288_v59, %v7308_v34  ;;  %v1500_v4 = vmul.f32 %v7288_v59, %v7309_v60  ;;  %v5581_v18 = vadd.f32 %v1493_v7, %v1361_v27  ;;  %v1501_v61 = vmul.f32 %v7288_v59, %v7310_v5  ;;  %v7316_v60 = vld [vmem:[#allocation17_spill] sm:$0xff] }
 0x45d   :  { %v1502_v32 = vmul.f32 %v7288_v59, %v7311_v54  ;;  %v1503_v58 = vmul.f32 %v7288_v59, %v7312_v53  ;;  %v5590_v41 = vadd.f32 %v1494_v50, %v5457_v30  ;;  %v1527_v15 = vadd.f32 %v1495_v28, %v1363_v49  ;;  %v7317_v54 = vld [vmem:[#allocation128_spill] sm:$0xff] }
 0x45e   :  { %v1504_v39 = vmul.f32 %v7288_v59, %v7313_v10  ;;  %v1505_v27 = vmul.f32 %v7288_v59, %v7314_v35  ;;  %v1528_v7 = vadd.f32 %v1496_v57, %v1364_v11  ;;  %v1506_v34 = vmul.f32 %v7288_v59, %v7315_v47  ;;  %v7318_v35 = vld [vmem:[#allocation129_spill] sm:$0xff] }
 0x45f   :  { %v1507_v5 = vmul.f32 %v7288_v59, %v7316_v60  ;;  %v1508_v53 = vmul.f32 %v7288_v59, %v7317_v54  ;;  %v1529_v30 = vadd.f32 %v1497_v37, %v5471_v20  ;;  %v1530_v49 = vadd.f32 %v1498_v52, %v5474_v40  ;;  %v7319_v54 = vld [vmem:[#allocation16_spill] sm:$0xff]  ;;  %v7320_v20 = vld [vmem:[#allocation147_spill] sm:$0xff]  ;;  %v7321_v40 = vld [vmem:[#allocation130_spill] sm:$0xff] }
 0x460   :  { %v1531_v50 = vadd.f32 %v1499_v9, %v5477_v2  ;;  %v1532_v28 = vadd.f32 %v1500_v4, %v5480_v51  ;;  %v1533_v10 = vadd.f32 %v1501_v61, %v5483_v46  ;;  %v1534_v11 = vadd.f32 %v1502_v32, %v5485_v22  ;;  %v7324_v9 = vld [vmem:[#allocation132_spill] sm:$0xff]  ;;  %v7325_v61 = vld [vmem:[#allocation133_spill] sm:$0xff] }
 0x461   :  { %v1535_v57 = vadd.f32 %v1503_v58, %v1371_v1  ;;  %v1509_v47 = vmul.f32 %v7288_v59, %v7318_v35  ;;  %v1536_v60 = vadd.f32 %v1504_v39, %v5490_v55  ;;  %v5611_v16 = vadd.f32 %v1505_v27, %v1373_v21  ;;  %v7322_v1 = vld [vmem:[#allocation19_spill] sm:$0xff]  ;;  %v7328_v27 = vld [vmem:[#allocation22_spill] sm:$0xff] }
 0x462   :  { %v1643_v37 = vmul.f32 %v7320_v20, %v7319_v54  ;;  %v1644_v2 = vmul.f32 %v7320_v20, %v7321_v40  ;;  %v1538_v51 = vadd.f32 %v1506_v34, %v5498_v45  ;;  %v5619_v46 = vadd.f32 %v1507_v5, %v5500_v62  ;;  %v7323_v55 = vld [vmem:[#allocation131_spill] sm:$0xff]  ;;  %v7326_v45 = vld [vmem:[#allocation84_spill] sm:$0xff] }
 0x463   :  { %v5621_v22 = vadd.f32 %v1508_v53, %v1376_v38  ;;  %v1659_v59 = vmul.f32 %v7320_v20, %v7322_v1  ;;  %v1660_v21 = vmul.f32 %v7320_v20, %v7323_v55  ;;  %v1645_v4 = vmul.f32 %v7320_v20, %v7324_v9  ;;  %v7327_v38 = vld [vmem:[#allocation134_spill] sm:$0xff]  ;;  %v7329_v5 = vld [vmem:[#allocation135_spill] sm:$0xff]  ;;  %v7331_v55 = vld [vmem:[#allocation136_spill] sm:$0xff] }
 0x464   :  { %v1646_v32 = vmul.f32 %v7320_v20, %v7325_v61  ;;  %v1661_v62 = vmul.f32 %v7320_v20, %v7326_v45  ;;  %v5635_v58 = vadd.f32 %v1509_v47, %v1377_v17  ;;  %v1662_v39 = vmul.f32 %v7320_v20, %v7327_v38  ;;  %v7330_v40 = vld [vmem:[#allocation83_spill] sm:$0xff]  ;;  %v7332_v9 = vld [vmem:[#allocation137_spill] sm:$0xff]  ;;  %v7333_v45 = vld [vmem:[#allocation138_spill] sm:$0xff] }
 0x465   :  { %v1647_v34 = vmul.f32 %v7320_v20, %v7328_v27  ;;  %v1648_v53 = vmul.f32 %v7320_v20, %v7329_v5  ;;  %v5644_v35 = vadd.f32 %v1643_v37, %v5519_v0  ;;  %v5646_v54 = vadd.f32 %v1644_v2, %v1512_v63  ;;  %v7334_v27 = vld [vmem:[#allocation93_spill] sm:$0xff] }
 0x466   :  { %v1663_v1 = vmul.f32 %v7320_v20, %v7330_v40  ;;  %v1664_v17 = vmul.f32 %v7320_v20, %v7331_v55  ;;  %v5652_v47 = vadd.f32 %v1659_v59, %v1527_v15  ;;  %v1649_v61 = vmul.f32 %v7320_v20, %v7332_v9  ;;  %v7336_v9 = vld [vmem:[#allocation88_spill] sm:$0xff] }
 0x467   :  { %v1650_v38 = vmul.f32 %v7320_v20, %v7333_v45  ;;  %v1665_v0 = vmul.f32 %v7320_v20, %v7334_v27  ;;  %v5662_v63 = vadd.f32 %v1660_v21, %v1528_v7  ;;  %v1677_v2 = vadd.f32 %v1645_v4, %v5533_v3  ;;  %v7337_v3 = vld [vmem:[#allocation86_spill] sm:$0xff] }
 0x468   :  { %v1678_v5 = vadd.f32 %v1646_v32, %v5536_v13  ;;  %v5666_v40 = vadd.f32 %v1661_v62, %v1529_v30  ;;  %v5668_v15 = vadd.f32 %v1662_v39, %v1530_v49  ;;  %v5671_v59 = vadd.f32 %v1647_v34, %v5539_v43  ;;  %v7338_v30 = vld [vmem:[#allocation139_spill] sm:$0xff]  ;;  %v7340_v32 = vld [vmem:[#allocation140_spill] sm:$0xff]  ;;  %v7343_v34 = vld [vmem:[#allocation98_spill] sm:$0xff] }
 0x469   :  { %v5674_v55 = vadd.f32 %v1648_v53, %v5542_v44  ;;  %v1666_v45 = vmul.f32 %v7320_v20, %v7336_v9  ;;  %v5678_v27 = vadd.f32 %v1663_v1, %v1531_v50  ;;  %v5680_v7 = vadd.f32 %v1664_v17, %v1532_v28  ;;  %v7342_v28 = vld [vmem:[#allocation92_spill] sm:$0xff]  ;;  %v7344_v1 = vld [vmem:[#allocation141_spill] sm:$0xff]  ;;  %v7345_v9 = vld [vmem:[#allocation143_spill] sm:$0xff] }
 0x46a   :  { %v1651_v13 = vmul.f32 %v7320_v20, %v7337_v3  ;;  %v1652_v49 = vmul.f32 %v7320_v20, %v7338_v30  ;;  %v1681_v43 = vadd.f32 %v1649_v61, %v5545_v19  ;;  %v1682_v44 = vadd.f32 %v1650_v38, %v5548_v33  ;;  %v7347_v38 = vld [vmem:[#allocation145_spill] sm:$0xff]  ;;  %v7348_v3 = vld [vmem:[#allocation96_spill] sm:$0xff] }
 0x46b   :  { %v5690_v4 = vadd.f32 %v1665_v0, %v1533_v10  ;;  %v1667_v50 = vmul.f32 %v7320_v20, %v7340_v32  ;;  %v1668_v39 = vmul.f32 %v7320_v20, %v7342_v28  ;;  %v1653_v53 = vmul.f32 %v7320_v20, %v7343_v34  ;;  %v7346_v10 = vld [vmem:[#allocation142_spill] sm:$0xff]  ;;  %v7349_v34 = vld [vmem:[#allocation148_spill] sm:$0xff] }
 0x46c   :  { %v1654_v17 = vmul.f32 %v7320_v20, %v7344_v1  ;;  %v1669_v19 = vmul.f32 %v7320_v20, %v7345_v9  ;;  %v5704_v33 = vadd.f32 %v1666_v45, %v1534_v11  ;;  %v1670_v61 = vmul.f32 %v7320_v20, %v7346_v10  ;;  %v7350_v45 = vld [vmem:[#allocation144_spill] sm:$0xff] }
 0x46d   :  { %v1655_v0 = vmul.f32 %v7320_v20, %v7347_v38  ;;  %v1656_v30 = vmul.f32 %v7320_v20, %v7348_v3  ;;  %v1683_v32 = vadd.f32 %v1651_v13, %v5550_v56  ;;  %v1684_v28 = vadd.f32 %v1652_v49, %v5555_v36 }
 0x46e   :  { %v1671_v1 = vmul.f32 %v7320_v20, %v7349_v34  ;;  %v2133_v9 = vsub.s32 6, %v7159_v48  ;;  %v5717_v11 = vadd.f32 %v1667_v50, %v1535_v57  ;;  %v1672_v10 = vmul.f32 %v7320_v20, %v7350_v45 }
 0x46f   :  { %v5727_v56 = vadd.f32 %v1668_v39, %v1536_v60  ;;  %v1685_v36 = vadd.f32 %v1653_v53, %v5557_v42  ;;  %v1686_v13 = vadd.f32 %v1654_v17, %v5564_v12  ;;  %v5732_v57 = vadd.f32 %v1669_v19, %v5611_v16  ;;  %v7354_v42 = vld [vmem:[#allocation153_spill] sm:$0xff]  ;;  %v7357_v19 = vld [vmem:[#allocation99_spill] sm:$0xff] }
 0x470   :  { %v5625_v52 = vpop.xlane.xlu1 %2113  ;;  %v5736_v50 = vadd.f32 %v1670_v61, %v1538_v51  ;;  %v1688_v34 = vadd.f32 %v1656_v30, %v5569_v25  ;;  %v5743_v60 = vadd.f32 %v1671_v1, %v5619_v46  ;;  %v1809_v12 = vmul.f32 %v5083_v23, %v7354_v42  ;;  %v7355_v39 = vld [vmem:[#allocation157_spill] sm:$0xff] }
 0x471   :  { %v1810_v16 = vmul.f32 %v5083_v23, %v7355_v39  ;;  %v5750_v53 = vrot.slane %v5080_v26, %v2133_v9  ;;  %v5753_v51 = vadd.f32 %v1672_v10, %v5621_v22  ;;  %v1808_v61 = vmul.f32 %v5083_v23, %v7357_v19  ;;  %v7359_v1 = vld [vmem:[#allocation81_spill] sm:$0xff]  ;;  %v7363_v19 = vld [vmem:[#allocation23_spill] sm:$0xff] }
 0x472   :  { %v1814_v9 = vmul.f32 %v5083_v23, %v7359_v1  ;;  %v5777_v39 = vadd.f32 %v1809_v12, %v1677_v2  ;;  %v1817_v1 = vmul.f32 %v5083_v23, %v5028_v8  ;;  %v1819_v2 = vmul.f32 %v5083_v23, %v5035_v31 }
 0x473   :  { %v5686_v21 = vpop.xlane.xlu0 %2115 }
 0x474   :  { %v5660_v37 = vpop.xlane.xlu1 %2117  ;;  %7339 = vst [vmem:[#allocation41_spill] sm:$0xff] %v5686_v21 }
 0x475   :  { %7335 = vst [vmem:[#allocation27_spill] sm:$0xff] %v5660_v37  ;;  %v7352_v37 = vld [vmem:[#allocation146_spill] sm:$0xff] }
 0x476   :  { %v1658_v3 = vmul.f32 %v7320_v20, %v7352_v37  ;;  %v7353_v37 = vld [vmem:[#allocation151_spill] sm:$0xff] }
 0x477   :  { %v5734_v49 = vpop.xlane.xlu0 %2119  ;;  %v1673_v45 = vmul.f32 %v7320_v20, %v7353_v37  ;;  %v7362_v37 = vld [vmem:[#allocation14_spill] sm:$0xff] }
 0x478   :  { %v5694_v62 = vpop.xlane.xlu1 %2121  ;;  %v5757_v25 = vadd.f32 %v1658_v3, %v5590_v41  ;;  %v7360_v41 = vld [vmem:[#allocation79_spill] sm:$0xff]  ;;  %v1815_v42 = vmul.f32 %v5083_v23, %v7362_v37 }
 0x479   :  { %7341 = vst [vmem:[#allocation29_spill] sm:$0xff] %v5694_v62  ;;  %v7351_v62 = vld [vmem:[#allocation150_spill] sm:$0xff]  ;;  %v1811_v10 = vmul.f32 %v5083_v23, %v7360_v41  ;;  %v1818_v41 = vmul.f32 %v5083_v23, %v5031_v24  ;;  %v2297_v24 = vsub.s32 7, %v7159_v48 }
 0x47a   :  { %v1657_v38 = vmul.f32 %v7320_v20, %v7351_v62  ;;  %v1687_v62 = vadd.f32 %v1655_v0, %v5567_v29  ;;  %v7356_v20 = vld [vmem:[#allocation158_spill] sm:$0xff]  ;;  %v7358_v0 = vld [vmem:[#allocation164_spill] sm:$0xff] }
 0x47b   :  { %v1807_v46 = vmul.f32 %v5083_v23, %v7356_v20  ;;  %v1813_v30 = vmul.f32 %v5083_v23, %v7358_v0  ;;  %v5779_v20 = vadd.f32 %v1810_v16, %v1678_v5  ;;  %v1816_v0 = vmul.f32 %v5083_v23, %v7363_v19 }
 0x47c   :  { %v5725_v21 = vpop.xlane.xlu1 %2125  ;;  %v1689_v29 = vadd.f32 %v1657_v38, %v5581_v18  ;;  %v5769_v18 = vadd.f32 %v1673_v45, %v5635_v58  ;;  %v7361_v38 = vld [vmem:[#allocation15_spill] sm:$0xff]  ;;  %v1840_v5 = vadd.f32 %v1808_v61, %v5646_v54  ;;  %v5798_v16 = vadd.f32 %v1814_v9, %v1682_v44  ;;  %v7364_v54 = vld [vmem:[#allocation94_spill] sm:$0xff]  ;;  %v7365_v44 = vld [vmem:[#allocation100_spill] sm:$0xff] }
 0x47d   :  { %v1812_v3 = vmul.f32 %v5083_v23, %v7361_v38  ;;  %v1839_v45 = vadd.f32 %v1807_v46, %v5644_v35  ;;  %v5796_v12 = vadd.f32 %v1813_v30, %v1681_v43  ;;  %v5803_v35 = vadd.f32 %v1811_v10, %v5671_v59  ;;  %v7366_v30 = vld [vmem:[#allocation103_spill] sm:$0xff]  ;;  %v7369_v10 = vld [vmem:[#allocation152_spill] sm:$0xff] }
 0x47e   :  { %v5808_v46 = vadd.f32 %v1815_v42, %v1683_v32  ;;  %v5811_v31 = vadd.f32 %v1816_v0, %v1684_v28  ;;  %v1821_v43 = vmul.f32 %v5083_v23, %v7364_v54  ;;  %v1823_v61 = vmul.f32 %v5083_v23, %v7365_v44  ;;  %v7367_v32 = vld [vmem:[#allocation165_spill] sm:$0xff]  ;;  %v7371_v42 = vld [vmem:[#allocation155_spill] sm:$0xff]  ;;  %v7373_v0 = vld [vmem:[#allocation156_spill] sm:$0xff] }
 0x47f   :  { %v5806_v8 = vadd.f32 %v1812_v3, %v5674_v55  ;;  %v5819_v59 = vadd.f32 %v1817_v1, %v1685_v36  ;;  %v5821_v9 = vadd.f32 %v1818_v41, %v1686_v13  ;;  %v5823_v55 = vadd.f32 %v1819_v2, %v1687_v62  ;;  %v7370_v3 = vld [vmem:[#allocation154_spill] sm:$0xff] }
 0x480   :  { %v2130_v17 = vpop.xlane.xlu1 %2129  ;;  %v1825_v38 = vmul.f32 %v5083_v23, %v7369_v10  ;;  %v1826_v37 = vmul.f32 %v5083_v23, %v7370_v3  ;;  %v1827_v19 = vmul.f32 %v5083_v23, %v7371_v42  ;;  %v7372_v13 = vld [vmem:[#allocation102_spill] sm:$0xff]  ;;  %v1828_v1 = vmul.f32 %v5083_v23, %v7373_v0  ;;  %v7376_v10 = vld [vmem:[#allocation85_spill] sm:$0xff]  ;;  %v7377_v42 = vld [vmem:[#allocation159_spill] sm:$0xff] }
 0x481   :  { %v2166_v22 = vmul.f32 %v5750_v53, %v2130_v17  ;;  %v5783_v17 = vpop.xlane.xlu0 %2123  ;;  %v5839_v62 = vmul.f32 %v5083_v23, %v7372_v13  ;;  %v5846_v2 = vrot.slane %v5080_v26, %v2297_v24  ;;  %v1855_v54 = vadd.f32 %v1823_v61, %v5652_v47 }
 0x482   :  { %v1829_v3 = vmul.f32 %v5083_v23, %v7376_v10  ;;  %v1830_v13 = vmul.f32 %v5083_v23, %v7377_v42  ;;  %v1858_v24 = vadd.f32 %v1826_v37, %v5668_v15  ;;  %v5863_v47 = vadd.f32 %v1827_v19, %v5678_v27  ;;  %v7380_v10 = vld [vmem:[#allocation196_spill] sm:$0xff] }
 0x483   :  { %v5786_v58 = vadd.f32 %v2166_v22, %v5182_v6  ;;  %v1820_v6 = vmul.f32 %v5083_v23, %v5038_v14  ;;  %v1824_v14 = vmul.f32 %v5083_v23, %v7366_v30  ;;  %v7368_v22 = vld [vmem:[#allocation189_spill] sm:$0xff]  ;;  %v7375_v30 = vld [vmem:[#allocation166_spill] sm:$0xff] }
 0x484   :  { %v1971_v48 = vmul.f32 %v7368_v22, %v7367_v32  ;;  %v1972_v32 = vmul.f32 %v7368_v22, %v7375_v30  ;;  %v5878_v37 = vadd.f32 %v1829_v3, %v5690_v4 }
 0x485   :  { %v5827_v28 = vadd.f32 %v1820_v6, %v1688_v34  ;;  %v5835_v36 = vpop.xlane.xlu0 %2127  ;;  %v7374_v34 = vld [vmem:[#allocation194_spill] sm:$0xff]  ;;  %v5848_v6 = vadd.f32 %v1821_v43, %v1689_v29  ;;  %v1856_v44 = vadd.f32 %v1824_v14, %v5662_v63  ;;  %v1857_v29 = vadd.f32 %v1825_v38, %v5666_v40  ;;  %v7379_v63 = vld [vmem:[#allocation197_spill] sm:$0xff]  ;;  %v7381_v40 = vld [vmem:[#allocation167_spill] sm:$0xff] }
 0x486   :  { %v2135_v41 = vmul.f32 %v5750_v53, %v7374_v34  ;;  %v2003_v0 = vadd.f32 %v1971_v48, %v1839_v45  ;;  %v7378_v34 = vld [vmem:[#allocation82_spill] sm:$0xff]  ;;  %v2136_v43 = vmul.f32 %v5750_v53, %v7379_v63  ;;  %v5868_v14 = vadd.f32 %v1828_v1, %v5680_v7  ;;  %v7382_v38 = vld [vmem:[#allocation13_spill] sm:$0xff]  ;;  %v7385_v63 = vld [vmem:[#allocation199_spill] sm:$0xff] }
 0x487   :  { %v1987_v26 = vmul.f32 %v7368_v22, %v7378_v34  ;;  %v2151_v45 = vmul.f32 %v5750_v53, %v7380_v10  ;;  %v2004_v42 = vadd.f32 %v1972_v32, %v1840_v5  ;;  %v1988_v15 = vmul.f32 %v7368_v22, %v7381_v40  ;;  %v7384_v5 = vld [vmem:[#allocation191_spill] sm:$0xff] }
 0x488   :  { %v2167_v30 = vadd.f32 %v2135_v41, %v2003_v0  ;;  %v1973_v27 = vmul.f32 %v7368_v22, %v7382_v38  ;;  %v5881_v7 = vadd.f32 %v1830_v13, %v5704_v33  ;;  %v7383_v41 = vld [vmem:[#allocation87_spill] sm:$0xff]  ;;  %v2137_v32 = vmul.f32 %v5750_v53, %v7384_v5  ;;  %v7388_v38 = vld [vmem:[#allocation161_spill] sm:$0xff] }
 0x489   :  { %v2019_v19 = vadd.f32 %v1987_v26, %v1855_v54  ;;  %v1831_v0 = vmul.f32 %v5083_v23, %v7383_v41  ;;  %v2168_v34 = vadd.f32 %v2136_v43, %v2004_v42  ;;  %v2020_v13 = vadd.f32 %v1988_v15, %v1856_v44  ;;  %v7387_v43 = vld [vmem:[#allocation149_spill] sm:$0xff] }
 0x48a   :  { %v2005_v26 = vadd.f32 %v1973_v27, %v5777_v39  ;;  %v1989_v42 = vmul.f32 %v7368_v22, %v7387_v43  ;;  %v7391_v15 = vld [vmem:[#allocation193_spill] sm:$0xff]  ;;  %v7392_v27 = vld [vmem:[#allocation192_spill] sm:$0xff] }
 0x48b   :  { %v2183_v4 = vadd.f32 %v2151_v45, %v2019_v19  ;;  %v1832_v45 = vmul.f32 %v5083_v23, %v7388_v38  ;;  %v7389_v19 = vld [vmem:[#allocation168_spill] sm:$0xff]  ;;  %v2138_v39 = vmul.f32 %v5750_v53, %v7391_v15 }
 0x48c   :  { %v1990_v41 = vmul.f32 %v7368_v22, %v7389_v19  ;;  %v2169_v44 = vadd.f32 %v2137_v32, %v2005_v26 }
 0x48d   :  { %v2232_v61 = vpop.xlane.xlu0 %2231 }
 0x48e   :  { %v2299_v48 = vmul.f32 %v5846_v2, %v2232_v61  ;;  %v2152_v61 = vmul.f32 %v5750_v53, %v7385_v63 }
 0x490   :  { %v5883_v1 = vadd.f32 %v2299_v48, %v2167_v30  ;;  %v7386_v30 = vld [vmem:[#allocation5_spill] sm:$0xff] }
 0x491   :  { %v2264_v10 = vpop.xlane.xlu0 %2263  ;;  %v2234_v40 = vpop.xlane.xlu1 %2233  ;;  %v1974_v48 = vmul.f32 %v7368_v22, %v7386_v30 }
 0x492   :  { %v2315_v3 = vmul.f32 %v5846_v2, %v2264_v10  ;;  %v2300_v33 = vmul.f32 %v5846_v2, %v2234_v40  ;;  %v2364_v54 = vsel %vm2363_vm0, %v5883_v1, 0.0  ;;  %v2153_v10 = vmul.f32 %v5750_v53, %v7392_v27 }
 0x493   :  { %2365 = vadd.xlane.f32.xlu0 %v2364_v54  ;;  %v2184_v40 = vadd.f32 %v2152_v61, %v2020_v13  ;;  %v2006_v32 = vadd.f32 %v1974_v48, %v5779_v20  ;;  %v5922_v61 = vadd.f32 %v1831_v0, %v5717_v11  ;;  %v2022_v13 = vadd.f32 %v1990_v41, %v1858_v24  ;;  %v7395_v20 = vld [vmem:[#allocation202_spill] sm:$0xff] }
 0x494   :  { %v5904_v5 = vadd.f32 %v2315_v3, %v2183_v4  ;;  %v5906_v63 = vadd.f32 %v2300_v33, %v2168_v34  ;;  %v2021_v3 = vadd.f32 %v1989_v42, %v1857_v29  ;;  %v7393_v33 = vld [vmem:[#allocation169_spill] sm:$0xff]  ;;  %v2139_v29 = vmul.f32 %v5750_v53, %v7395_v20  ;;  %v7400_v20 = vld [vmem:[#allocation204_spill] sm:$0xff] }
 0x495   :  { %v2236_v30 = vpop.xlane.xlu0 %2235  ;;  %v2266_v54 = vpop.xlane.xlu1 %2265  ;;  %v1975_v26 = vmul.f32 %v7368_v22, %v7393_v33  ;;  %v2170_v27 = vadd.f32 %v2138_v39, %v2006_v32 }
 0x496   :  { %7390 = vst [vmem:[#allocation32_spill] sm:$0xff] %v5906_v63  ;;  %v2301_v43 = vmul.f32 %v5846_v2, %v2236_v30  ;;  %v2316_v38 = vmul.f32 %v5846_v2, %v2266_v54  ;;  %v2412_v4 = vsel %vm2363_vm0, %v5904_v5, 0.0  ;;  %v2367_v34 = vsel %vm2363_vm0, %v5906_v63, 0.0  ;;  %v7394_v54 = vld [vmem:[#allocation195_spill] sm:$0xff] }
 0x497   :  { %2413 = vadd.xlane.f32.xlu0 %v2412_v4  ;;  %2368 = vadd.xlane.f32.xlu1 %v2367_v34  ;;  %v2185_v30 = vadd.f32 %v2153_v10, %v2021_v3  ;;  %v2154_v63 = vmul.f32 %v5750_v53, %v7394_v54  ;;  %v2007_v41 = vadd.f32 %v1975_v26, %v5803_v35  ;;  %v7397_v10 = vld [vmem:[#allocation171_spill] sm:$0xff] }
 0x498   :  { %v5924_v19 = vadd.f32 %v2301_v43, %v2169_v44  ;;  %v5926_v15 = vadd.f32 %v2316_v38, %v2184_v40  ;;  %v7396_v44 = vld [vmem:[#allocation170_spill] sm:$0xff]  ;;  %v1991_v40 = vmul.f32 %v7368_v22, %v7397_v10  ;;  %v5944_v43 = vadd.f32 %v1832_v45, %v5727_v56  ;;  %v7398_v38 = vld [vmem:[#allocation172_spill] sm:$0xff]  ;;  %v7399_v35 = vld [vmem:[#allocation203_spill] sm:$0xff] }
 0x499   :  { %v2268_v48 = vpop.xlane.xlu0 %2267  ;;  %v2238_v42 = vpop.xlane.xlu1 %2237  ;;  %v1976_v39 = vmul.f32 %v7368_v22, %v7396_v44  ;;  %v1992_v34 = vmul.f32 %v7368_v22, %v7398_v38  ;;  %v2186_v33 = vadd.f32 %v2154_v63, %v2022_v13  ;;  %v2140_v26 = vmul.f32 %v5750_v53, %v7399_v35  ;;  %v7403_v38 = vld [vmem:[#allocation198_spill] sm:$0xff] }
 0x49a   :  { %v2317_v4 = vmul.f32 %v5846_v2, %v2268_v48  ;;  %v2302_v11 = vmul.f32 %v5846_v2, %v2238_v42  ;;  %v2370_v24 = vsel %vm2363_vm0, %v5924_v19, 0.0  ;;  %v2415_v0 = vsel %vm2363_vm0, %v5926_v15, 0.0 }
 0x49b   :  { %2371 = vadd.xlane.f32.xlu0 %v2370_v24  ;;  %2416 = vadd.xlane.f32.xlu1 %v2415_v0  ;;  %v2171_v54 = vadd.f32 %v2139_v29, %v2007_v41  ;;  %v2155_v48 = vmul.f32 %v5750_v53, %v7400_v20  ;;  %v2008_v63 = vadd.f32 %v1976_v39, %v5806_v8  ;;  %v7401_v29 = vld [vmem:[#allocation173_spill] sm:$0xff]  ;;  %v7404_v39 = vld [vmem:[#allocation95_spill] sm:$0xff] }
 0x49c   :  { %v5948_v32 = vadd.f32 %v2317_v4, %v2185_v30  ;;  %v5950_v3 = vadd.f32 %v2302_v11, %v2170_v27  ;;  %v2023_v13 = vadd.f32 %v1991_v40, %v5863_v47  ;;  %v1977_v4 = vmul.f32 %v7368_v22, %v7401_v29  ;;  %v7402_v11 = vld [vmem:[#allocation90_spill] sm:$0xff] }
 0x49d   :  { %v2240_v42 = vpop.xlane.xlu0 %2239  ;;  %v2270_v24 = vpop.xlane.xlu1 %2269  ;;  %v1833_v0 = vmul.f32 %v5083_v23, %v7402_v11  ;;  %v2024_v41 = vadd.f32 %v1992_v34, %v5868_v14  ;;  %v2141_v35 = vmul.f32 %v5750_v53, %v7403_v38  ;;  %v2172_v8 = vadd.f32 %v2140_v26, %v2008_v63  ;;  %v7408_v63 = vld [vmem:[#allocation176_spill] sm:$0xff] }
 0x49e   :  { %v2303_v56 = vmul.f32 %v5846_v2, %v2240_v42  ;;  %v2318_v45 = vmul.f32 %v5846_v2, %v2270_v24  ;;  %v2418_v30 = vsel %vm2363_vm0, %v5948_v32, 0.0  ;;  %v2373_v27 = vsel %vm2363_vm0, %v5950_v3, 0.0 }
 0x49f   :  { %2419 = vadd.xlane.f32.xlu0 %v2418_v30  ;;  %2374 = vadd.xlane.f32.xlu1 %v2373_v27  ;;  %v2156_v47 = vmul.f32 %v5750_v53, %v7404_v39  ;;  %v2187_v40 = vadd.f32 %v2155_v48, %v2023_v13  ;;  %v1994_v13 = vmul.f32 %v7368_v22, %v7408_v63  ;;  %v7410_v39 = vld [vmem:[#allocation200_spill] sm:$0xff] }
 0x4a0   :  { %v5969_v44 = vadd.f32 %v2303_v56, %v2171_v54  ;;  %v5971_v10 = vadd.f32 %v2318_v45, %v2186_v33  ;;  %v2009_v33 = vadd.f32 %v1977_v4, %v5796_v12  ;;  %v7405_v54 = vld [vmem:[#allocation174_spill] sm:$0xff]  ;;  %v7406_v56 = vld [vmem:[#allocation175_spill] sm:$0xff]  ;;  %v7407_v45 = vld [vmem:[#allocation160_spill] sm:$0xff] }
 0x4a1   :  { %v2272_v20 = vpop.xlane.xlu0 %2271  ;;  %v2242_v42 = vpop.xlane.xlu1 %2241  ;;  %v1978_v26 = vmul.f32 %v7368_v22, %v7405_v54  ;;  %v1993_v48 = vmul.f32 %v7368_v22, %v7406_v56  ;;  %v1834_v27 = vmul.f32 %v5083_v23, %v7407_v45  ;;  %v7409_v12 = vld [vmem:[#allocation201_spill] sm:$0xff] }
 0x4a2   :  { %v2319_v24 = vmul.f32 %v5846_v2, %v2272_v20  ;;  %v2304_v30 = vmul.f32 %v5846_v2, %v2242_v42  ;;  %v2376_v14 = vsel %vm2363_vm0, %v5969_v44, 0.0  ;;  %v2421_v34 = vsel %vm2363_vm0, %v5971_v10, 0.0 }
 0x4a3   :  { %2377 = vadd.xlane.f32.xlu0 %v2376_v14  ;;  %2422 = vadd.xlane.f32.xlu1 %v2421_v34  ;;  %v2173_v38 = vadd.f32 %v2141_v35, %v2009_v33  ;;  %v2142_v4 = vmul.f32 %v5750_v53, %v7409_v12  ;;  %v2157_v20 = vmul.f32 %v5750_v53, %v7410_v39 }
 0x4a4   :  { %v5992_v29 = vadd.f32 %v2319_v24, %v2187_v40  ;;  %v5994_v11 = vadd.f32 %v2304_v30, %v2172_v8  ;;  %v2188_v42 = vadd.f32 %v2156_v47, %v2024_v41  ;;  %v2010_v35 = vadd.f32 %v1978_v26, %v5798_v16  ;;  %v7411_v30 = vld [vmem:[#allocation177_spill] sm:$0xff] }
 0x4a5   :  { %v2244_v14 = vpop.xlane.xlu0 %2243  ;;  %v2274_v34 = vpop.xlane.xlu1 %2273  ;;  %v2025_v24 = vadd.f32 %v1993_v48, %v5878_v37  ;;  %v1979_v33 = vmul.f32 %v7368_v22, %v7411_v30  ;;  %v6011_v41 = vadd.f32 %v1833_v0, %v5732_v57  ;;  %v2026_v47 = vadd.f32 %v1994_v13, %v5881_v7 }
 0x4a6   :  { %v2305_v54 = vmul.f32 %v5846_v2, %v2244_v14  ;;  %v2320_v56 = vmul.f32 %v5846_v2, %v2274_v34  ;;  %v2424_v40 = vsel %vm2363_vm0, %v5992_v29, 0.0  ;;  %v2379_v8 = vsel %vm2363_vm0, %v5994_v11, 0.0  ;;  %v7412_v14 = vld [vmem:[#allocation206_spill] sm:$0xff] }
 0x4a7   :  { %2425 = vadd.xlane.f32.xlu0 %v2424_v40  ;;  %2380 = vadd.xlane.f32.xlu1 %v2379_v8  ;;  %v2174_v12 = vadd.f32 %v2142_v4, %v2010_v35  ;;  %v2189_v39 = vadd.f32 %v2157_v20, %v2025_v24  ;;  %v2143_v16 = vmul.f32 %v5750_v53, %v7412_v14  ;;  %v7414_v20 = vld [vmem:[#allocation163_spill] sm:$0xff] }
 0x4a8   :  { %v6014_v45 = vadd.f32 %v2305_v54, %v2173_v38  ;;  %v6016_v63 = vadd.f32 %v2320_v56, %v2188_v42  ;;  %v2158_v37 = vmul.f32 %v5750_v53, %v5625_v52  ;;  %v2011_v13 = vadd.f32 %v1979_v33, %v5808_v46  ;;  %v7413_v38 = vld [vmem:[#allocation178_spill] sm:$0xff]  ;;  %v7415_v54 = vld [vmem:[#allocation179_spill] sm:$0xff]  ;;  %v7417_v33 = vld [vmem:[#allocation41_spill] sm:$0xff] }
 0x4a9   :  { %v2276_v26 = vpop.xlane.xlu0 %2275  ;;  %v2246_v48 = vpop.xlane.xlu1 %2245  ;;  %v1980_v4 = vmul.f32 %v7368_v22, %v7413_v38  ;;  %v1995_v52 = vmul.f32 %v7368_v22, %v7414_v20  ;;  %v1866_v42 = vadd.f32 %v1834_v27, %v5736_v50  ;;  %v1996_v56 = vmul.f32 %v7368_v22, %v7415_v54  ;;  %v7416_v35 = vld [vmem:[#allocation207_spill] sm:$0xff]  ;;  %v7420_v20 = vld [vmem:[#allocation205_spill] sm:$0xff] }
 0x4aa   :  { %v2321_v34 = vmul.f32 %v5846_v2, %v2276_v26  ;;  %v2306_v57 = vmul.f32 %v5846_v2, %v2246_v48  ;;  %v2382_v7 = vsel %vm2363_vm0, %v6014_v45, 0.0  ;;  %v2427_v0 = vsel %vm2363_vm0, %v6016_v63, 0.0 }
 0x4ab   :  { %2383 = vadd.xlane.f32.xlu0 %v2382_v7  ;;  %2428 = vadd.xlane.f32.xlu1 %v2427_v0  ;;  %v2144_v46 = vmul.f32 %v5750_v53, %v7416_v35  ;;  %v2175_v24 = vadd.f32 %v2143_v16, %v2011_v13  ;;  %v2190_v30 = vadd.f32 %v2158_v37, %v2026_v47  ;;  %v7418_v47 = vld [vmem:[#allocation180_spill] sm:$0xff] }
 0x4ac   :  { %v6036_v40 = vadd.f32 %v2321_v34, %v2189_v39  ;;  %v6038_v8 = vadd.f32 %v2306_v57, %v2174_v12  ;;  %v2159_v14 = vmul.f32 %v5750_v53, %v7417_v33  ;;  %v2012_v39 = vadd.f32 %v1980_v4, %v5811_v31  ;;  %v7419_v34 = vld [vmem:[#allocation91_spill] sm:$0xff] }
 0x4ad   :  { %v2248_v26 = vpop.xlane.xlu0 %2247  ;;  %v2278_v48 = vpop.xlane.xlu1 %2277  ;;  %v2027_v16 = vadd.f32 %v1995_v52, %v5922_v61  ;;  %v1981_v37 = vmul.f32 %v7368_v22, %v7418_v47  ;;  %v1835_v57 = vmul.f32 %v5083_v23, %v7419_v34  ;;  %v2028_v0 = vadd.f32 %v1996_v56, %v5944_v43  ;;  %v7421_v61 = vld [vmem:[#allocation27_spill] sm:$0xff]  ;;  %v7426_v34 = vld [vmem:[#allocation89_spill] sm:$0xff] }
 0x4ae   :  { %v2307_v7 = vmul.f32 %v5846_v2, %v2248_v26  ;;  %v2322_v50 = vmul.f32 %v5846_v2, %v2278_v48  ;;  %v2430_v27 = vsel %vm2363_vm0, %v6036_v40, 0.0  ;;  %v2385_v12 = vsel %vm2363_vm0, %v6038_v8, 0.0 }
 0x4af   :  { %2431 = vadd.xlane.f32.xlu0 %v2430_v27  ;;  %2386 = vadd.xlane.f32.xlu1 %v2385_v12  ;;  %v2145_v54 = vmul.f32 %v5750_v53, %v7420_v20  ;;  %v2176_v31 = vadd.f32 %v2144_v46, %v2012_v39  ;;  %v2191_v4 = vadd.f32 %v2159_v14, %v2027_v16  ;;  %v7423_v14 = vld [vmem:[#allocation182_spill] sm:$0xff]  ;;  %v7425_v12 = vld [vmem:[#allocation183_spill] sm:$0xff] }
 0x4b0   :  { %v6057_v13 = vadd.f32 %v2307_v7, %v2175_v24  ;;  %v6059_v38 = vadd.f32 %v2322_v50, %v2190_v30  ;;  %v2160_v52 = vmul.f32 %v5750_v53, %v7421_v61  ;;  %v2013_v24 = vadd.f32 %v1981_v37, %v5819_v59  ;;  %v7422_v30 = vld [vmem:[#allocation181_spill] sm:$0xff]  ;;  %v7424_v50 = vld [vmem:[#allocation162_spill] sm:$0xff] }
 0x4b1   :  { %v2280_v35 = vpop.xlane.xlu0 %2279  ;;  %v2250_v33 = vpop.xlane.xlu1 %2249  ;;  %v1982_v46 = vmul.f32 %v7368_v22, %v7422_v30  ;;  %v1997_v7 = vmul.f32 %v7368_v22, %v7423_v14  ;;  %v1836_v27 = vmul.f32 %v5083_v23, %v7424_v50  ;;  %v1998_v39 = vmul.f32 %v7368_v22, %v7425_v12  ;;  %v7428_v50 = vld [vmem:[#allocation210_spill] sm:$0xff] }
 0x4b2   :  { %v2323_v26 = vmul.f32 %v5846_v2, %v2280_v35  ;;  %v2308_v48 = vmul.f32 %v5846_v2, %v2250_v33  ;;  %v2388_v43 = vsel %vm2363_vm0, %v6057_v13, 0.0  ;;  %v2433_v56 = vsel %vm2363_vm0, %v6059_v38, 0.0 }
 0x4b3   :  { %2389 = vadd.xlane.f32.xlu0 %v2388_v43  ;;  %2434 = vadd.xlane.f32.xlu1 %v2433_v56  ;;  %v2146_v59 = vmul.f32 %v5750_v53, %v7426_v34  ;;  %v2177_v37 = vadd.f32 %v2145_v54, %v2013_v24  ;;  %v2192_v20 = vadd.f32 %v2160_v52, %v2028_v0  ;;  %v7427_v0 = vld [vmem:[#allocation184_spill] sm:$0xff] }
 0x4b4   :  { %v6080_v16 = vadd.f32 %v2323_v26, %v2191_v4  ;;  %v6082_v47 = vadd.f32 %v2308_v48, %v2176_v31  ;;  %v2161_v61 = vmul.f32 %v5750_v53, %v5734_v49  ;;  %v2014_v26 = vadd.f32 %v1982_v46, %v5821_v9  ;;  %v7429_v9 = vld [vmem:[#allocation29_spill] sm:$0xff] }
 0x4b5   :  { %v2252_v35 = vpop.xlane.xlu0 %2251  ;;  %v2282_v33 = vpop.xlane.xlu1 %2281  ;;  %v2029_v54 = vadd.f32 %v1997_v7, %v6011_v41  ;;  %v1983_v52 = vmul.f32 %v7368_v22, %v7427_v0  ;;  %v1867_v49 = vadd.f32 %v1835_v57, %v5743_v60  ;;  %v2030_v48 = vadd.f32 %v1998_v39, %v1866_v42  ;;  %v7430_v39 = vld [vmem:[#allocation101_spill] sm:$0xff] }
 0x4b6   :  { %v2309_v43 = vmul.f32 %v5846_v2, %v2252_v35  ;;  %v2324_v56 = vmul.f32 %v5846_v2, %v2282_v33  ;;  %v2436_v4 = vsel %vm2363_vm0, %v6080_v16, 0.0  ;;  %v2391_v31 = vsel %vm2363_vm0, %v6082_v47, 0.0 }
 0x4b7   :  { %2437 = vadd.xlane.f32.xlu0 %v2436_v4  ;;  %2392 = vadd.xlane.f32.xlu1 %v2391_v31  ;;  %v2178_v14 = vadd.f32 %v2146_v59, %v2014_v26  ;;  %v2147_v12 = vmul.f32 %v5750_v53, %v7428_v50  ;;  %v2193_v34 = vadd.f32 %v2161_v61, %v2029_v54  ;;  %v7433_v26 = vld [vmem:[#allocation211_spill] sm:$0xff] }
 0x4b8   :  { %v6099_v24 = vadd.f32 %v2309_v43, %v2177_v37  ;;  %v6101_v30 = vadd.f32 %v2324_v56, %v2192_v20  ;;  %v2162_v41 = vmul.f32 %v5750_v53, %v7429_v9  ;;  %v2015_v57 = vadd.f32 %v1983_v52, %v5823_v55  ;;  %v7431_v37 = vld [vmem:[#allocation185_spill] sm:$0xff]  ;;  %v7432_v43 = vld [vmem:[#allocation186_spill] sm:$0xff] }
 0x4b9   :  { %v2284_v46 = vpop.xlane.xlu0 %2283  ;;  %v2254_v7 = vpop.xlane.xlu1 %2253  ;;  %v1984_v59 = vmul.f32 %v7368_v22, %v7430_v39  ;;  %v1999_v20 = vmul.f32 %v7368_v22, %v7431_v37  ;;  %v1868_v61 = vadd.f32 %v1836_v27, %v5753_v51  ;;  %v2000_v56 = vmul.f32 %v7368_v22, %v7432_v43 }
 0x4ba   :  { %v2325_v35 = vmul.f32 %v5846_v2, %v2284_v46  ;;  %v2310_v33 = vmul.f32 %v5846_v2, %v2254_v7  ;;  %v2394_v60 = vsel %vm2363_vm0, %v6099_v24, 0.0  ;;  %v2439_v42 = vsel %vm2363_vm0, %v6101_v30, 0.0 }
 0x4bb   :  { %2395 = vadd.xlane.f32.xlu0 %v2394_v60  ;;  %2440 = vadd.xlane.f32.xlu1 %v2439_v42  ;;  %v2148_v55 = vmul.f32 %v5750_v53, %v7433_v26  ;;  %v2179_v54 = vadd.f32 %v2147_v12, %v2015_v57  ;;  %v2194_v0 = vadd.f32 %v2162_v41, %v2030_v48  ;;  %v7434_v12 = vld [vmem:[#allocation188_spill] sm:$0xff]  ;;  %v7437_v26 = vld [vmem:[#allocation187_spill] sm:$0xff] }
 0x4bc   :  { %v6121_v4 = vadd.f32 %v2325_v35, %v2193_v34  ;;  %v6123_v31 = vadd.f32 %v2310_v33, %v2178_v14  ;;  %v2163_v52 = vmul.f32 %v5750_v53, %v5783_v17  ;;  %v2016_v34 = vadd.f32 %v1984_v59, %v5827_v28  ;;  %v7435_v17 = vld [vmem:[#allocation97_spill] sm:$0xff]  ;;  %v7436_v42 = vld [vmem:[#allocation208_spill] sm:$0xff] }
 0x4bd   :  { %v2256_v50 = vpop.xlane.xlu0 %2255  ;;  %v2286_v9 = vpop.xlane.xlu1 %2285  ;;  %v2031_v7 = vadd.f32 %v1999_v20, %v1867_v49  ;;  %v1985_v48 = vmul.f32 %v7368_v22, %v7434_v12  ;;  %v1837_v41 = vmul.f32 %v5083_v23, %v7435_v17  ;;  %v2032_v35 = vadd.f32 %v2000_v56, %v1868_v61 }
 0x4be   :  { %v2311_v46 = vmul.f32 %v5846_v2, %v2256_v50  ;;  %v2326_v51 = vmul.f32 %v5846_v2, %v2286_v9  ;;  %v2442_v27 = vsel %vm2363_vm0, %v6121_v4, 0.0  ;;  %v2397_v14 = vsel %vm2363_vm0, %v6123_v31, 0.0 }
 0x4bf   :  { %2443 = vadd.xlane.f32.xlu0 %v2442_v27  ;;  %2398 = vadd.xlane.f32.xlu1 %v2397_v14  ;;  %v2149_v57 = vmul.f32 %v5750_v53, %v7436_v42  ;;  %v2180_v39 = vadd.f32 %v2148_v55, %v2016_v34  ;;  %v2195_v37 = vadd.f32 %v2163_v52, %v2031_v7 }
 0x4c0   :  { %v6140_v33 = vadd.f32 %v2311_v46, %v2179_v54  ;;  %v6142_v60 = vadd.f32 %v2326_v51, %v2194_v0  ;;  %v2164_v28 = vmul.f32 %v5750_v53, %v5725_v21  ;;  %v2017_v56 = vadd.f32 %v1985_v48, %v5848_v6  ;;  %v7438_v54 = vld [vmem:[#allocation190_spill] sm:$0xff]  ;;  %v7439_v46 = vld [vmem:[#allocation209_spill] sm:$0xff] }
 0x4c1   :  { %v2288_v49 = vpop.xlane.xlu0 %2287  ;;  %v2258_v59 = vpop.xlane.xlu1 %2257  ;;  %v1986_v55 = vmul.f32 %v7368_v22, %v7437_v26  ;;  %v2001_v21 = vmul.f32 %v7368_v22, %v7438_v54  ;;  %v1854_v0 = vadd.f32 %v5839_v62, %v5757_v25  ;;  %v1869_v52 = vadd.f32 %v1837_v41, %v5769_v18 }
 0x4c2   :  { %v2327_v20 = vmul.f32 %v5846_v2, %v2288_v49  ;;  %v2312_v43 = vmul.f32 %v5846_v2, %v2258_v59  ;;  %v2400_v23 = vsel %vm2363_vm0, %v6140_v33, 0.0  ;;  %v2445_v61 = vsel %vm2363_vm0, %v6142_v60, 0.0 }
 0x4c3   :  { %2401 = vadd.xlane.f32.xlu0 %v2400_v23  ;;  %2446 = vadd.xlane.f32.xlu1 %v2445_v61  ;;  %v2150_v6 = vmul.f32 %v5750_v53, %v7439_v46  ;;  %v2181_v51 = vadd.f32 %v2149_v57, %v2017_v56  ;;  %v2196_v27 = vadd.f32 %v2164_v28, %v2032_v35 }
 0x4c4   :  { %v6162_v50 = vadd.f32 %v2327_v20, %v2195_v37  ;;  %v6164_v9 = vadd.f32 %v2312_v43, %v2180_v39  ;;  %v2165_v14 = vmul.f32 %v5750_v53, %v5835_v36  ;;  %v2018_v12 = vadd.f32 %v1986_v55, %v1854_v0 }
 0x4c5   :  { %v2260_v22 = vpop.xlane.xlu0 %2259  ;;  %v2290_v34 = vpop.xlane.xlu1 %2289  ;;  %v2033_v48 = vadd.f32 %v2001_v21, %v1869_v52 }
 0x4c6   :  { %v2313_v7 = vmul.f32 %v5846_v2, %v2260_v22  ;;  %v2328_v25 = vmul.f32 %v5846_v2, %v2290_v34  ;;  %v2448_v18 = vsel %vm2363_vm0, %v6162_v50, 0.0  ;;  %v2403_v62 = vsel %vm2363_vm0, %v6164_v9, 0.0 }
 0x4c7   :  { %2449 = vadd.xlane.f32.xlu0 %v2448_v18  ;;  %2404 = vadd.xlane.f32.xlu1 %v2403_v62  ;;  %v2182_v53 = vadd.f32 %v2150_v6, %v2018_v12  ;;  %v2197_v36 = vadd.f32 %v2165_v14, %v2033_v48 }
 0x4c8   :  { %v6176_v17 = vadd.f32 %v2313_v7, %v2181_v51  ;;  %v6178_v41 = vadd.f32 %v2328_v25, %v2196_v27 }
 0x4c9   :  { %v2292_v35 = vpop.xlane.xlu0 %2291  ;;  %v2262_v42 = vpop.xlane.xlu1 %2261 }
 0x4ca   :  { %v2329_v57 = vmul.f32 %v5846_v2, %v2292_v35  ;;  %v2314_v39 = vmul.f32 %v5846_v2, %v2262_v42  ;;  %v2406_v37 = vsel %vm2363_vm0, %v6176_v17, 0.0  ;;  %v2451_v28 = vsel %vm2363_vm0, %v6178_v41, 0.0 }
 0x4cb   :  { %2407 = vadd.xlane.f32.xlu0 %v2406_v37  ;;  %2452 = vadd.xlane.f32.xlu1 %v2451_v28 }
 0x4cc   :  { %v6186_v49 = vadd.f32 %v2329_v57, %v2197_v36  ;;  %v6188_v59 = vadd.f32 %v2314_v39, %v2182_v53 }
 0x4cd   :  { %v2294_v20 = vpop.xlane.xlu1 %2293 }
 0x4ce   :  { %v2330_v43 = vmul.f32 %v5846_v2, %v2294_v20  ;;  %v2454_v23 = vsel %vm2363_vm0, %v6186_v49, 0.0  ;;  %v2409_v61 = vsel %vm2363_vm0, %v6188_v59, 0.0 }
 0x4cf   :  { %2455 = vadd.xlane.f32.xlu0 %v2454_v23  ;;  %2410 = vadd.xlane.f32.xlu1 %v2409_v61 }
 0x4d0   :  { %v6196_v56 = vadd.f32 %v2330_v43, %v5786_v58  ;;  %v7440_v58 = vld [vmem:[#allocation32_spill] sm:$0xff] }
 0x4d2   :  { %v2457_v26 = vsel %vm2363_vm0, %v6196_v56, 0.0 }
 0x4d3   :  { %2458 = vadd.xlane.f32.xlu1 %v2457_v26 }
 0x520   :  { %v2366_v55 = vpop.xlane.xlu0 %2365 }
 0x521   :  { %v2461_v54 = vmul.f32 0.03125, %v2366_v55 }
 0x523   :  { %v6201_v21 = vsub.f32 %v5883_v1, %v2461_v54 }
 0x524   :  { %v2414_v2 = vpop.xlane.xlu0 %2413  ;;  %v2369_v0 = vpop.xlane.xlu1 %2368 }
 0x525   :  { %v2477_v52 = vmul.f32 0.03125, %v2414_v2  ;;  %v2462_v46 = vmul.f32 0.03125, %v2369_v0  ;;  %v2525_v6 = vmul.f32 %v6201_v21, %v6201_v21 }
 0x527   :  { %v6206_v51 = vsub.f32 %v5904_v5, %v2477_v52  ;;  %v6209_v27 = vsub.f32 %v7440_v58, %v2462_v46  ;;  %v2557_v14 = vsel %vm2363_vm0, %v2525_v6, 0.0 }
 0x528   :  { %2558 = vadd.xlane.f32.xlu0 %v2557_v14  ;;  %v2372_v22 = vpop.xlane.xlu0 %2371  ;;  %v2417_v34 = vpop.xlane.xlu1 %2416 }
 0x529   :  { %v2463_v1 = vmul.f32 0.03125, %v2372_v22  ;;  %v2478_v7 = vmul.f32 0.03125, %v2417_v34  ;;  %v2541_v25 = vmul.f32 %v6206_v51, %v6206_v51  ;;  %v2526_v18 = vmul.f32 %v6209_v27, %v6209_v27 }
 0x52b   :  { %v6217_v62 = vsub.f32 %v5924_v19, %v2463_v1  ;;  %v6220_v5 = vsub.f32 %v5926_v15, %v2478_v7  ;;  %v2605_v12 = vsel %vm2363_vm0, %v2541_v25, 0.0  ;;  %v2560_v48 = vsel %vm2363_vm0, %v2526_v18, 0.0 }
 0x52c   :  { %2606 = vadd.xlane.f32.xlu0 %v2605_v12  ;;  %v2420_v53 = vpop.xlane.xlu0 %2419  ;;  %2561 = vadd.xlane.f32.xlu1 %v2560_v48  ;;  %v2375_v36 = vpop.xlane.xlu1 %2374 }
 0x52d   :  { %v2479_v35 = vmul.f32 0.03125, %v2420_v53  ;;  %v2464_v42 = vmul.f32 0.03125, %v2375_v36  ;;  %v2527_v57 = vmul.f32 %v6217_v62, %v6217_v62  ;;  %v2542_v19 = vmul.f32 %v6220_v5, %v6220_v5 }
 0x52f   :  { %v6229_v39 = vsub.f32 %v5948_v32, %v2479_v35  ;;  %v6232_v15 = vsub.f32 %v5950_v3, %v2464_v42  ;;  %v2563_v37 = vsel %vm2363_vm0, %v2527_v57, 0.0  ;;  %v2608_v28 = vsel %vm2363_vm0, %v2542_v19, 0.0 }
 0x530   :  { %2564 = vadd.xlane.f32.xlu0 %v2563_v37  ;;  %v2378_v20 = vpop.xlane.xlu0 %2377  ;;  %2609 = vadd.xlane.f32.xlu1 %v2608_v28  ;;  %v2423_v43 = vpop.xlane.xlu1 %2422 }
 0x531   :  { %v2465_v23 = vmul.f32 0.03125, %v2378_v20  ;;  %v2480_v61 = vmul.f32 0.03125, %v2423_v43  ;;  %v2543_v26 = vmul.f32 %v6229_v39, %v6229_v39  ;;  %v2528_v32 = vmul.f32 %v6232_v15, %v6232_v15 }
 0x533   :  { %v6241_v55 = vsub.f32 %v5969_v44, %v2465_v23  ;;  %v6244_v3 = vsub.f32 %v5971_v10, %v2480_v61  ;;  %v2611_v54 = vsel %vm2363_vm0, %v2543_v26, 0.0  ;;  %v2566_v2 = vsel %vm2363_vm0, %v2528_v32, 0.0 }
 0x534   :  { %2612 = vadd.xlane.f32.xlu0 %v2611_v54  ;;  %v2426_v0 = vpop.xlane.xlu0 %2425  ;;  %2567 = vadd.xlane.f32.xlu1 %v2566_v2  ;;  %v2381_v52 = vpop.xlane.xlu1 %2380 }
 0x535   :  { %v2481_v46 = vmul.f32 0.03125, %v2426_v0  ;;  %v2466_v6 = vmul.f32 0.03125, %v2381_v52  ;;  %v2529_v58 = vmul.f32 %v6241_v55, %v6241_v55  ;;  %v2544_v44 = vmul.f32 %v6244_v3, %v6244_v3 }
 0x537   :  { %v6253_v14 = vsub.f32 %v5992_v29, %v2481_v46  ;;  %v6256_v10 = vsub.f32 %v5994_v11, %v2466_v6  ;;  %v2569_v22 = vsel %vm2363_vm0, %v2529_v58, 0.0  ;;  %v2614_v34 = vsel %vm2363_vm0, %v2544_v44, 0.0 }
 0x538   :  { %2570 = vadd.xlane.f32.xlu0 %v2569_v22  ;;  %v2384_v1 = vpop.xlane.xlu0 %2383  ;;  %2615 = vadd.xlane.f32.xlu1 %v2614_v34  ;;  %v2429_v7 = vpop.xlane.xlu1 %2428 }
 0x539   :  { %v2467_v25 = vmul.f32 0.03125, %v2384_v1  ;;  %v2482_v18 = vmul.f32 0.03125, %v2429_v7  ;;  %v2545_v12 = vmul.f32 %v6253_v14, %v6253_v14  ;;  %v2530_v29 = vmul.f32 %v6256_v10, %v6256_v10 }
 0x53b   :  { %v6265_v48 = vsub.f32 %v6014_v45, %v2467_v25  ;;  %v6268_v11 = vsub.f32 %v6016_v63, %v2482_v18  ;;  %v2617_v53 = vsel %vm2363_vm0, %v2545_v12, 0.0  ;;  %v2572_v36 = vsel %vm2363_vm0, %v2530_v29, 0.0 }
 0x53c   :  { %2618 = vadd.xlane.f32.xlu0 %v2617_v53  ;;  %v2432_v35 = vpop.xlane.xlu0 %2431  ;;  %2573 = vadd.xlane.f32.xlu1 %v2572_v36  ;;  %v2387_v42 = vpop.xlane.xlu1 %2386 }
 0x53d   :  { %v2483_v57 = vmul.f32 0.03125, %v2432_v35  ;;  %v2468_v19 = vmul.f32 0.03125, %v2387_v42  ;;  %v2531_v37 = vmul.f32 %v6265_v48, %v6265_v48  ;;  %v2546_v45 = vmul.f32 %v6268_v11, %v6268_v11 }
 0x53f   :  { %v6277_v28 = vsub.f32 %v6036_v40, %v2483_v57  ;;  %v6280_v63 = vsub.f32 %v6038_v8, %v2468_v19  ;;  %v2575_v20 = vsel %vm2363_vm0, %v2531_v37, 0.0  ;;  %v2620_v43 = vsel %vm2363_vm0, %v2546_v45, 0.0 }
 0x540   :  { %2576 = vadd.xlane.f32.xlu0 %v2575_v20  ;;  %v2390_v23 = vpop.xlane.xlu0 %2389  ;;  %2621 = vadd.xlane.f32.xlu1 %v2620_v43  ;;  %v2435_v61 = vpop.xlane.xlu1 %2434 }
 0x541   :  { %v2469_v26 = vmul.f32 0.03125, %v2390_v23  ;;  %v2484_v32 = vmul.f32 0.03125, %v2435_v61  ;;  %v2547_v54 = vmul.f32 %v6277_v28, %v6277_v28  ;;  %v2532_v40 = vmul.f32 %v6280_v63, %v6280_v63 }
 0x543   :  { %v6289_v2 = vsub.f32 %v6057_v13, %v2469_v26  ;;  %v6292_v8 = vsub.f32 %v6059_v38, %v2484_v32  ;;  %v2623_v0 = vsel %vm2363_vm0, %v2547_v54, 0.0  ;;  %v2578_v52 = vsel %vm2363_vm0, %v2532_v40, 0.0 }
 0x544   :  { %2624 = vadd.xlane.f32.xlu0 %v2623_v0  ;;  %v2438_v46 = vpop.xlane.xlu0 %2437  ;;  %2579 = vadd.xlane.f32.xlu1 %v2578_v52  ;;  %v2393_v6 = vpop.xlane.xlu1 %2392 }
 0x545   :  { %v2485_v58 = vmul.f32 0.03125, %v2438_v46  ;;  %v2470_v44 = vmul.f32 0.03125, %v2393_v6  ;;  %v2533_v22 = vmul.f32 %v6289_v2, %v6289_v2  ;;  %v2548_v13 = vmul.f32 %v6292_v8, %v6292_v8 }
 0x547   :  { %v6301_v34 = vsub.f32 %v6080_v16, %v2485_v58  ;;  %v6304_v38 = vsub.f32 %v6082_v47, %v2470_v44  ;;  %v2581_v1 = vsel %vm2363_vm0, %v2533_v22, 0.0  ;;  %v2626_v7 = vsel %vm2363_vm0, %v2548_v13, 0.0 }
 0x548   :  { %2582 = vadd.xlane.f32.xlu0 %v2581_v1  ;;  %v2396_v25 = vpop.xlane.xlu0 %2395  ;;  %2627 = vadd.xlane.f32.xlu1 %v2626_v7  ;;  %v2441_v18 = vpop.xlane.xlu1 %2440 }
 0x549   :  { %v2471_v12 = vmul.f32 0.03125, %v2396_v25  ;;  %v2486_v29 = vmul.f32 0.03125, %v2441_v18  ;;  %v2549_v53 = vmul.f32 %v6301_v34, %v6301_v34  ;;  %v2534_v16 = vmul.f32 %v6304_v38, %v6304_v38 }
 0x54b   :  { %v6313_v36 = vsub.f32 %v6099_v24, %v2471_v12  ;;  %v6316_v47 = vsub.f32 %v6101_v30, %v2486_v29  ;;  %v2629_v35 = vsel %vm2363_vm0, %v2549_v53, 0.0  ;;  %v2584_v42 = vsel %vm2363_vm0, %v2534_v16, 0.0 }
 0x54c   :  { %2630 = vadd.xlane.f32.xlu0 %v2629_v35  ;;  %v2444_v57 = vpop.xlane.xlu0 %2443  ;;  %2585 = vadd.xlane.f32.xlu1 %v2584_v42  ;;  %v2399_v19 = vpop.xlane.xlu1 %2398 }
 0x54d   :  { %v2487_v37 = vmul.f32 0.03125, %v2444_v57  ;;  %v2472_v45 = vmul.f32 0.03125, %v2399_v19  ;;  %v2535_v20 = vmul.f32 %v6313_v36, %v6313_v36  ;;  %v2550_v24 = vmul.f32 %v6316_v47, %v6316_v47 }
 0x54f   :  { %v6325_v43 = vsub.f32 %v6121_v4, %v2487_v37  ;;  %v6328_v30 = vsub.f32 %v6123_v31, %v2472_v45  ;;  %v2587_v23 = vsel %vm2363_vm0, %v2535_v20, 0.0  ;;  %v2632_v61 = vsel %vm2363_vm0, %v2550_v24, 0.0 }
 0x550   :  { %2588 = vadd.xlane.f32.xlu0 %v2587_v23  ;;  %v2402_v26 = vpop.xlane.xlu0 %2401  ;;  %2633 = vadd.xlane.f32.xlu1 %v2632_v61  ;;  %v2447_v32 = vpop.xlane.xlu1 %2446 }
 0x551   :  { %v2473_v54 = vmul.f32 0.03125, %v2402_v26  ;;  %v2488_v40 = vmul.f32 0.03125, %v2447_v32  ;;  %v2551_v0 = vmul.f32 %v6325_v43, %v6325_v43  ;;  %v2536_v4 = vmul.f32 %v6328_v30, %v6328_v30 }
 0x553   :  { %v6337_v52 = vsub.f32 %v6140_v33, %v2473_v54  ;;  %v6340_v31 = vsub.f32 %v6142_v60, %v2488_v40  ;;  %v2635_v46 = vsel %vm2363_vm0, %v2551_v0, 0.0  ;;  %v2590_v6 = vsel %vm2363_vm0, %v2536_v4, 0.0 }
 0x554   :  { %2636 = vadd.xlane.f32.xlu0 %v2635_v46  ;;  %v2450_v58 = vpop.xlane.xlu0 %2449  ;;  %2591 = vadd.xlane.f32.xlu1 %v2590_v6  ;;  %v2405_v44 = vpop.xlane.xlu1 %2404 }
 0x555   :  { %v2489_v22 = vmul.f32 0.03125, %v2450_v58  ;;  %v2474_v13 = vmul.f32 0.03125, %v2405_v44  ;;  %v2537_v1 = vmul.f32 %v6337_v52, %v6337_v52  ;;  %v2552_v33 = vmul.f32 %v6340_v31, %v6340_v31 }
 0x557   :  { %v6349_v7 = vsub.f32 %v6162_v50, %v2489_v22  ;;  %v6352_v60 = vsub.f32 %v6164_v9, %v2474_v13  ;;  %v2593_v25 = vsel %vm2363_vm0, %v2537_v1, 0.0  ;;  %v2638_v18 = vsel %vm2363_vm0, %v2552_v33, 0.0 }
 0x558   :  { %2594 = vadd.xlane.f32.xlu0 %v2593_v25  ;;  %v2408_v12 = vpop.xlane.xlu0 %2407  ;;  %2639 = vadd.xlane.f32.xlu1 %v2638_v18  ;;  %v2453_v29 = vpop.xlane.xlu1 %2452 }
 0x559   :  { %v2475_v53 = vmul.f32 0.03125, %v2408_v12  ;;  %v2490_v16 = vmul.f32 0.03125, %v2453_v29  ;;  %v2553_v35 = vmul.f32 %v6349_v7, %v6349_v7  ;;  %v2538_v50 = vmul.f32 %v6352_v60, %v6352_v60 }
 0x55b   :  { %v6361_v42 = vsub.f32 %v6176_v17, %v2475_v53  ;;  %v6364_v9 = vsub.f32 %v6178_v41, %v2490_v16  ;;  %v2641_v57 = vsel %vm2363_vm0, %v2553_v35, 0.0  ;;  %v2596_v19 = vsel %vm2363_vm0, %v2538_v50, 0.0 }
 0x55c   :  { %2642 = vadd.xlane.f32.xlu0 %v2641_v57  ;;  %v2456_v37 = vpop.xlane.xlu0 %2455  ;;  %2597 = vadd.xlane.f32.xlu1 %v2596_v19  ;;  %v2411_v45 = vpop.xlane.xlu1 %2410 }
 0x55d   :  { %v2491_v20 = vmul.f32 0.03125, %v2456_v37  ;;  %v2476_v24 = vmul.f32 0.03125, %v2411_v45  ;;  %v2539_v23 = vmul.f32 %v6361_v42, %v6361_v42  ;;  %v2554_v17 = vmul.f32 %v6364_v9, %v6364_v9 }
 0x55f   :  { %v6373_v61 = vsub.f32 %v6186_v49, %v2491_v20  ;;  %v6376_v41 = vsub.f32 %v6188_v59, %v2476_v24  ;;  %v2599_v26 = vsel %vm2363_vm0, %v2539_v23, 0.0  ;;  %v2644_v32 = vsel %vm2363_vm0, %v2554_v17, 0.0  ;;  %v6395_v23 = vld [vmem:[%s6726_s5] ss:$0 sm:$0xff] }
 0x560   :  { %2600 = vadd.xlane.f32.xlu0 %v2599_v26  ;;  %2645 = vadd.xlane.f32.xlu1 %v2644_v32  ;;  %v2459_v54 = vpop.xlane.xlu1 %2458 }
 0x561   :  { %v2492_v40 = vmul.f32 0.03125, %v2459_v54  ;;  %v2555_v0 = vmul.f32 %v6373_v61, %v6373_v61  ;;  %v2540_v4 = vmul.f32 %v6376_v41, %v6376_v41 }
 0x563   :  { %v6385_v49 = vsub.f32 %v6196_v56, %v2492_v40  ;;  %v2647_v59 = vsel %vm2363_vm0, %v2555_v0, 0.0  ;;  %v2602_v46 = vsel %vm2363_vm0, %v2540_v4, 0.0  ;;  %v6401_v0 = vld [vmem:[%s6727_s6] ss:$0 sm:$0xff] }
 0x564   :  { %2648 = vadd.xlane.f32.xlu0 %v2647_v59  ;;  %2603 = vadd.xlane.f32.xlu1 %v2602_v46 }
 0x565   :  { %v2556_v6 = vmul.f32 %v6385_v49, %v6385_v49 }
 0x567   :  { %v2650_v58 = vsel %vm2363_vm0, %v2556_v6, 0.0 }
 0x568   :  { %2651 = vadd.xlane.f32.xlu1 %v2650_v58  ;;  %v2857_v58 = vld [vmem:[%s6728_s2] sm:$0xff] }
 0x5b5   :  { %v2559_v44 = vpop.xlane.xlu0 %2558 }
 0x5b6   :  { %v2653_v22 = vmul.f32 0.03125, %v2559_v44 }
 0x5b8   :  { %v2685_v13 = vadd.f32 1e-05, %v2653_v22 }
 0x5b9   :  { %v2607_v1 = vpop.xlane.xlu0 %2606  ;;  %v2562_v33 = vpop.xlane.xlu1 %2561 }
 0x5ba   :  { %3251 = vrsqrt.f32 %v2685_v13  ;;  %v2669_v56 = vmul.f32 0.03125, %v2607_v1  ;;  %v2654_v25 = vmul.f32 0.03125, %v2562_v33 }
 0x5bc   :  { %v2701_v18 = vadd.f32 1e-05, %v2669_v56  ;;  %v2686_v12 = vadd.f32 1e-05, %v2654_v25 }
 0x5bd   :  { %v2565_v29 = vpop.xlane.xlu0 %2564  ;;  %v2610_v53 = vpop.xlane.xlu1 %2609 }
 0x5be   :  { %3253 = vrsqrt.f32 %v2701_v18  ;;  %v2655_v16 = vmul.f32 0.03125, %v2565_v29  ;;  %v2670_v35 = vmul.f32 0.03125, %v2610_v53 }
 0x5bf   :  { %3255 = vrsqrt.f32 %v2686_v12 }
 0x5c0   :  { %v2687_v50 = vadd.f32 1e-05, %v2655_v16  ;;  %v2702_v57 = vadd.f32 1e-05, %v2670_v35  ;;  %v2873_v35 = vld [vmem:[%s6728_s2 + $0x80] sm:$0xff] }
 0x5c1   :  { %v2613_v19 = vpop.xlane.xlu0 %2612  ;;  %v2568_v37 = vpop.xlane.xlu1 %2567 }
 0x5c2   :  { %3257 = vrsqrt.f32 %v2687_v50  ;;  %v2671_v45 = vmul.f32 0.03125, %v2613_v19  ;;  %v2656_v20 = vmul.f32 0.03125, %v2568_v37  ;;  %v2858_v37 = vld [vmem:[%s6728_s2 + $0x8] sm:$0xff] }
 0x5c3   :  { %3259 = vrsqrt.f32 %v2702_v57 }
 0x5c4   :  { %v3252_v24 = vpop.eup %3251  ;;  %v2703_v17 = vadd.f32 1e-05, %v2671_v45  ;;  %v2688_v26 = vadd.f32 1e-05, %v2656_v20 }
 0x5c5   :  { %v2749_v32 = vmul.f32 %v3252_v24, %v6201_v21  ;;  %v2571_v54 = vpop.xlane.xlu0 %2570  ;;  %v2616_v40 = vpop.xlane.xlu1 %2615 }
 0x5c6   :  { %3261 = vrsqrt.f32 %v2703_v17  ;;  %v2657_v4 = vmul.f32 0.03125, %v2571_v54  ;;  %v2672_v59 = vmul.f32 0.03125, %v2616_v40 }
 0x5c7   :  { %v2787_v46 = vmul.f32 %v6395_v23, %v2749_v32  ;;  %3263 = vrsqrt.f32 %v2688_v26 }
 0x5c8   :  { %v3254_v6 = vpop.eup %3253  ;;  %v2689_v44 = vadd.f32 1e-05, %v2657_v4  ;;  %v2704_v21 = vadd.f32 1e-05, %v2672_v59 }
 0x5c9   :  { %v3256_v22 = vpop.eup %3255  ;;  %v2825_v13 = vadd.f32 %v6401_v0, %v2787_v46  ;;  %v2765_v1 = vmul.f32 %v3254_v6, %v6206_v51  ;;  %v2619_v33 = vpop.xlane.xlu0 %2618  ;;  %v2859_v6 = vld [vmem:[%s6728_s2 + $0x10] sm:$0xff] }
 0x5ca   :  { %v2574_v56 = vpop.xlane.xlu1 %2573  ;;  %v2750_v25 = vmul.f32 %v3256_v22, %v6209_v27  ;;  %3265 = vrsqrt.f32 %v2689_v44  ;;  %v2673_v18 = vmul.f32 0.03125, %v2619_v33 }
 0x5cb   :  { %v2658_v12 = vmul.f32 0.03125, %v2574_v56  ;;  %v2889_v29 = vadd.f32 %v2857_v58, %v2825_v13  ;;  %v2803_v53 = vmul.f32 %v6395_v23, %v2765_v1  ;;  %3267 = vrsqrt.f32 %v2704_v21  ;;  %v2874_v21 = vld [vmem:[%s6728_s2 + $0x88] sm:$0xff] }
 0x5cc   :  { %v3258_v16 = vpop.eup %3257  ;;  %v2788_v50 = vmul.f32 %v6395_v23, %v2750_v25  ;;  %v2705_v57 = vadd.f32 1e-05, %v2673_v18 }
 0x5cd   :  { %v2690_v51 = vadd.f32 1e-05, %v2658_v12  ;;  %v3260_v19 = vpop.eup %3259  ;;  %2921 = vst.msk [vmem:[%s6729_s7] sm:$0xff] %vm2363_vm0, %v2889_v29  ;;  %v2841_v27 = vadd.f32 %v6401_v0, %v2803_v53  ;;  %v2751_v45 = vmul.f32 %v3258_v16, %v6217_v62  ;;  %v2577_v20 = vpop.xlane.xlu0 %2576 }
 0x5ce   :  { %v2622_v24 = vpop.xlane.xlu1 %2621  ;;  %v2826_v17 = vadd.f32 %v6401_v0, %v2788_v50  ;;  %v2766_v26 = vmul.f32 %v3260_v19, %v6220_v5  ;;  %3269 = vrsqrt.f32 %v2705_v57  ;;  %v2659_v32 = vmul.f32 0.03125, %v2577_v20  ;;  %v2860_v19 = vld [vmem:[%s6728_s2 + $0x18] sm:$0xff] }
 0x5cf   :  { %v2905_v54 = vadd.f32 %v2873_v35, %v2841_v27  ;;  %v2789_v40 = vmul.f32 %v6395_v23, %v2751_v45  ;;  %3271 = vrsqrt.f32 %v2690_v51  ;;  %v2674_v4 = vmul.f32 0.03125, %v2622_v24  ;;  %v2875_v35 = vld [vmem:[%s6728_s2 + $0x90] sm:$0xff] }
 0x5d0   :  { %v3262_v59 = vpop.eup %3261  ;;  %v2890_v46 = vadd.f32 %v2858_v37, %v2826_v17  ;;  %v2804_v62 = vmul.f32 %v6395_v23, %v2766_v26  ;;  %v2691_v58 = vadd.f32 1e-05, %v2659_v32 }
 0x5d1   :  { %v3264_v44 = vpop.eup %3263  ;;  %2937 = vst.msk [vmem:[%s6729_s7 + $0x80] sm:$0xff] %vm2363_vm0, %v2905_v54  ;;  %v2827_v5 = vadd.f32 %v6401_v0, %v2789_v40  ;;  %v2767_v22 = vmul.f32 %v3262_v59, %v6229_v39  ;;  %v2706_v13 = vadd.f32 1e-05, %v2674_v4  ;;  %v2625_v1 = vpop.xlane.xlu0 %2624  ;;  %v2861_v59 = vld [vmem:[%s6728_s2 + $0x20] sm:$0xff] }
 0x5d2   :  { %v2580_v33 = vpop.xlane.xlu1 %2579  ;;  %2922 = vst.msk [vmem:[%s6729_s7 + $0x8] sm:$0xff] %vm2363_vm0, %v2890_v46  ;;  %v2842_v56 = vadd.f32 %v6401_v0, %v2804_v62  ;;  %v2752_v25 = vmul.f32 %v3264_v44, %v6232_v15  ;;  %3273 = vrsqrt.f32 %v2691_v58  ;;  %v2675_v18 = vmul.f32 0.03125, %v2625_v1  ;;  %v2876_v58 = vld [vmem:[%s6728_s2 + $0x98] sm:$0xff] }
 0x5d3   :  { %v2891_v12 = vadd.f32 %v2859_v6, %v2827_v5  ;;  %v2805_v29 = vmul.f32 %v6395_v23, %v2767_v22  ;;  %3275 = vrsqrt.f32 %v2706_v13  ;;  %v2660_v53 = vmul.f32 0.03125, %v2580_v33 }
 0x5d4   :  { %v3266_v39 = vpop.eup %3265  ;;  %v2906_v16 = vadd.f32 %v2874_v21, %v2842_v56  ;;  %v2790_v50 = vmul.f32 %v6395_v23, %v2752_v25  ;;  %v2707_v57 = vadd.f32 1e-05, %v2675_v18 }
 0x5d5   :  { %v3268_v51 = vpop.eup %3267  ;;  %2923 = vst.msk [vmem:[%s6729_s7 + $0x10] sm:$0xff] %vm2363_vm0, %v2891_v12  ;;  %v2843_v15 = vadd.f32 %v6401_v0, %v2805_v29  ;;  %v2753_v27 = vmul.f32 %v3266_v39, %v6241_v55  ;;  %v2692_v37 = vadd.f32 1e-05, %v2660_v53  ;;  %v2583_v45 = vpop.xlane.xlu0 %2582  ;;  %v2877_v29 = vld [vmem:[%s6728_s2 + $0xa0] sm:$0xff] }
 0x5d6   :  { %v2628_v20 = vpop.xlane.xlu1 %2627  ;;  %2938 = vst.msk [vmem:[%s6729_s7 + $0x88] sm:$0xff] %vm2363_vm0, %v2906_v16  ;;  %v2828_v24 = vadd.f32 %v6401_v0, %v2790_v50  ;;  %v2768_v17 = vmul.f32 %v3268_v51, %v6244_v3  ;;  %3277 = vrsqrt.f32 %v2707_v57  ;;  %v2661_v26 = vmul.f32 0.03125, %v2583_v45 }
 0x5d7   :  { %v2907_v32 = vadd.f32 %v2875_v35, %v2843_v15  ;;  %v2791_v54 = vmul.f32 %v6395_v23, %v2753_v27  ;;  %3279 = vrsqrt.f32 %v2692_v37  ;;  %v2676_v40 = vmul.f32 0.03125, %v2628_v20  ;;  %v2862_v35 = vld [vmem:[%s6728_s2 + $0x28] sm:$0xff] }
 0x5d8   :  { %v3270_v55 = vpop.eup %3269  ;;  %v2892_v4 = vadd.f32 %v2860_v19, %v2828_v24  ;;  %v2806_v46 = vmul.f32 %v6395_v23, %v2768_v17  ;;  %v2693_v6 = vadd.f32 1e-05, %v2661_v26  ;;  %v2863_v26 = vld [vmem:[%s6728_s2 + $0x30] sm:$0xff] }
 0x5d9   :  { %v3272_v62 = vpop.eup %3271  ;;  %2939 = vst.msk [vmem:[%s6729_s7 + $0x90] sm:$0xff] %vm2363_vm0, %v2907_v32  ;;  %v2829_v3 = vadd.f32 %v6401_v0, %v2791_v54  ;;  %v2769_v44 = vmul.f32 %v3270_v55, %v6253_v14  ;;  %v2708_v5 = vadd.f32 1e-05, %v2676_v40  ;;  %v2631_v21 = vpop.xlane.xlu0 %2630  ;;  %v2878_v55 = vld [vmem:[%s6728_s2 + $0xa8] sm:$0xff] }
 0x5da   :  { %v2586_v22 = vpop.xlane.xlu1 %2585  ;;  %2924 = vst.msk [vmem:[%s6729_s7 + $0x18] sm:$0xff] %vm2363_vm0, %v2892_v4  ;;  %v2844_v13 = vadd.f32 %v6401_v0, %v2806_v46  ;;  %v2754_v1 = vmul.f32 %v3272_v62, %v6256_v10  ;;  %3281 = vrsqrt.f32 %v2693_v6  ;;  %v2677_v33 = vmul.f32 0.03125, %v2631_v21 }
 0x5db   :  { %v2893_v56 = vadd.f32 %v2861_v59, %v2829_v3  ;;  %v2807_v25 = vmul.f32 %v6395_v23, %v2769_v44  ;;  %3283 = vrsqrt.f32 %v2708_v5  ;;  %v2662_v18 = vmul.f32 0.03125, %v2586_v22 }
 0x5dc   :  { %v3274_v14 = vpop.eup %3273  ;;  %v2908_v12 = vadd.f32 %v2876_v58, %v2844_v13  ;;  %v2792_v53 = vmul.f32 %v6395_v23, %v2754_v1  ;;  %v2709_v39 = vadd.f32 1e-05, %v2677_v33  ;;  %v2879_v13 = vld [vmem:[%s6728_s2 + $0xb0] sm:$0xff] }
 0x5dd   :  { %v3276_v16 = vpop.eup %3275  ;;  %2925 = vst.msk [vmem:[%s6729_s7 + $0x20] sm:$0xff] %vm2363_vm0, %v2893_v56  ;;  %v2845_v10 = vadd.f32 %v6401_v0, %v2807_v25  ;;  %v2755_v50 = vmul.f32 %v3274_v14, %v6265_v48  ;;  %v2694_v57 = vadd.f32 1e-05, %v2662_v18  ;;  %v2589_v51 = vpop.xlane.xlu0 %2588  ;;  %v2864_v25 = vld [vmem:[%s6728_s2 + $0x38] sm:$0xff] }
 0x5de   :  { %v2634_v15 = vpop.xlane.xlu1 %2633  ;;  %2940 = vst.msk [vmem:[%s6729_s7 + $0x98] sm:$0xff] %vm2363_vm0, %v2908_v12  ;;  %v2830_v19 = vadd.f32 %v6401_v0, %v2792_v53  ;;  %v2770_v27 = vmul.f32 %v3276_v16, %v6268_v11  ;;  %3285 = vrsqrt.f32 %v2709_v39  ;;  %v2663_v37 = vmul.f32 0.03125, %v2589_v51  ;;  %v2865_v51 = vld [vmem:[%s6728_s2 + $0x40] sm:$0xff] }
 0x5df   :  { %v2909_v45 = vadd.f32 %v2877_v29, %v2845_v10  ;;  %v2793_v20 = vmul.f32 %v6395_v23, %v2755_v50  ;;  %3287 = vrsqrt.f32 %v2694_v57  ;;  %v2678_v24 = vmul.f32 0.03125, %v2634_v15 }
 0x5e0   :  { %v3278_v48 = vpop.eup %3277  ;;  %v2894_v17 = vadd.f32 %v2862_v35, %v2830_v19  ;;  %v2808_v32 = vmul.f32 %v6395_v23, %v2770_v27  ;;  %v2695_v54 = vadd.f32 1e-05, %v2663_v37  ;;  %v2880_v37 = vld [vmem:[%s6728_s2 + $0xb8] sm:$0xff] }
 0x5e1   :  { %v3280_v40 = vpop.eup %3279  ;;  %2941 = vst.msk [vmem:[%s6729_s7 + $0xa0] sm:$0xff] %vm2363_vm0, %v2909_v45  ;;  %v2831_v11 = vadd.f32 %v6401_v0, %v2793_v20  ;;  %v2771_v4 = vmul.f32 %v3278_v48, %v6277_v28  ;;  %v2710_v59 = vadd.f32 1e-05, %v2678_v24  ;;  %v2637_v46 = vpop.xlane.xlu0 %2636 }
 0x5e2   :  { %v2592_v6 = vpop.xlane.xlu1 %2591  ;;  %2926 = vst.msk [vmem:[%s6729_s7 + $0x28] sm:$0xff] %vm2363_vm0, %v2894_v17  ;;  %v2846_v62 = vadd.f32 %v6401_v0, %v2808_v32  ;;  %v2756_v3 = vmul.f32 %v3280_v40, %v6280_v63  ;;  %3289 = vrsqrt.f32 %v2695_v54  ;;  %v2679_v58 = vmul.f32 0.03125, %v2637_v46 }
 0x5e3   :  { %v2895_v44 = vadd.f32 %v2863_v26, %v2831_v11  ;;  %v2809_v5 = vmul.f32 %v6395_v23, %v2771_v4  ;;  %3291 = vrsqrt.f32 %v2710_v59  ;;  %v2664_v21 = vmul.f32 0.03125, %v2592_v6  ;;  %v2881_v4 = vld [vmem:[%s6728_s2 + $0xc0] sm:$0xff] }
 0x5e4   :  { %v3282_v28 = vpop.eup %3281  ;;  %v2910_v22 = vadd.f32 %v2878_v55, %v2846_v62  ;;  %v2794_v1 = vmul.f32 %v6395_v23, %v2756_v3  ;;  %v2711_v33 = vadd.f32 1e-05, %v2679_v58  ;;  %v2866_v62 = vld [vmem:[%s6728_s2 + $0x48] sm:$0xff] }
 0x5e5   :  { %v3284_v56 = vpop.eup %3283  ;;  %2927 = vst.msk [vmem:[%s6729_s7 + $0x30] sm:$0xff] %vm2363_vm0, %v2895_v44  ;;  %v2847_v63 = vadd.f32 %v6401_v0, %v2809_v5  ;;  %v2757_v18 = vmul.f32 %v3282_v28, %v6289_v2  ;;  %v2696_v14 = vadd.f32 1e-05, %v2664_v21  ;;  %v2595_v12 = vpop.xlane.xlu0 %2594 }
 0x5e6   :  { %v2640_v29 = vpop.xlane.xlu1 %2639  ;;  %2942 = vst.msk [vmem:[%s6729_s7 + $0xa8] sm:$0xff] %vm2363_vm0, %v2910_v22  ;;  %v2832_v53 = vadd.f32 %v6401_v0, %v2794_v1  ;;  %v2772_v39 = vmul.f32 %v3284_v56, %v6292_v8  ;;  %3293 = vrsqrt.f32 %v2711_v33  ;;  %v2665_v16 = vmul.f32 0.03125, %v2595_v12  ;;  %v2882_v12 = vld [vmem:[%s6728_s2 + $0xc8] sm:$0xff] }
 0x5e7   :  { %v2911_v10 = vadd.f32 %v2879_v13, %v2847_v63  ;;  %v2795_v35 = vmul.f32 %v6395_v23, %v2757_v18  ;;  %3295 = vrsqrt.f32 %v2696_v14  ;;  %v2680_v50 = vmul.f32 0.03125, %v2640_v29  ;;  %v2867_v63 = vld [vmem:[%s6728_s2 + $0x50] sm:$0xff] }
 0x5e8   :  { %v3286_v2 = vpop.eup %3285  ;;  %v2896_v57 = vadd.f32 %v2864_v25, %v2832_v53  ;;  %v2810_v15 = vmul.f32 %v6395_v23, %v2772_v39  ;;  %v2697_v19 = vadd.f32 1e-05, %v2665_v16 }
 0x5e9   :  { %v3288_v27 = vpop.eup %3287  ;;  %2943 = vst.msk [vmem:[%s6729_s7 + $0xb0] sm:$0xff] %vm2363_vm0, %v2911_v10  ;;  %v2833_v8 = vadd.f32 %v6401_v0, %v2795_v35  ;;  %v2773_v45 = vmul.f32 %v3286_v2, %v6301_v34  ;;  %v2712_v20 = vadd.f32 1e-05, %v2680_v50  ;;  %v2643_v24 = vpop.xlane.xlu0 %2642 }
 0x5ea   :  { %v2598_v48 = vpop.xlane.xlu1 %2597  ;;  %2928 = vst.msk [vmem:[%s6729_s7 + $0x38] sm:$0xff] %vm2363_vm0, %v2896_v57  ;;  %v2848_v17 = vadd.f32 %v6401_v0, %v2810_v15  ;;  %v2758_v26 = vmul.f32 %v3288_v27, %v6304_v38  ;;  %3297 = vrsqrt.f32 %v2697_v19  ;;  %v2681_v32 = vmul.f32 0.03125, %v2643_v24  ;;  %v2883_v19 = vld [vmem:[%s6728_s2 + $0xd0] sm:$0xff] }
 0x5eb   :  { %v2897_v54 = vadd.f32 %v2865_v51, %v2833_v8  ;;  %v2811_v40 = vmul.f32 %v6395_v23, %v2773_v45  ;;  %3299 = vrsqrt.f32 %v2712_v20  ;;  %v2666_v11 = vmul.f32 0.03125, %v2598_v48  ;;  %v2868_v45 = vld [vmem:[%s6728_s2 + $0x58] sm:$0xff] }
 0x5ec   :  { %v3290_v34 = vpop.eup %3289  ;;  %v2912_v55 = vadd.f32 %v2880_v37, %v2848_v17  ;;  %v2796_v59 = vmul.f32 %v6395_v23, %v2758_v26  ;;  %v2713_v46 = vadd.f32 1e-05, %v2681_v32 }
 0x5ed   :  { %v3292_v6 = vpop.eup %3291  ;;  %2929 = vst.msk [vmem:[%s6729_s7 + $0x40] sm:$0xff] %vm2363_vm0, %v2897_v54  ;;  %v2849_v38 = vadd.f32 %v6401_v0, %v2811_v40  ;;  %v2759_v3 = vmul.f32 %v3290_v34, %v6313_v36  ;;  %v2698_v58 = vadd.f32 1e-05, %v2666_v11  ;;  %v2601_v44 = vpop.xlane.xlu0 %2600 }
 0x5ee   :  { %v2646_v5 = vpop.xlane.xlu1 %2645  ;;  %2944 = vst.msk [vmem:[%s6729_s7 + $0xb8] sm:$0xff] %vm2363_vm0, %v2912_v55  ;;  %v2834_v21 = vadd.f32 %v6401_v0, %v2796_v59  ;;  %v2774_v28 = vmul.f32 %v3292_v6, %v6316_v47  ;;  %3301 = vrsqrt.f32 %v2713_v46  ;;  %v2667_v22 = vmul.f32 0.03125, %v2601_v44  ;;  %v2884_v46 = vld [vmem:[%s6728_s2 + $0xd8] sm:$0xff] }
 0x5ef   :  { %v2913_v13 = vadd.f32 %v2881_v4, %v2849_v38  ;;  %v2797_v1 = vmul.f32 %v6395_v23, %v2759_v3  ;;  %3303 = vrsqrt.f32 %v2698_v58  ;;  %v2682_v33 = vmul.f32 0.03125, %v2646_v5 }
 0x5f0   :  { %v3294_v36 = vpop.eup %3293  ;;  %v2898_v56 = vadd.f32 %v2866_v62, %v2834_v21  ;;  %v2812_v25 = vmul.f32 %v6395_v23, %v2774_v28  ;;  %v2699_v18 = vadd.f32 1e-05, %v2667_v22  ;;  %v2885_v21 = vld [vmem:[%s6728_s2 + $0xe0] sm:$0xff]  ;;  %v2870_v22 = vld [vmem:[%s6728_s2 + $0x68] sm:$0xff] }
 0x5f1   :  { %v3296_v14 = vpop.eup %3295  ;;  %2945 = vst.msk [vmem:[%s6729_s7 + $0xc0] sm:$0xff] %vm2363_vm0, %v2913_v13  ;;  %v2835_v47 = vadd.f32 %v6401_v0, %v2797_v1  ;;  %v2775_v29 = vmul.f32 %v3294_v36, %v6325_v43  ;;  %v2714_v53 = vadd.f32 1e-05, %v2682_v33  ;;  %v2649_v39 = vpop.xlane.xlu0 %2648 }
 0x5f2   :  { %v2604_v16 = vpop.xlane.xlu1 %2603  ;;  %2930 = vst.msk [vmem:[%s6729_s7 + $0x48] sm:$0xff] %vm2363_vm0, %v2898_v56  ;;  %v2850_v10 = vadd.f32 %v6401_v0, %v2812_v25  ;;  %v2760_v35 = vmul.f32 %v3296_v14, %v6328_v30  ;;  %3305 = vrsqrt.f32 %v2699_v18  ;;  %v2683_v50 = vmul.f32 0.03125, %v2649_v39  ;;  %v2871_v18 = vld [vmem:[%s6728_s2 + $0x70] sm:$0xff] }
 0x5f3   :  { %v2899_v2 = vadd.f32 %v2867_v63, %v2835_v47  ;;  %v2813_v57 = vmul.f32 %v6395_v23, %v2775_v29  ;;  %3307 = vrsqrt.f32 %v2714_v53  ;;  %v2668_v51 = vmul.f32 0.03125, %v2604_v16 }
 0x5f4   :  { %v3298_v43 = vpop.eup %3297  ;;  %v2914_v15 = vadd.f32 %v2882_v12, %v2850_v10  ;;  %v2798_v27 = vmul.f32 %v6395_v23, %v2760_v35  ;;  %v2715_v8 = vadd.f32 1e-05, %v2683_v50  ;;  %v2887_v50 = vld [vmem:[%s6728_s2 + $0xf0] sm:$0xff] }
 0x5f5   :  { %v3300_v37 = vpop.eup %3299  ;;  %2931 = vst.msk [vmem:[%s6729_s7 + $0x50] sm:$0xff] %vm2363_vm0, %v2899_v2  ;;  %v2851_v30 = vadd.f32 %v6401_v0, %v2813_v57  ;;  %v2761_v20 = vmul.f32 %v3298_v43, %v6337_v52  ;;  %v2700_v24 = vadd.f32 1e-05, %v2668_v51  ;;  %v2869_v52 = vld [vmem:[%s6728_s2 + $0x60] sm:$0xff] }
 0x5f6   :  { %v2652_v48 = vpop.xlane.xlu1 %2651  ;;  %2946 = vst.msk [vmem:[%s6729_s7 + $0xc8] sm:$0xff] %vm2363_vm0, %v2914_v15  ;;  %v2836_v17 = vadd.f32 %v6401_v0, %v2798_v27  ;;  %v2776_v26 = vmul.f32 %v3300_v37, %v6340_v31  ;;  %3309 = vrsqrt.f32 %v2715_v8  ;;  %v2888_v27 = vld [vmem:[%s6728_s2 + $0xf8] sm:$0xff] }
 0x5f7   :  { %v2684_v32 = vmul.f32 0.03125, %v2652_v48  ;;  %v2915_v54 = vadd.f32 %v2883_v19, %v2851_v30  ;;  %v2799_v40 = vmul.f32 %v6395_v23, %v2761_v20  ;;  %3311 = vrsqrt.f32 %v2700_v24 }
 0x5f8   :  { %v3302_v11 = vpop.eup %3301  ;;  %v2900_v34 = vadd.f32 %v2868_v45, %v2836_v17  ;;  %v2814_v55 = vmul.f32 %v6395_v23, %v2776_v26 }
 0x5f9   :  { %v2716_v4 = vadd.f32 1e-05, %v2684_v32  ;;  %v3304_v59 = vpop.eup %3303  ;;  %2947 = vst.msk [vmem:[%s6729_s7 + $0xd0] sm:$0xff] %vm2363_vm0, %v2915_v54  ;;  %v2837_v31 = vadd.f32 %v6401_v0, %v2799_v40  ;;  %v2777_v6 = vmul.f32 %v3302_v11, %v6349_v7 }
 0x5fa   :  { %2932 = vst.msk [vmem:[%s6729_s7 + $0x58] sm:$0xff] %vm2363_vm0, %v2900_v34  ;;  %v2852_v38 = vadd.f32 %v6401_v0, %v2814_v55  ;;  %v2762_v62 = vmul.f32 %v3304_v59, %v6352_v60 }
 0x5fb   :  { %3313 = vrsqrt.f32 %v2716_v4  ;;  %v2901_v3 = vadd.f32 %v2869_v52, %v2837_v31  ;;  %v2815_v58 = vmul.f32 %v6395_v23, %v2777_v6 }
 0x5fc   :  { %v3306_v44 = vpop.eup %3305  ;;  %v2916_v5 = vadd.f32 %v2884_v46, %v2852_v38  ;;  %v2800_v7 = vmul.f32 %v6395_v23, %v2762_v62 }
 0x5fd   :  { %v3308_v28 = vpop.eup %3307  ;;  %2933 = vst.msk [vmem:[%s6729_s7 + $0x60] sm:$0xff] %vm2363_vm0, %v2901_v3  ;;  %v2853_v60 = vadd.f32 %v6401_v0, %v2815_v58  ;;  %v2763_v13 = vmul.f32 %v3306_v44, %v6361_v42 }
 0x5fe   :  { %2948 = vst.msk [vmem:[%s6729_s7 + $0xd8] sm:$0xff] %vm2363_vm0, %v2916_v5  ;;  %v2838_v1 = vadd.f32 %v6401_v0, %v2800_v7  ;;  %v2778_v33 = vmul.f32 %v3308_v28, %v6364_v9  ;;  %v2886_v9 = vld [vmem:[%s6728_s2 + $0xe8] sm:$0xff] }
 0x5ff   :  { %v2917_v36 = vadd.f32 %v2885_v21, %v2853_v60  ;;  %v2801_v56 = vmul.f32 %v6395_v23, %v2763_v13 }
 0x600   :  { %v3310_v63 = vpop.eup %3309  ;;  %v2902_v25 = vadd.f32 %v2870_v22, %v2838_v1  ;;  %v2816_v42 = vmul.f32 %v6395_v23, %v2778_v33 }
 0x601   :  { %v3312_v14 = vpop.eup %3311  ;;  %2949 = vst.msk [vmem:[%s6729_s7 + $0xe0] sm:$0xff] %vm2363_vm0, %v2917_v36  ;;  %v2839_v47 = vadd.f32 %v6401_v0, %v2801_v56  ;;  %v2779_v12 = vmul.f32 %v3310_v63, %v6373_v61 }
 0x602   :  { %2934 = vst.msk [vmem:[%s6729_s7 + $0x68] sm:$0xff] %vm2363_vm0, %v2902_v25  ;;  %v2854_v29 = vadd.f32 %v6401_v0, %v2816_v42  ;;  %v2764_v53 = vmul.f32 %v3312_v14, %v6376_v41  ;;  %v2872_v41 = vld [vmem:[%s6728_s2 + $0x78] sm:$0xff] }
 0x603   :  { %v2903_v39 = vadd.f32 %v2871_v18, %v2839_v47  ;;  %v2817_v16 = vmul.f32 %v6395_v23, %v2779_v12 }
 0x604   :  { %v2918_v35 = vadd.f32 %v2886_v9, %v2854_v29  ;;  %v2802_v61 = vmul.f32 %v6395_v23, %v2764_v53 }
 0x605   :  { %v3314_v10 = vpop.eup %3313  ;;  %2935 = vst.msk [vmem:[%s6729_s7 + $0x70] sm:$0xff] %vm2363_vm0, %v2903_v39  ;;  %v2855_v2 = vadd.f32 %v6401_v0, %v2817_v16 }
 0x606   :  { %v2780_v57 = vmul.f32 %v3314_v10, %v6385_v49  ;;  %2950 = vst.msk [vmem:[%s6729_s7 + $0xe8] sm:$0xff] %vm2363_vm0, %v2918_v35  ;;  %v2840_v51 = vadd.f32 %v6401_v0, %v2802_v61 }
 0x607   :  { %v2919_v43 = vadd.f32 %v2887_v50, %v2855_v2 }
 0x608   :  { %v2818_v15 = vmul.f32 %v6395_v23, %v2780_v57  ;;  %v2904_v19 = vadd.f32 %v2872_v41, %v2840_v51 }
 0x609   :  { %2951 = vst.msk [vmem:[%s6729_s7 + $0xf0] sm:$0xff] %vm2363_vm0, %v2919_v43 }
 0x60a   :  { %v2856_v49 = vadd.f32 %v6401_v0, %v2818_v15  ;;  %2936 = vst.msk [vmem:[%s6729_s7 + $0x78] sm:$0xff] %vm2363_vm0, %v2904_v19 }
 0x60c   :  { %v2920_v8 = vadd.f32 %v2888_v27, %v2856_v49 }
 0x60e   :  { %2952 = vst.msk [vmem:[%s6729_s7 + $0xf8] sm:$0xff] %vm2363_vm0, %v2920_v8 }

</bundles_post_ra>
